<compile_context>
chip_gen: v5e
topology: v5e:2x2
jax: 0.10.0
libtpu: 0.0.40
codegen_flags: <defaults>
</compile_context>

<pallas_src>
import functools

import jax
import jax.numpy as jnp
from jax.experimental import pallas as pl
from jax.experimental.pallas import tpu as pltpu

LANE = 128


def _rup(x, m):
    return ((x + m - 1) // m) * m


def _cpad(c):
    """Pad an output-channel count up to a lane-dense multiple of 128."""
    return max(LANE, _rup(c, LANE))


def _device_kind():
    try:
        return jax.devices()[0].device_kind.lower()
    except Exception:
        return ""


_KIND = _device_kind()
_SPLIT_M = "v7" in _KIND                      # 2 row blocks only on dual-TC chips
_PRO_DT = jnp.bfloat16 if ("v6" in _KIND or "v7" in _KIND) else jnp.float32


def _pick_tm(mp, k, cp, split_two):
    """Largest multiple-of-8 divisor of mp, capped so the A/out blocks stay
    comfortably within VMEM; on v7x force >=2 blocks for the large layers so
    the 'parallel' axis can shard across both TensorCores."""
    bytes_per_row = 2 * k + 2 * cp + 4 * cp          # bf16 A + bf16 out + f32 slack
    cap = max(8, (8 * 1024 * 1024) // max(bytes_per_row, 1))
    cap = min(cap, 2048)
    if split_two and mp >= 512:
        cap = min(cap, mp // 2)
    cap = min(cap, mp)
    best = 8
    d = 8
    while d <= cap:
        if mp % d == 0:
            best = d
        d += 8
    return best


# ----------------------------- fused Pallas kernel -----------------------------
# grid = (gm,): one "parallel" axis over output row blocks; the whole K
# reduction is a single MXU matmul (no scratch accumulator).

def _fused_conv_kernel(*refs, prologue, epilogue):
    if prologue:
        a_ref, w_ref, sc_ref, sh_ref, *rest = refs
    else:
        a_ref, w_ref, *rest = refs
        sc_ref = sh_ref = None
    if epilogue == "stats":
        y_ref, st_ref = rest
    else:
        (y_ref,) = rest
        st_ref = None

    a = a_ref[...]
    if prologue:
        # Previous layer's BatchNorm (per-channel scale/shift tiled along K)
        # followed by LeakyReLU(0.2).  bf16 on v6e/v7x, f32 on v5e.
        pd = sc_ref.dtype
        af = a.astype(pd) * sc_ref[...] + sh_ref[...]
        af = jnp.maximum(af, af * 0.2)
        a = af.astype(jnp.bfloat16)

    y = jnp.dot(a, w_ref[...], preferred_element_type=jnp.float32)

    if epilogue == "leaky":
        y = jnp.maximum(y, 0.2 * y)
    elif epilogue == "sigmoid":
        y = jax.nn.sigmoid(y)
    elif epilogue == "stats":
        st_ref[...] = jnp.stack(
            [jnp.sum(y, axis=0), jnp.sum(y * y, axis=0)], axis=0)[None]
    y_ref[...] = y.astype(y_ref.dtype)


def fused_conv(a, w, *, epilogue, scale_k=None, shift_k=None,
               out_dtype=jnp.bfloat16):
    """a: (M, K) bf16 im2col patches; w: (K, Cp) bf16 channel-padded weights."""
    M, K = a.shape
    Kw, Cp = w.shape
    assert Kw == K and K % LANE == 0 and Cp % LANE == 0

    Mp = _rup(M, 8)
    if Mp != M:
        assert epilogue != "stats"   # BN layers always have M % 8 == 0 (N*Ho*Wo)
        a = jnp.pad(a, ((0, Mp - M), (0, 0)))

    tm = _pick_tm(Mp, K, Cp, _SPLIT_M)
    gm = Mp // tm

    prologue = scale_k is not None
    inputs = [a, w]
    in_specs = [
        pl.BlockSpec((tm, K), lambda m: (m, 0)),    # A row block, full K
        pl.BlockSpec((K, Cp), lambda m: (0, 0)),    # full W (resident)
    ]
    if prologue:
        inputs += [scale_k.astype(_PRO_DT), shift_k.astype(_PRO_DT)]
        in_specs += [pl.BlockSpec((1, K), lambda m: (0, 0)),   # BN scale
                     pl.BlockSpec((1, K), lambda m: (0, 0))]   # BN shift

    out_shape = jax.ShapeDtypeStruct((Mp, Cp), out_dtype)
    out_specs = pl.BlockSpec((tm, Cp), lambda m: (m, 0))
    if epilogue == "stats":
        out_shape = (out_shape, jax.ShapeDtypeStruct((gm, 2, Cp), jnp.float32))
        out_specs = (out_specs, pl.BlockSpec((1, 2, Cp), lambda m: (m, 0, 0)))

    return pl.pallas_call(
        functools.partial(_fused_conv_kernel, prologue=prologue, epilogue=epilogue),
        out_shape=out_shape,
        grid=(gm,),
        in_specs=in_specs,
        out_specs=out_specs,
        compiler_params=pltpu.CompilerParams(
            dimension_semantics=("parallel",),
            vmem_limit_bytes=32 * 1024 * 1024,
        ),
    )(*inputs)


# ----------------------------- JAX glue -----------------------------

def im2col(x, k, stride, pad):
    """x: (N, H, W, C) bf16 -> (N*Ho*Wo, k*k*C), feature order (i*k+j)*C + c."""
    N, H, W, C = x.shape
    if pad:
        x = jnp.pad(x, ((0, 0), (pad, pad), (pad, pad), (0, 0)))
    Ho = (H + 2 * pad - k) // stride + 1
    Wo = (W + 2 * pad - k) // stride + 1
    cols = []
    for i in range(k):
        for j in range(k):
            cols.append(x[:, i:i + stride * Ho:stride, j:j + stride * Wo:stride, :])
    p = jnp.stack(cols, axis=3)            # (N, Ho, Wo, k*k, C)
    return p.reshape(N * Ho * Wo, k * k * C), (N, Ho, Wo)


def _bn_scale_shift(stats, m_rows, gamma_p, beta_p, ck, eps=1e-5):
    """Per-block partial stats -> per-channel scale/shift, tiled along next K."""
    tot = jnp.sum(stats[:, 0, :], axis=0)
    tsq = jnp.sum(stats[:, 1, :], axis=0)
    mean = tot / m_rows
    var = tsq / m_rows - mean * mean            # biased batch var (PyTorch train BN)
    scale = gamma_p / jnp.sqrt(var + eps)       # padded channels: gamma=0 -> scale=0
    shift = beta_p - mean * scale
    scale = scale[:ck]
    shift = shift[:ck]
    return (jnp.tile(scale.reshape(1, ck), (1, 16)),
            jnp.tile(shift.reshape(1, ck), (1, 16)))


def torch_weight_to_mat(w, cin_pad, cout_pad):
    """(C_out, C_in, kh, kw) -> (kh*kw*cin_pad, cout_pad) bf16, zero-padded."""
    co, ci, kh, kw = w.shape
    w = jnp.pad(w, ((0, cout_pad - co), (0, cin_pad - ci), (0, 0), (0, 0)))
    return jnp.transpose(w, (2, 3, 1, 0)).reshape(kh * kw * cin_pad, cout_pad
                                                  ).astype(jnp.bfloat16)


def init_params(key, photo_channels, dis_maps):
    ks = jax.random.split(key, 8)
    ch = [photo_channels, dis_maps, dis_maps * 2, dis_maps * 4, dis_maps * 8, 1]
    params = {}
    for li in range(5):
        cin_k = _rup(ch[li], 8)             # K de-pad: only rup(C_in, 8) rows carried
        cout_p = _cpad(ch[li + 1])          # lane-dense output columns
        w = 0.02 * jax.random.normal(ks[li], (ch[li + 1], ch[li], 4, 4), jnp.float32)
        params[f"w{li + 1}"] = torch_weight_to_mat(w, cin_k, cout_p)
    for i, li in enumerate((2, 3, 4)):
        c, c_p = ch[li], _cpad(ch[li])
        g = 1.0 + 0.02 * jax.random.normal(ks[5 + i], (c,), jnp.float32)
        params[f"g{li}"] = jnp.pad(g, (0, c_p - c))      # zero gamma on padded chans
        params[f"b{li}"] = jnp.zeros((c_p,), jnp.float32)
    return params


@functools.partial(jax.jit, static_argnames=("dis_maps",))
def discriminator_forward(x_nchw, params, *, dis_maps):
    # NCHW -> NHWC, bf16 activations throughout; final output NCHW (N, 1, 1, 1).
    x = jnp.transpose(x_nchw, (0, 2, 3, 1)).astype(jnp.bfloat16)
    cin = x.shape[-1]
    cin_k = _rup(cin, 8)
    if cin_k != cin:                          # lane-dense K for conv1 (e.g. 48 -> 128)
        x = jnp.pad(x, ((0, 0), (0, 0), (0, 0), (0, cin_k - cin)))

    # conv1 + LeakyReLU (epilogue)
    a, (N, Ho, Wo) = im2col(x, 4, 2, 1)
    y = fused_conv(a, params["w1"], epilogue="leaky")
    ck = _rup(dis_maps, 8)
    x = y[:, :ck].reshape(N, Ho, Wo, ck)      # de-padded channel handoff

    # conv2..conv4: matmul + in-kernel BN stats; BN+LeakyReLU applied as the
    # next layer's prologue.
    scale_k = shift_k = None
    for li in (2, 3, 4):
        a, (N, Ho, Wo) = im2col(x, 4, 2, 1)
        y, stats = fused_conv(a, params[f"w{li}"], epilogue="stats",
                              scale_k=scale_k, shift_k=shift_k)
        c_out = dis_maps * (2 ** (li - 1))
        ck = _rup(c_out, 8)
        scale_k, shift_k = _bn_scale_shift(stats, a.shape[0],
                                           params[f"g{li}"], params[f"b{li}"], ck)
        x = y[:, :ck].reshape(N, Ho, Wo, ck)  # raw conv output (pre-BN), de-padded

    # conv5 (4x4, stride 1, no pad): BN4+LeakyReLU prologue, Sigmoid epilogue.
    a, (N, Ho, Wo) = im2col(x, 4, 1, 0)
    y = fused_conv(a, params["w5"], epilogue="sigmoid",
                   scale_k=scale_k, shift_k=shift_k, out_dtype=jnp.float32)
    return y[:N * Ho * Wo, 0:1].reshape(N, 1, 1, 1)


if __name__ == "__main__":
    key = jax.random.PRNGKey(0)
    k_x, k_p = jax.random.split(key)

    # Architecture needs 64x64 input (5 stride-2/valid-4x4 stages -> 1x1).
    batch, photo_channels, dis_maps, spatial = 2, 3, 4, 64
    x = jax.random.normal(k_x, (batch, photo_channels, spatial, spatial), jnp.float32)
    params = init_params(k_p, photo_channels, dis_maps)

    out = discriminator_forward(x, params, dis_maps=dis_maps)
    out = jax.block_until_ready(out)
    assert out.shape == (batch, 1, 1, 1)
    assert bool(jnp.all((out >= 0.0) & (out <= 1.0)))
    print("KERNEL_OK")
</pallas_src>

<mosaic_0001>
module attributes {stable_mosaic.version = 11 : i64} {
  func.func @_fused_conv_kernel(%arg0: i32, %arg1: memref<2048x128xbf16, #tpu.memory_space<vmem>>, %arg2: memref<128x128xbf16, #tpu.memory_space<vmem>>, %arg3: memref<2048x128xbf16, #tpu.memory_space<vmem>>) attributes {dimension_semantics = [#tpu.dimension_semantics<parallel>], iteration_bounds = array<i64: 1>, scalar_prefetch = 0 : i64, scratch_operands = 0 : i64, tpu.core_type = #tpu.core_type<tc>, window_params = [{transform_indices = @transform_0, window_bounds = array<i64: 2048, 128>}, {pipeline_mode = #tpu.pipeline_mode<synchronous>, transform_indices = @transform_1, window_bounds = array<i64: 128, 128>}, {transform_indices = @transform_2, window_bounds = array<i64: 2048, 128>}]} {
    %c0 = arith.constant 0 : index
    %c0_0 = arith.constant 0 : index
    %0 = vector.load %arg1[%c0, %c0_0] : memref<2048x128xbf16, #tpu.memory_space<vmem>>, vector<2048x128xbf16>
    %c0_1 = arith.constant 0 : index
    %c0_2 = arith.constant 0 : index
    %1 = vector.load %arg2[%c0_1, %c0_2] : memref<128x128xbf16, #tpu.memory_space<vmem>>, vector<128x128xbf16>
    %cst = arith.constant dense<0.000000e+00> : vector<2048x128xf32>
    %2 = tpu.matmul %0, %1, %cst {dimension_numbers = #tpu.dot_dimension_numbers<[1], [0], [0], [1], [0, 0, 1, 1], [], []>} : vector<2048x128xbf16>, vector<128x128xbf16>, vector<2048x128xf32> -> vector<2048x128xf32>
    %cst_3 = arith.constant 2.000000e-01 : f32
    %3 = vector.broadcast %cst_3 : f32 to vector<2048x128xf32>
    %4 = arith.mulf %3, %2 : vector<2048x128xf32>
    %5 = arith.maximumf %2, %4 : vector<2048x128xf32>
    %6 = arith.truncf %5 : vector<2048x128xf32> to vector<2048x128xbf16>
    %c0_4 = arith.constant 0 : index
    %c0_5 = arith.constant 0 : index
    %7 = vector.load %arg3[%c0_4, %c0_5] : memref<2048x128xbf16, #tpu.memory_space<vmem>>, vector<2048x128xbf16>
    tpu.vector_store %arg3[%c0_4, %c0_5], %6 {strides = array<i32>} : memref<2048x128xbf16, #tpu.memory_space<vmem>>, vector<2048x128xbf16>,
    return
  }
  func.func @transform_0(%arg0: i32) -> (i32, i32) {
    %c0_i32 = arith.constant 0 : i32
    %c0_i32_0 = arith.constant 0 : i32
    return %arg0, %c0_i32 : i32, i32
  }
  func.func @transform_1(%arg0: i32) -> (i32, i32) {
    %c0_i32 = arith.constant 0 : i32
    %c0_i32_0 = arith.constant 0 : i32
    %c0_i32_1 = arith.constant 0 : i32
    return %c0_i32, %c0_i32_0 : i32, i32
  }
  func.func @transform_2(%arg0: i32) -> (i32, i32) {
    %c0_i32 = arith.constant 0 : i32
    %c0_i32_0 = arith.constant 0 : i32
    return %arg0, %c0_i32 : i32, i32
  }
}

module attributes {stable_mosaic.version = 11 : i64} {
  func.func @_fused_conv_kernel(%arg0: i32, %arg1: memref<512x128xbf16, #tpu.memory_space<vmem>>, %arg2: memref<128x128xbf16, #tpu.memory_space<vmem>>, %arg3: memref<512x128xbf16, #tpu.memory_space<vmem>>, %arg4: memref<1x2x128xf32, #tpu.memory_space<vmem>>) attributes {dimension_semantics = [#tpu.dimension_semantics<parallel>], iteration_bounds = array<i64: 1>, scalar_prefetch = 0 : i64, scratch_operands = 0 : i64, tpu.core_type = #tpu.core_type<tc>, window_params = [{transform_indices = @transform_0, window_bounds = array<i64: 512, 128>}, {pipeline_mode = #tpu.pipeline_mode<synchronous>, transform_indices = @transform_1, window_bounds = array<i64: 128, 128>}, {transform_indices = @transform_2, window_bounds = array<i64: 512, 128>}, {transform_indices = @transform_3, window_bounds = array<i64: 1, 2, 128>}]} {
    %c0 = arith.constant 0 : index
    %c0_0 = arith.constant 0 : index
    %0 = vector.load %arg1[%c0, %c0_0] : memref<512x128xbf16, #tpu.memory_space<vmem>>, vector<512x128xbf16>
    %c0_1 = arith.constant 0 : index
    %c0_2 = arith.constant 0 : index
    %1 = vector.load %arg2[%c0_1, %c0_2] : memref<128x128xbf16, #tpu.memory_space<vmem>>, vector<128x128xbf16>
    %cst = arith.constant dense<0.000000e+00> : vector<512x128xf32>
    %2 = tpu.matmul %0, %1, %cst {dimension_numbers = #tpu.dot_dimension_numbers<[1], [0], [0], [1], [0, 0, 1, 1], [], []>} : vector<512x128xbf16>, vector<128x128xbf16>, vector<512x128xf32> -> vector<512x128xf32>
    %cst_3 = arith.constant dense<0.000000e+00> : vector<128xf32>
    %3 = vector.multi_reduction <add>, %2, %cst_3 [0] : vector<512x128xf32> to vector<128xf32>
    %4 = arith.mulf %2, %2 : vector<512x128xf32>
    %cst_4 = arith.constant dense<0.000000e+00> : vector<128xf32>
    %5 = vector.multi_reduction <add>, %4, %cst_4 [0] : vector<512x128xf32> to vector<128xf32>
    %6 = vector.shape_cast %3 : vector<128xf32> to vector<1x128xf32>
    %7 = vector.shape_cast %5 : vector<128xf32> to vector<1x128xf32>
    %8 = tpu.concatenate %6, %7 in 0 : vector<1x128xf32>, vector<1x128xf32> -> vector<2x128xf32>
    %9 = vector.shape_cast %8 : vector<2x128xf32> to vector<1x2x128xf32>
    %c0_5 = arith.constant 0 : index
    %c0_6 = arith.constant 0 : index
    %c0_7 = arith.constant 0 : index
    %10 = vector.load %arg4[%c0_5, %c0_6, %c0_7] : memref<1x2x128xf32, #tpu.memory_space<vmem>>, vector<1x2x128xf32>
    tpu.vector_store %arg4[%c0_5, %c0_6, %c0_7], %9 {strides = array<i32>} : memref<1x2x128xf32, #tpu.memory_space<vmem>>, vector<1x2x128xf32>,
    %11 = arith.truncf %2 : vector<512x128xf32> to vector<512x128xbf16>
    %c0_8 = arith.constant 0 : index
    %c0_9 = arith.constant 0 : index
    %12 = vector.load %arg3[%c0_8, %c0_9] : memref<512x128xbf16, #tpu.memory_space<vmem>>, vector<512x128xbf16>
    tpu.vector_store %arg3[%c0_8, %c0_9], %11 {strides = array<i32>} : memref<512x128xbf16, #tpu.memory_space<vmem>>, vector<512x128xbf16>,
    return
  }
  func.func @transform_0(%arg0: i32) -> (i32, i32) {
    %c0_i32 = arith.constant 0 : i32
    %c0_i32_0 = arith.constant 0 : i32
    return %arg0, %c0_i32 : i32, i32
  }
  func.func @transform_1(%arg0: i32) -> (i32, i32) {
    %c0_i32 = arith.constant 0 : i32
    %c0_i32_0 = arith.constant 0 : i32
    %c0_i32_1 = arith.constant 0 : i32
    return %c0_i32, %c0_i32_0 : i32, i32
  }
  func.func @transform_2(%arg0: i32) -> (i32, i32) {
    %c0_i32 = arith.constant 0 : i32
    %c0_i32_0 = arith.constant 0 : i32
    return %arg0, %c0_i32 : i32, i32
  }
  func.func @transform_3(%arg0: i32) -> (i32, i32, i32) {
    %c0_i32 = arith.constant 0 : i32
    %c0_i32_0 = arith.constant 0 : i32
    %c0_i32_1 = arith.constant 0 : i32
    return %arg0, %c0_i32, %c0_i32_0 : i32, i32, i32
  }
}

module attributes {stable_mosaic.version = 11 : i64} {
  func.func @_fused_conv_kernel(%arg0: i32, %arg1: memref<128x128xbf16, #tpu.memory_space<vmem>>, %arg2: memref<128x128xbf16, #tpu.memory_space<vmem>>, %arg3: memref<1x128xf32, #tpu.memory_space<vmem>>, %arg4: memref<1x128xf32, #tpu.memory_space<vmem>>, %arg5: memref<128x128xbf16, #tpu.memory_space<vmem>>, %arg6: memref<1x2x128xf32, #tpu.memory_space<vmem>>) attributes {dimension_semantics = [#tpu.dimension_semantics<parallel>], iteration_bounds = array<i64: 1>, scalar_prefetch = 0 : i64, scratch_operands = 0 : i64, tpu.core_type = #tpu.core_type<tc>, window_params = [{transform_indices = @transform_0, window_bounds = array<i64: 128, 128>}, {pipeline_mode = #tpu.pipeline_mode<synchronous>, transform_indices = @transform_1, window_bounds = array<i64: 128, 128>}, {pipeline_mode = #tpu.pipeline_mode<synchronous>, transform_indices = @transform_2, window_bounds = array<i64: 1, 128>}, {pipeline_mode = #tpu.pipeline_mode<synchronous>, transform_indices = @transform_3, window_bounds = array<i64: 1, 128>}, {transform_indices = @transform_4, window_bounds = array<i64: 128, 128>}, {transform_indices = @transform_5, window_bounds = array<i64: 1, 2, 128>}]} {
    %c0 = arith.constant 0 : index
    %c0_0 = arith.constant 0 : index
    %0 = vector.load %arg1[%c0, %c0_0] : memref<128x128xbf16, #tpu.memory_space<vmem>>, vector<128x128xbf16>
    %1 = arith.extf %0 : vector<128x128xbf16> to vector<128x128xf32>
    %c0_1 = arith.constant 0 : index
    %c0_2 = arith.constant 0 : index
    %2 = vector.load %arg3[%c0_1, %c0_2] : memref<1x128xf32, #tpu.memory_space<vmem>>, vector<1x128xf32>
    %3 = vector.broadcast %2 : vector<1x128xf32> to vector<128x128xf32>
    %4 = arith.mulf %1, %3 : vector<128x128xf32>
    %c0_3 = arith.constant 0 : index
    %c0_4 = arith.constant 0 : index
    %5 = vector.load %arg4[%c0_3, %c0_4] : memref<1x128xf32, #tpu.memory_space<vmem>>, vector<1x128xf32>
    %6 = vector.broadcast %5 : vector<1x128xf32> to vector<128x128xf32>
    %7 = arith.addf %4, %6 : vector<128x128xf32>
    %cst = arith.constant 2.000000e-01 : f32
    %8 = vector.broadcast %cst : f32 to vector<128x128xf32>
    %9 = arith.mulf %7, %8 : vector<128x128xf32>
    %10 = arith.maximumf %7, %9 : vector<128x128xf32>
    %11 = arith.truncf %10 : vector<128x128xf32> to vector<128x128xbf16>
    %c0_5 = arith.constant 0 : index
    %c0_6 = arith.constant 0 : index
    %12 = vector.load %arg2[%c0_5, %c0_6] : memref<128x128xbf16, #tpu.memory_space<vmem>>, vector<128x128xbf16>
    %cst_7 = arith.constant dense<0.000000e+00> : vector<128x128xf32>
    %13 = tpu.matmul %11, %12, %cst_7 {dimension_numbers = #tpu.dot_dimension_numbers<[1], [0], [0], [1], [0, 0, 1, 1], [], []>} : vector<128x128xbf16>, vector<128x128xbf16>, vector<128x128xf32> -> vector<128x128xf32>
    %cst_8 = arith.constant dense<0.000000e+00> : vector<128xf32>
    %14 = vector.multi_reduction <add>, %13, %cst_8 [0] : vector<128x128xf32> to vector<128xf32>
    %15 = arith.mulf %13, %13 : vector<128x128xf32>
    %cst_9 = arith.constant dense<0.000000e+00> : vector<128xf32>
    %16 = vector.multi_reduction <add>, %15, %cst_9 [0] : vector<128x128xf32> to vector<128xf32>
    %17 = vector.shape_cast %14 : vector<128xf32> to vector<1x128xf32>
    %18 = vector.shape_cast %16 : vector<128xf32> to vector<1x128xf32>
    %19 = tpu.concatenate %17, %18 in 0 : vector<1x128xf32>, vector<1x128xf32> -> vector<2x128xf32>
    %20 = vector.shape_cast %19 : vector<2x128xf32> to vector<1x2x128xf32>
    %c0_10 = arith.constant 0 : index
    %c0_11 = arith.constant 0 : index
    %c0_12 = arith.constant 0 : index
    %21 = vector.load %arg6[%c0_10, %c0_11, %c0_12] : memref<1x2x128xf32, #tpu.memory_space<vmem>>, vector<1x2x128xf32>
    tpu.vector_store %arg6[%c0_10, %c0_11, %c0_12], %20 {strides = array<i32>} : memref<1x2x128xf32, #tpu.memory_space<vmem>>, vector<1x2x128xf32>,
    %22 = arith.truncf %13 : vector<128x128xf32> to vector<128x128xbf16>
    %c0_13 = arith.constant 0 : index
    %c0_14 = arith.constant 0 : index
    %23 = vector.load %arg5[%c0_13, %c0_14] : memref<128x128xbf16, #tpu.memory_space<vmem>>, vector<128x128xbf16>
    tpu.vector_store %arg5[%c0_13, %c0_14], %22 {strides = array<i32>} : memref<128x128xbf16, #tpu.memory_space<vmem>>, vector<128x128xbf16>,
    return
  }
  func.func @transform_0(%arg0: i32) -> (i32, i32) {
    %c0_i32 = arith.constant 0 : i32
    %c0_i32_0 = arith.constant 0 : i32
    return %arg0, %c0_i32 : i32, i32
  }
  func.func @transform_1(%arg0: i32) -> (i32, i32) {
    %c0_i32 = arith.constant 0 : i32
    %c0_i32_0 = arith.constant 0 : i32
    %c0_i32_1 = arith.constant 0 : i32
    return %c0_i32, %c0_i32_0 : i32, i32
  }
  func.func @transform_2(%arg0: i32) -> (i32, i32) {
    %c0_i32 = arith.constant 0 : i32
    %c0_i32_0 = arith.constant 0 : i32
    %c0_i32_1 = arith.constant 0 : i32
    return %c0_i32, %c0_i32_0 : i32, i32
  }
  func.func @transform_3(%arg0: i32) -> (i32, i32) {
    %c0_i32 = arith.constant 0 : i32
    %c0_i32_0 = arith.constant 0 : i32
    %c0_i32_1 = arith.constant 0 : i32
    return %c0_i32, %c0_i32_0 : i32, i32
  }
  func.func @transform_4(%arg0: i32) -> (i32, i32) {
    %c0_i32 = arith.constant 0 : i32
    %c0_i32_0 = arith.constant 0 : i32
    return %arg0, %c0_i32 : i32, i32
  }
  func.func @transform_5(%arg0: i32) -> (i32, i32, i32) {
    %c0_i32 = arith.constant 0 : i32
    %c0_i32_0 = arith.constant 0 : i32
    %c0_i32_1 = arith.constant 0 : i32
    return %arg0, %c0_i32, %c0_i32_0 : i32, i32, i32
  }
}

module attributes {stable_mosaic.version = 11 : i64} {
  func.func @_fused_conv_kernel(%arg0: i32, %arg1: memref<32x256xbf16, #tpu.memory_space<vmem>>, %arg2: memref<256x128xbf16, #tpu.memory_space<vmem>>, %arg3: memref<1x256xf32, #tpu.memory_space<vmem>>, %arg4: memref<1x256xf32, #tpu.memory_space<vmem>>, %arg5: memref<32x128xbf16, #tpu.memory_space<vmem>>, %arg6: memref<1x2x128xf32, #tpu.memory_space<vmem>>) attributes {dimension_semantics = [#tpu.dimension_semantics<parallel>], iteration_bounds = array<i64: 1>, scalar_prefetch = 0 : i64, scratch_operands = 0 : i64, tpu.core_type = #tpu.core_type<tc>, window_params = [{transform_indices = @transform_0, window_bounds = array<i64: 32, 256>}, {pipeline_mode = #tpu.pipeline_mode<synchronous>, transform_indices = @transform_1, window_bounds = array<i64: 256, 128>}, {pipeline_mode = #tpu.pipeline_mode<synchronous>, transform_indices = @transform_2, window_bounds = array<i64: 1, 256>}, {pipeline_mode = #tpu.pipeline_mode<synchronous>, transform_indices = @transform_3, window_bounds = array<i64: 1, 256>}, {transform_indices = @transform_4, window_bounds = array<i64: 32, 128>}, {transform_indices = @transform_5, window_bounds = array<i64: 1, 2, 128>}]} {
    %c0 = arith.constant 0 : index
    %c0_0 = arith.constant 0 : index
    %0 = vector.load %arg1[%c0, %c0_0] : memref<32x256xbf16, #tpu.memory_space<vmem>>, vector<32x256xbf16>
    %1 = arith.extf %0 : vector<32x256xbf16> to vector<32x256xf32>
    %c0_1 = arith.constant 0 : index
    %c0_2 = arith.constant 0 : index
    %2 = vector.load %arg3[%c0_1, %c0_2] : memref<1x256xf32, #tpu.memory_space<vmem>>, vector<1x256xf32>
    %3 = vector.broadcast %2 : vector<1x256xf32> to vector<32x256xf32>
    %4 = arith.mulf %1, %3 : vector<32x256xf32>
    %c0_3 = arith.constant 0 : index
    %c0_4 = arith.constant 0 : index
    %5 = vector.load %arg4[%c0_3, %c0_4] : memref<1x256xf32, #tpu.memory_space<vmem>>, vector<1x256xf32>
    %6 = vector.broadcast %5 : vector<1x256xf32> to vector<32x256xf32>
    %7 = arith.addf %4, %6 : vector<32x256xf32>
    %cst = arith.constant 2.000000e-01 : f32
    %8 = vector.broadcast %cst : f32 to vector<32x256xf32>
    %9 = arith.mulf %7, %8 : vector<32x256xf32>
    %10 = arith.maximumf %7, %9 : vector<32x256xf32>
    %11 = arith.truncf %10 : vector<32x256xf32> to vector<32x256xbf16>
    %c0_5 = arith.constant 0 : index
    %c0_6 = arith.constant 0 : index
    %12 = vector.load %arg2[%c0_5, %c0_6] : memref<256x128xbf16, #tpu.memory_space<vmem>>, vector<256x128xbf16>
    %cst_7 = arith.constant dense<0.000000e+00> : vector<32x128xf32>
    %13 = tpu.matmul %11, %12, %cst_7 {dimension_numbers = #tpu.dot_dimension_numbers<[1], [0], [0], [1], [0, 0, 1, 1], [], []>} : vector<32x256xbf16>, vector<256x128xbf16>, vector<32x128xf32> -> vector<32x128xf32>
    %cst_8 = arith.constant dense<0.000000e+00> : vector<128xf32>
    %14 = vector.multi_reduction <add>, %13, %cst_8 [0] : vector<32x128xf32> to vector<128xf32>
    %15 = arith.mulf %13, %13 : vector<32x128xf32>
    %cst_9 = arith.constant dense<0.000000e+00> : vector<128xf32>
    %16 = vector.multi_reduction <add>, %15, %cst_9 [0] : vector<32x128xf32> to vector<128xf32>
    %17 = vector.shape_cast %14 : vector<128xf32> to vector<1x128xf32>
    %18 = vector.shape_cast %16 : vector<128xf32> to vector<1x128xf32>
    %19 = tpu.concatenate %17, %18 in 0 : vector<1x128xf32>, vector<1x128xf32> -> vector<2x128xf32>
    %20 = vector.shape_cast %19 : vector<2x128xf32> to vector<1x2x128xf32>
    %c0_10 = arith.constant 0 : index
    %c0_11 = arith.constant 0 : index
    %c0_12 = arith.constant 0 : index
    %21 = vector.load %arg6[%c0_10, %c0_11, %c0_12] : memref<1x2x128xf32, #tpu.memory_space<vmem>>, vector<1x2x128xf32>
    tpu.vector_store %arg6[%c0_10, %c0_11, %c0_12], %20 {strides = array<i32>} : memref<1x2x128xf32, #tpu.memory_space<vmem>>, vector<1x2x128xf32>,
    %22 = arith.truncf %13 : vector<32x128xf32> to vector<32x128xbf16>
    %c0_13 = arith.constant 0 : index
    %c0_14 = arith.constant 0 : index
    %23 = vector.load %arg5[%c0_13, %c0_14] : memref<32x128xbf16, #tpu.memory_space<vmem>>, vector<32x128xbf16>
    tpu.vector_store %arg5[%c0_13, %c0_14], %22 {strides = array<i32>} : memref<32x128xbf16, #tpu.memory_space<vmem>>, vector<32x128xbf16>,
    return
  }
  func.func @transform_0(%arg0: i32) -> (i32, i32) {
    %c0_i32 = arith.constant 0 : i32
    %c0_i32_0 = arith.constant 0 : i32
    return %arg0, %c0_i32 : i32, i32
  }
  func.func @transform_1(%arg0: i32) -> (i32, i32) {
    %c0_i32 = arith.constant 0 : i32
    %c0_i32_0 = arith.constant 0 : i32
    %c0_i32_1 = arith.constant 0 : i32
    return %c0_i32, %c0_i32_0 : i32, i32
  }
  func.func @transform_2(%arg0: i32) -> (i32, i32) {
    %c0_i32 = arith.constant 0 : i32
    %c0_i32_0 = arith.constant 0 : i32
    %c0_i32_1 = arith.constant 0 : i32
    return %c0_i32, %c0_i32_0 : i32, i32
  }
  func.func @transform_3(%arg0: i32) -> (i32, i32) {
    %c0_i32 = arith.constant 0 : i32
    %c0_i32_0 = arith.constant 0 : i32
    %c0_i32_1 = arith.constant 0 : i32
    return %c0_i32, %c0_i32_0 : i32, i32
  }
  func.func @transform_4(%arg0: i32) -> (i32, i32) {
    %c0_i32 = arith.constant 0 : i32
    %c0_i32_0 = arith.constant 0 : i32
    return %arg0, %c0_i32 : i32, i32
  }
  func.func @transform_5(%arg0: i32) -> (i32, i32, i32) {
    %c0_i32 = arith.constant 0 : i32
    %c0_i32_0 = arith.constant 0 : i32
    %c0_i32_1 = arith.constant 0 : i32
    return %arg0, %c0_i32, %c0_i32_0 : i32, i32, i32
  }
}

module attributes {stable_mosaic.version = 11 : i64} {
  func.func @_fused_conv_kernel(%arg0: i32, %arg1: memref<8x512xbf16, #tpu.memory_space<vmem>>, %arg2: memref<512x128xbf16, #tpu.memory_space<vmem>>, %arg3: memref<1x512xf32, #tpu.memory_space<vmem>>, %arg4: memref<1x512xf32, #tpu.memory_space<vmem>>, %arg5: memref<8x128xf32, #tpu.memory_space<vmem>>) attributes {dimension_semantics = [#tpu.dimension_semantics<parallel>], iteration_bounds = array<i64: 1>, scalar_prefetch = 0 : i64, scratch_operands = 0 : i64, tpu.core_type = #tpu.core_type<tc>, window_params = [{transform_indices = @transform_0, window_bounds = array<i64: 8, 512>}, {pipeline_mode = #tpu.pipeline_mode<synchronous>, transform_indices = @transform_1, window_bounds = array<i64: 512, 128>}, {pipeline_mode = #tpu.pipeline_mode<synchronous>, transform_indices = @transform_2, window_bounds = array<i64: 1, 512>}, {pipeline_mode = #tpu.pipeline_mode<synchronous>, transform_indices = @transform_3, window_bounds = array<i64: 1, 512>}, {transform_indices = @transform_4, window_bounds = array<i64: 8, 128>}]} {
    %c0 = arith.constant 0 : index
    %c0_0 = arith.constant 0 : index
    %0 = vector.load %arg1[%c0, %c0_0] : memref<8x512xbf16, #tpu.memory_space<vmem>>, vector<8x512xbf16>
    %1 = arith.extf %0 : vector<8x512xbf16> to vector<8x512xf32>
    %c0_1 = arith.constant 0 : index
    %c0_2 = arith.constant 0 : index
    %2 = vector.load %arg3[%c0_1, %c0_2] : memref<1x512xf32, #tpu.memory_space<vmem>>, vector<1x512xf32>
    %3 = vector.broadcast %2 : vector<1x512xf32> to vector<8x512xf32>
    %4 = arith.mulf %1, %3 : vector<8x512xf32>
    %c0_3 = arith.constant 0 : index
    %c0_4 = arith.constant 0 : index
    %5 = vector.load %arg4[%c0_3, %c0_4] : memref<1x512xf32, #tpu.memory_space<vmem>>, vector<1x512xf32>
    %6 = vector.broadcast %5 : vector<1x512xf32> to vector<8x512xf32>
    %7 = arith.addf %4, %6 : vector<8x512xf32>
    %cst = arith.constant 2.000000e-01 : f32
    %8 = vector.broadcast %cst : f32 to vector<8x512xf32>
    %9 = arith.mulf %7, %8 : vector<8x512xf32>
    %10 = arith.maximumf %7, %9 : vector<8x512xf32>
    %11 = arith.truncf %10 : vector<8x512xf32> to vector<8x512xbf16>
    %c0_5 = arith.constant 0 : index
    %c0_6 = arith.constant 0 : index
    %12 = vector.load %arg2[%c0_5, %c0_6] : memref<512x128xbf16, #tpu.memory_space<vmem>>, vector<512x128xbf16>
    %cst_7 = arith.constant dense<0.000000e+00> : vector<8x128xf32>
    %13 = tpu.matmul %11, %12, %cst_7 {dimension_numbers = #tpu.dot_dimension_numbers<[1], [0], [0], [1], [0, 0, 1, 1], [], []>} : vector<8x512xbf16>, vector<512x128xbf16>, vector<8x128xf32> -> vector<8x128xf32>
    %14 = arith.negf %13 : vector<8x128xf32>
    %15 = math.exp %14 : vector<8x128xf32>
    %cst_8 = arith.constant 1.000000e+00 : f32
    %16 = vector.broadcast %cst_8 : f32 to vector<8x128xf32>
    %17 = arith.addf %16, %15 : vector<8x128xf32>
    %18 = arith.divf %16, %17 : vector<8x128xf32>
    %c0_9 = arith.constant 0 : index
    %c0_10 = arith.constant 0 : index
    %19 = vector.load %arg5[%c0_9, %c0_10] : memref<8x128xf32, #tpu.memory_space<vmem>>, vector<8x128xf32>
    tpu.vector_store %arg5[%c0_9, %c0_10], %18 {strides = array<i32>} : memref<8x128xf32, #tpu.memory_space<vmem>>, vector<8x128xf32>,
    return
  }
  func.func @transform_0(%arg0: i32) -> (i32, i32) {
    %c0_i32 = arith.constant 0 : i32
    %c0_i32_0 = arith.constant 0 : i32
    return %arg0, %c0_i32 : i32, i32
  }
  func.func @transform_1(%arg0: i32) -> (i32, i32) {
    %c0_i32 = arith.constant 0 : i32
    %c0_i32_0 = arith.constant 0 : i32
    %c0_i32_1 = arith.constant 0 : i32
    return %c0_i32, %c0_i32_0 : i32, i32
  }
  func.func @transform_2(%arg0: i32) -> (i32, i32) {
    %c0_i32 = arith.constant 0 : i32
    %c0_i32_0 = arith.constant 0 : i32
    %c0_i32_1 = arith.constant 0 : i32
    return %c0_i32, %c0_i32_0 : i32, i32
  }
  func.func @transform_3(%arg0: i32) -> (i32, i32) {
    %c0_i32 = arith.constant 0 : i32
    %c0_i32_0 = arith.constant 0 : i32
    %c0_i32_1 = arith.constant 0 : i32
    return %c0_i32, %c0_i32_0 : i32, i32
  }
  func.func @transform_4(%arg0: i32) -> (i32, i32) {
    %c0_i32 = arith.constant 0 : i32
    %c0_i32_0 = arith.constant 0 : i32
    return %arg0, %c0_i32 : i32, i32
  }
}

</mosaic_0001>

<bundles_post_ra>
// kernel: discriminator_forward.5
= control target key start
LH: loop header
LB: loop body
LE: loop exit
PB: predicated region body
PF: predicated region fallthrough
CT: control target
= control target key end

     0   :  { %s5054_s1 = inlined_call_operand.vmem [shape: bf16[128,128], index: 1, kind: input, shape index: {}]   ;;  %s5055_s0 = inlined_call_operand.vmem [shape: bf16[2048,128], index: 0, kind: input, shape index: {}]   ;;  %s5056_s2 = inlined_call_operand.vmem [shape: bf16[2048,128], index: 2, kind: output, shape index: {}]  }
   0x1   :  { %v3455_v0 = vld [vmem:[%s5054_s1 + $0x38] sm:$0xff]  ;;  %v3454_v1 = vld [vmem:[%s5054_s1 + $0x30] sm:$0xff]  ;;  %v3453_v2 = vld [vmem:[%s5054_s1 + $0x28] sm:$0xff] }
   0x2   :  { %1099 = vmatpush.bf16.msra.mxu0 %v3455_v0  ;;  %4223 = vmatpush.bf16.msra.mxu1 %v3455_v0  ;;  %v3452_v3 = vld [vmem:[%s5054_s1 + $0x20] sm:$0xff]  ;;  %v3451_v4 = vld [vmem:[%s5054_s1 + $0x18] sm:$0xff]  ;;  %v3450_v5 = vld [vmem:[%s5054_s1 + $0x10] sm:$0xff] }
   0x3   :  { %4224 = vmatpush.bf16.msra.mxu2 %v3455_v0  ;;  %4225 = vmatpush.bf16.msra.mxu3 %v3455_v0  ;;  %v3449_v6 = vld [vmem:[%s5054_s1 + $0x8] sm:$0xff]  ;;  %v3448_v7 = vld [vmem:[%s5054_s1] sm:$0xff]  ;;  %v3322_v16 = vld [vmem:[%s5055_s0 + $0x10] sm:$0xff] }
   0x4   :  { %v3320_v8 = vld [vmem:[%s5055_s0] sm:$0xff]  ;;  %v3321_v12 = vld [vmem:[%s5055_s0 + $0x8] sm:$0xff]  ;;  %v3354_v17 = vld [vmem:[%s5055_s0 + $0x110] sm:$0xff] }
   0x5   :  { %v3352_v9 = vld [vmem:[%s5055_s0 + $0x100] sm:$0xff]  ;;  %v3353_v13 = vld [vmem:[%s5055_s0 + $0x108] sm:$0xff]  ;;  %v3386_v18 = vld [vmem:[%s5055_s0 + $0x210] sm:$0xff] }
   0x6   :  { %1100 = vmatpush.bf16.msra.mxu0 %v3454_v1  ;;  %4226 = vmatpush.bf16.msra.mxu1 %v3454_v1  ;;  %v3384_v10 = vld [vmem:[%s5055_s0 + $0x200] sm:$0xff]  ;;  %v3385_v14 = vld [vmem:[%s5055_s0 + $0x208] sm:$0xff]  ;;  %v3418_v19 = vld [vmem:[%s5055_s0 + $0x310] sm:$0xff] }
   0x7   :  { %4227 = vmatpush.bf16.msra.mxu2 %v3454_v1  ;;  %4228 = vmatpush.bf16.msra.mxu3 %v3454_v1  ;;  %v3416_v11 = vld [vmem:[%s5055_s0 + $0x300] sm:$0xff]  ;;  %v3417_v15 = vld [vmem:[%s5055_s0 + $0x308] sm:$0xff]  ;;  %v3323_v20 = vld [vmem:[%s5055_s0 + $0x18] sm:$0xff] }
   0x8   :  { %v3355_v21 = vld [vmem:[%s5055_s0 + $0x118] sm:$0xff]  ;;  %v3324_v24 = vld [vmem:[%s5055_s0 + $0x20] sm:$0xff]  ;;  %v3325_v28 = vld [vmem:[%s5055_s0 + $0x28] sm:$0xff] }
   0x9   :  { %v3387_v22 = vld [vmem:[%s5055_s0 + $0x218] sm:$0xff]  ;;  %v3356_v25 = vld [vmem:[%s5055_s0 + $0x120] sm:$0xff]  ;;  %v3357_v29 = vld [vmem:[%s5055_s0 + $0x128] sm:$0xff] }
   0xa   :  { %1101 = vmatpush.bf16.msra.mxu0 %v3453_v2  ;;  %4229 = vmatpush.bf16.msra.mxu1 %v3453_v2  ;;  %v3419_v23 = vld [vmem:[%s5055_s0 + $0x318] sm:$0xff]  ;;  %v3388_v26 = vld [vmem:[%s5055_s0 + $0x220] sm:$0xff]  ;;  %v3389_v30 = vld [vmem:[%s5055_s0 + $0x228] sm:$0xff] }
   0xb   :  { %4230 = vmatpush.bf16.msra.mxu2 %v3453_v2  ;;  %4231 = vmatpush.bf16.msra.mxu3 %v3453_v2  ;;  %v3420_v27 = vld [vmem:[%s5055_s0 + $0x320] sm:$0xff]  ;;  %v3421_v31 = vld [vmem:[%s5055_s0 + $0x328] sm:$0xff]  ;;  %v3326_v32 = vld [vmem:[%s5055_s0 + $0x30] sm:$0xff] }
   0xc   :  { %v3358_v33 = vld [vmem:[%s5055_s0 + $0x130] sm:$0xff]  ;;  %v3327_v36 = vld [vmem:[%s5055_s0 + $0x38] sm:$0xff]  ;;  %v3328_v40 = vld [vmem:[%s5055_s0 + $0x40] sm:$0xff] }
   0xd   :  { %v3390_v34 = vld [vmem:[%s5055_s0 + $0x230] sm:$0xff]  ;;  %v3359_v37 = vld [vmem:[%s5055_s0 + $0x138] sm:$0xff]  ;;  %v3360_v41 = vld [vmem:[%s5055_s0 + $0x140] sm:$0xff] }
   0xe   :  { %1102 = vmatpush.bf16.msra.mxu0 %v3452_v3  ;;  %4232 = vmatpush.bf16.msra.mxu1 %v3452_v3  ;;  %v3422_v35 = vld [vmem:[%s5055_s0 + $0x330] sm:$0xff]  ;;  %v3391_v38 = vld [vmem:[%s5055_s0 + $0x238] sm:$0xff]  ;;  %v3392_v44 = vld [vmem:[%s5055_s0 + $0x240] sm:$0xff] }
   0xf   :  { %4233 = vmatpush.bf16.msra.mxu2 %v3452_v3  ;;  %4234 = vmatpush.bf16.msra.mxu3 %v3452_v3  ;;  %v3423_v39 = vld [vmem:[%s5055_s0 + $0x338] sm:$0xff]  ;;  %v3424_v45 = vld [vmem:[%s5055_s0 + $0x340] sm:$0xff]  ;;  %v3329_v0 = vld [vmem:[%s5055_s0 + $0x48] sm:$0xff] }
  0x10   :  { %v3361_v1 = vld [vmem:[%s5055_s0 + $0x148] sm:$0xff] }
  0x11   :  { %v3393_v2 = vld [vmem:[%s5055_s0 + $0x248] sm:$0xff] }
  0x12   :  { %1103 = vmatpush.bf16.msra.mxu0 %v3451_v4  ;;  %4235 = vmatpush.bf16.msra.mxu1 %v3451_v4 }
  0x13   :  { %4236 = vmatpush.bf16.msra.mxu2 %v3451_v4  ;;  %4237 = vmatpush.bf16.msra.mxu3 %v3451_v4 }
  0x16   :  { %1104 = vmatpush.bf16.msra.mxu0 %v3450_v5  ;;  %4238 = vmatpush.bf16.msra.mxu1 %v3450_v5 }
  0x17   :  { %4239 = vmatpush.bf16.msra.mxu2 %v3450_v5  ;;  %4240 = vmatpush.bf16.msra.mxu3 %v3450_v5 }
  0x1a   :  { %1105 = vmatpush.bf16.msra.mxu0 %v3449_v6  ;;  %4241 = vmatpush.bf16.msra.mxu1 %v3449_v6 }
  0x1b   :  { %4242 = vmatpush.bf16.msra.mxu2 %v3449_v6  ;;  %4243 = vmatpush.bf16.msra.mxu3 %v3449_v6 }
  0x1e   :  { %1106 = vmatpush.bf16.msra.mxu0 %v3448_v7  ;;  %4244 = vmatpush.bf16.msra.mxu1 %v3448_v7 }
  0x1f   :  { %4245 = vmatpush.bf16.msra.mxu2 %v3448_v7  ;;  %4246 = vmatpush.bf16.msra.mxu3 %v3448_v7  ;;  %v3425_v7 = vld [vmem:[%s5055_s0 + $0x348] sm:$0xff] }
  0x21   :  { %1107 = vmatmul.bf16.vlgmr.msra.gmra.mxu0 %v3320_v8  ;;  %1267 = vmatmul.bf16.vlgmr.msra.gmra.mxu1 %v3352_v9 }
  0x22   :  { %1427 = vmatmul.bf16.vlgmr.msra.gmra.mxu2 %v3384_v10  ;;  %1587 = vmatmul.bf16.vlgmr.msra.gmra.mxu3 %v3416_v11 }
  0x31   :  { %1112 = vmatmul.bf16.gmra.mxu0 %v3321_v12  ;;  %1272 = vmatmul.bf16.gmra.mxu1 %v3353_v13 }
  0x32   :  { %1432 = vmatmul.bf16.gmra.mxu2 %v3385_v14  ;;  %1592 = vmatmul.bf16.gmra.mxu3 %v3417_v15 }
  0x41   :  { %1117 = vmatmul.bf16.gmra.mxu0 %v3322_v16  ;;  %1277 = vmatmul.bf16.gmra.mxu1 %v3354_v17 }
  0x42   :  { %1437 = vmatmul.bf16.gmra.mxu2 %v3386_v18  ;;  %1597 = vmatmul.bf16.gmra.mxu3 %v3418_v19 }
  0x51   :  { %1122 = vmatmul.bf16.gmra.mxu0 %v3323_v20  ;;  %1282 = vmatmul.bf16.gmra.mxu1 %v3355_v21 }
  0x52   :  { %1442 = vmatmul.bf16.gmra.mxu2 %v3387_v22  ;;  %1602 = vmatmul.bf16.gmra.mxu3 %v3419_v23 }
  0x61   :  { %1127 = vmatmul.bf16.gmra.mxu0 %v3324_v24  ;;  %1287 = vmatmul.bf16.gmra.mxu1 %v3356_v25 }
  0x62   :  { %1447 = vmatmul.bf16.gmra.mxu2 %v3388_v26  ;;  %1607 = vmatmul.bf16.gmra.mxu3 %v3420_v27 }
  0x71   :  { %1132 = vmatmul.bf16.gmra.mxu0 %v3325_v28  ;;  %1292 = vmatmul.bf16.gmra.mxu1 %v3357_v29 }
  0x72   :  { %1452 = vmatmul.bf16.gmra.mxu2 %v3389_v30  ;;  %1612 = vmatmul.bf16.gmra.mxu3 %v3421_v31 }
  0x81   :  { %1137 = vmatmul.bf16.gmra.mxu0 %v3326_v32  ;;  %1297 = vmatmul.bf16.gmra.mxu1 %v3358_v33  ;;  %v3330_v32 = vld [vmem:[%s5055_s0 + $0x50] sm:$0xff] }
  0x82   :  { %1457 = vmatmul.bf16.gmra.mxu2 %v3390_v34  ;;  %1617 = vmatmul.bf16.gmra.mxu3 %v3422_v35  ;;  %v3362_v33 = vld [vmem:[%s5055_s0 + $0x150] sm:$0xff] }
  0x83   :  { %v3394_v34 = vld [vmem:[%s5055_s0 + $0x250] sm:$0xff] }
  0x91   :  { %1142 = vmatmul.bf16.gmra.mxu0 %v3327_v36  ;;  %1302 = vmatmul.bf16.gmra.mxu1 %v3359_v37 }
  0x92   :  { %1462 = vmatmul.bf16.gmra.mxu2 %v3391_v38  ;;  %1622 = vmatmul.bf16.gmra.mxu3 %v3423_v39  ;;  %v3426_v39 = vld [vmem:[%s5055_s0 + $0x350] sm:$0xff] }
  0x9e   :  { %v1108_v42 = vpop.f32.mrf.mxu0  ;;  %v1268_v43 = vpop.f32.mrf.mxu1 }
  0x9f   :  { %v1748_v46 = vmul.f32 0.2, %v1108_v42  ;;  %v1812_v47 = vmul.f32 0.2, %v1268_v43 }
  0xa1   :  { %1147 = vmatmul.bf16.gmra.mxu0 %v3328_v40  ;;  %1307 = vmatmul.bf16.gmra.mxu1 %v3360_v41  ;;  %v2004_v54 = vmax.f32 %v1108_v42, %v1748_v46  ;;  %v2068_v55 = vmax.f32 %v1268_v43, %v1812_v47 }
  0xa2   :  { %1467 = vmatmul.bf16.gmra.mxu2 %v3392_v44  ;;  %1627 = vmatmul.bf16.gmra.mxu3 %v3424_v45 }
  0xa5   :  { %v1428_v48 = vpop.f32.mrf.mxu2  ;;  %v1588_v49 = vpop.f32.mrf.mxu3 }
  0xa6   :  { %v1110_v50 = vpop.f32.mrf.mxu0  ;;  %v1270_v51 = vpop.f32.mrf.mxu1  ;;  %v1876_v60 = vmul.f32 0.2, %v1428_v48  ;;  %v1940_v61 = vmul.f32 0.2, %v1588_v49 }
  0xa7   :  { %v1749_v52 = vmul.f32 0.2, %v1110_v50  ;;  %v1813_v53 = vmul.f32 0.2, %v1270_v51 }
  0xa8   :  { %v2132_v8 = vmax.f32 %v1428_v48, %v1876_v60  ;;  %v2196_v9 = vmax.f32 %v1588_v49, %v1940_v61 }
  0xa9   :  { %v2005_v56 = vmax.f32 %v1110_v50, %v1749_v52  ;;  %v2069_v57 = vmax.f32 %v1270_v51, %v1813_v53 }
  0xab   :  { %v3459_v58 = vpack.c.bf16 %v2005_v56, %v2004_v54  ;;  %v3619_v59 = vpack.c.bf16 %v2069_v57, %v2068_v55 }
  0xad   :  { %3460 = vst [vmem:[%s5056_s2] sm:$0xff] %v3459_v58   ;;  %v1430_v62 = vpop.f32.mrf.mxu2  ;;  %v1590_v63 = vpop.f32.mrf.mxu3 }
  0xae   :  { %4127 = vst [vmem:[%s5056_s2 + $0x100] sm:$0xff] %v3619_v59   ;;  %v1877_v3 = vmul.f32 0.2, %v1430_v62  ;;  %v1941_v4 = vmul.f32 0.2, %v1590_v63  ;;  %v1113_v5 = vpop.f32.mrf.mxu0  ;;  %v1273_v6 = vpop.f32.mrf.mxu1 }
  0xaf   :  { %v1750_v14 = vmul.f32 0.2, %v1113_v5  ;;  %v1814_v15 = vmul.f32 0.2, %v1273_v6 }
  0xb0   :  { %v2133_v10 = vmax.f32 %v1430_v62, %v1877_v3  ;;  %v2197_v11 = vmax.f32 %v1590_v63, %v1941_v4 }
  0xb1   :  { %1152 = vmatmul.bf16.gmra.mxu0 %v3329_v0  ;;  %1312 = vmatmul.bf16.gmra.mxu1 %v3361_v1  ;;  %v2006_v22 = vmax.f32 %v1113_v5, %v1750_v14  ;;  %v2070_v23 = vmax.f32 %v1273_v6, %v1814_v15  ;;  %v3331_v0 = vld [vmem:[%s5055_s0 + $0x58] sm:$0xff] }
  0xb2   :  { %v3779_v12 = vpack.c.bf16 %v2133_v10, %v2132_v8  ;;  %v3939_v13 = vpack.c.bf16 %v2197_v11, %v2196_v9  ;;  %1472 = vmatmul.bf16.gmra.mxu2 %v3393_v2  ;;  %1632 = vmatmul.bf16.gmra.mxu3 %v3425_v7  ;;  %v3363_v1 = vld [vmem:[%s5055_s0 + $0x158] sm:$0xff] }
  0xb3   :  { %v3395_v2 = vld [vmem:[%s5055_s0 + $0x258] sm:$0xff] }
  0xb4   :  { %4159 = vst [vmem:[%s5056_s2 + $0x200] sm:$0xff] %v3779_v12   ;;  %v3427_v7 = vld [vmem:[%s5055_s0 + $0x358] sm:$0xff] }
  0xb5   :  { %4191 = vst [vmem:[%s5056_s2 + $0x300] sm:$0xff] %v3939_v13   ;;  %v1433_v16 = vpop.f32.mrf.mxu2  ;;  %v1593_v17 = vpop.f32.mrf.mxu3 }
  0xb6   :  { %v1115_v18 = vpop.f32.mrf.mxu0  ;;  %v1275_v19 = vpop.f32.mrf.mxu1  ;;  %v1878_v28 = vmul.f32 0.2, %v1433_v16  ;;  %v1942_v29 = vmul.f32 0.2, %v1593_v17 }
  0xb7   :  { %v1751_v20 = vmul.f32 0.2, %v1115_v18  ;;  %v1815_v21 = vmul.f32 0.2, %v1275_v19 }
  0xb8   :  { %v2134_v40 = vmax.f32 %v1433_v16, %v1878_v28  ;;  %v2198_v41 = vmax.f32 %v1593_v17, %v1942_v29 }
  0xb9   :  { %v2007_v24 = vmax.f32 %v1115_v18, %v1751_v20  ;;  %v2071_v25 = vmax.f32 %v1275_v19, %v1815_v21 }
  0xbb   :  { %v3464_v26 = vpack.c.bf16 %v2007_v24, %v2006_v22  ;;  %v3624_v27 = vpack.c.bf16 %v2071_v25, %v2070_v23 }
  0xbd   :  { %4096 = vst [vmem:[%s5056_s2 + $0x8] sm:$0xff] %v3464_v26   ;;  %v1435_v30 = vpop.f32.mrf.mxu2  ;;  %v1595_v31 = vpop.f32.mrf.mxu3 }
  0xbe   :  { %4128 = vst [vmem:[%s5056_s2 + $0x108] sm:$0xff] %v3624_v27   ;;  %v1879_v35 = vmul.f32 0.2, %v1435_v30  ;;  %v1943_v36 = vmul.f32 0.2, %v1595_v31  ;;  %v1118_v37 = vpop.f32.mrf.mxu0  ;;  %v1278_v38 = vpop.f32.mrf.mxu1 }
  0xbf   :  { %v1752_v46 = vmul.f32 0.2, %v1118_v37  ;;  %v1816_v47 = vmul.f32 0.2, %v1278_v38 }
  0xc0   :  { %v2135_v42 = vmax.f32 %v1435_v30, %v1879_v35  ;;  %v2199_v43 = vmax.f32 %v1595_v31, %v1943_v36 }
  0xc1   :  { %1157 = vmatmul.bf16.gmra.mxu0 %v3330_v32  ;;  %1317 = vmatmul.bf16.gmra.mxu1 %v3362_v33  ;;  %v2008_v54 = vmax.f32 %v1118_v37, %v1752_v46  ;;  %v2072_v55 = vmax.f32 %v1278_v38, %v1816_v47  ;;  %v3332_v32 = vld [vmem:[%s5055_s0 + $0x60] sm:$0xff] }
  0xc2   :  { %v3784_v44 = vpack.c.bf16 %v2135_v42, %v2134_v40  ;;  %v3944_v45 = vpack.c.bf16 %v2199_v43, %v2198_v41  ;;  %1477 = vmatmul.bf16.gmra.mxu2 %v3394_v34  ;;  %1637 = vmatmul.bf16.gmra.mxu3 %v3426_v39  ;;  %v3364_v33 = vld [vmem:[%s5055_s0 + $0x160] sm:$0xff] }
  0xc3   :  { %v3396_v34 = vld [vmem:[%s5055_s0 + $0x260] sm:$0xff] }
  0xc4   :  { %4160 = vst [vmem:[%s5056_s2 + $0x208] sm:$0xff] %v3784_v44   ;;  %v3428_v39 = vld [vmem:[%s5055_s0 + $0x360] sm:$0xff] }
  0xc5   :  { %4192 = vst [vmem:[%s5056_s2 + $0x308] sm:$0xff] %v3944_v45   ;;  %v1438_v48 = vpop.f32.mrf.mxu2  ;;  %v1598_v49 = vpop.f32.mrf.mxu3 }
  0xc6   :  { %v1120_v50 = vpop.f32.mrf.mxu0  ;;  %v1280_v51 = vpop.f32.mrf.mxu1  ;;  %v1880_v60 = vmul.f32 0.2, %v1438_v48  ;;  %v1944_v61 = vmul.f32 0.2, %v1598_v49 }
  0xc7   :  { %v1753_v52 = vmul.f32 0.2, %v1120_v50  ;;  %v1817_v53 = vmul.f32 0.2, %v1280_v51 }
  0xc8   :  { %v2136_v8 = vmax.f32 %v1438_v48, %v1880_v60  ;;  %v2200_v9 = vmax.f32 %v1598_v49, %v1944_v61 }
  0xc9   :  { %v2009_v56 = vmax.f32 %v1120_v50, %v1753_v52  ;;  %v2073_v57 = vmax.f32 %v1280_v51, %v1817_v53 }
  0xcb   :  { %v3469_v58 = vpack.c.bf16 %v2009_v56, %v2008_v54  ;;  %v3629_v59 = vpack.c.bf16 %v2073_v57, %v2072_v55 }
  0xcd   :  { %4097 = vst [vmem:[%s5056_s2 + $0x10] sm:$0xff] %v3469_v58   ;;  %v1440_v62 = vpop.f32.mrf.mxu2  ;;  %v1600_v63 = vpop.f32.mrf.mxu3 }
  0xce   :  { %4129 = vst [vmem:[%s5056_s2 + $0x110] sm:$0xff] %v3629_v59   ;;  %v1881_v3 = vmul.f32 0.2, %v1440_v62  ;;  %v1945_v4 = vmul.f32 0.2, %v1600_v63  ;;  %v1123_v5 = vpop.f32.mrf.mxu0  ;;  %v1283_v6 = vpop.f32.mrf.mxu1 }
  0xcf   :  { %v1754_v14 = vmul.f32 0.2, %v1123_v5  ;;  %v1818_v15 = vmul.f32 0.2, %v1283_v6 }
  0xd0   :  { %v2137_v10 = vmax.f32 %v1440_v62, %v1881_v3  ;;  %v2201_v11 = vmax.f32 %v1600_v63, %v1945_v4 }
  0xd1   :  { %1162 = vmatmul.bf16.gmra.mxu0 %v3331_v0  ;;  %1322 = vmatmul.bf16.gmra.mxu1 %v3363_v1  ;;  %v2010_v22 = vmax.f32 %v1123_v5, %v1754_v14  ;;  %v2074_v23 = vmax.f32 %v1283_v6, %v1818_v15  ;;  %v3333_v0 = vld [vmem:[%s5055_s0 + $0x68] sm:$0xff] }
  0xd2   :  { %v3789_v12 = vpack.c.bf16 %v2137_v10, %v2136_v8  ;;  %v3949_v13 = vpack.c.bf16 %v2201_v11, %v2200_v9  ;;  %1482 = vmatmul.bf16.gmra.mxu2 %v3395_v2  ;;  %1642 = vmatmul.bf16.gmra.mxu3 %v3427_v7  ;;  %v3365_v1 = vld [vmem:[%s5055_s0 + $0x168] sm:$0xff] }
  0xd3   :  { %v3397_v2 = vld [vmem:[%s5055_s0 + $0x268] sm:$0xff] }
  0xd4   :  { %4161 = vst [vmem:[%s5056_s2 + $0x210] sm:$0xff] %v3789_v12   ;;  %v3429_v7 = vld [vmem:[%s5055_s0 + $0x368] sm:$0xff] }
  0xd5   :  { %4193 = vst [vmem:[%s5056_s2 + $0x310] sm:$0xff] %v3949_v13   ;;  %v1443_v16 = vpop.f32.mrf.mxu2  ;;  %v1603_v17 = vpop.f32.mrf.mxu3 }
  0xd6   :  { %v1125_v18 = vpop.f32.mrf.mxu0  ;;  %v1285_v19 = vpop.f32.mrf.mxu1  ;;  %v1882_v28 = vmul.f32 0.2, %v1443_v16  ;;  %v1946_v29 = vmul.f32 0.2, %v1603_v17 }
  0xd7   :  { %v1755_v20 = vmul.f32 0.2, %v1125_v18  ;;  %v1819_v21 = vmul.f32 0.2, %v1285_v19 }
  0xd8   :  { %v2138_v40 = vmax.f32 %v1443_v16, %v1882_v28  ;;  %v2202_v41 = vmax.f32 %v1603_v17, %v1946_v29 }
  0xd9   :  { %v2011_v24 = vmax.f32 %v1125_v18, %v1755_v20  ;;  %v2075_v25 = vmax.f32 %v1285_v19, %v1819_v21 }
  0xdb   :  { %v3474_v26 = vpack.c.bf16 %v2011_v24, %v2010_v22  ;;  %v3634_v27 = vpack.c.bf16 %v2075_v25, %v2074_v23 }
  0xdd   :  { %4098 = vst [vmem:[%s5056_s2 + $0x18] sm:$0xff] %v3474_v26   ;;  %v1445_v30 = vpop.f32.mrf.mxu2  ;;  %v1605_v31 = vpop.f32.mrf.mxu3 }
  0xde   :  { %4130 = vst [vmem:[%s5056_s2 + $0x118] sm:$0xff] %v3634_v27   ;;  %v1883_v35 = vmul.f32 0.2, %v1445_v30  ;;  %v1947_v36 = vmul.f32 0.2, %v1605_v31  ;;  %v1128_v37 = vpop.f32.mrf.mxu0  ;;  %v1288_v38 = vpop.f32.mrf.mxu1 }
  0xdf   :  { %v1756_v46 = vmul.f32 0.2, %v1128_v37  ;;  %v1820_v47 = vmul.f32 0.2, %v1288_v38 }
  0xe0   :  { %v2139_v42 = vmax.f32 %v1445_v30, %v1883_v35  ;;  %v2203_v43 = vmax.f32 %v1605_v31, %v1947_v36 }
  0xe1   :  { %1167 = vmatmul.bf16.gmra.mxu0 %v3332_v32  ;;  %1327 = vmatmul.bf16.gmra.mxu1 %v3364_v33  ;;  %v2012_v54 = vmax.f32 %v1128_v37, %v1756_v46  ;;  %v2076_v55 = vmax.f32 %v1288_v38, %v1820_v47  ;;  %v3334_v32 = vld [vmem:[%s5055_s0 + $0x70] sm:$0xff] }
  0xe2   :  { %v3794_v44 = vpack.c.bf16 %v2139_v42, %v2138_v40  ;;  %v3954_v45 = vpack.c.bf16 %v2203_v43, %v2202_v41  ;;  %1487 = vmatmul.bf16.gmra.mxu2 %v3396_v34  ;;  %1647 = vmatmul.bf16.gmra.mxu3 %v3428_v39  ;;  %v3366_v33 = vld [vmem:[%s5055_s0 + $0x170] sm:$0xff] }
  0xe3   :  { %v3398_v34 = vld [vmem:[%s5055_s0 + $0x270] sm:$0xff] }
  0xe4   :  { %4162 = vst [vmem:[%s5056_s2 + $0x218] sm:$0xff] %v3794_v44   ;;  %v3430_v39 = vld [vmem:[%s5055_s0 + $0x370] sm:$0xff] }
  0xe5   :  { %4194 = vst [vmem:[%s5056_s2 + $0x318] sm:$0xff] %v3954_v45   ;;  %v1448_v48 = vpop.f32.mrf.mxu2  ;;  %v1608_v49 = vpop.f32.mrf.mxu3 }
  0xe6   :  { %v1130_v50 = vpop.f32.mrf.mxu0  ;;  %v1290_v51 = vpop.f32.mrf.mxu1  ;;  %v1884_v60 = vmul.f32 0.2, %v1448_v48  ;;  %v1948_v61 = vmul.f32 0.2, %v1608_v49 }
  0xe7   :  { %v1757_v52 = vmul.f32 0.2, %v1130_v50  ;;  %v1821_v53 = vmul.f32 0.2, %v1290_v51 }
  0xe8   :  { %v2140_v8 = vmax.f32 %v1448_v48, %v1884_v60  ;;  %v2204_v9 = vmax.f32 %v1608_v49, %v1948_v61 }
  0xe9   :  { %v2013_v56 = vmax.f32 %v1130_v50, %v1757_v52  ;;  %v2077_v57 = vmax.f32 %v1290_v51, %v1821_v53 }
  0xeb   :  { %v3479_v58 = vpack.c.bf16 %v2013_v56, %v2012_v54  ;;  %v3639_v59 = vpack.c.bf16 %v2077_v57, %v2076_v55 }
  0xed   :  { %4099 = vst [vmem:[%s5056_s2 + $0x20] sm:$0xff] %v3479_v58   ;;  %v1450_v62 = vpop.f32.mrf.mxu2  ;;  %v1610_v63 = vpop.f32.mrf.mxu3 }
  0xee   :  { %4131 = vst [vmem:[%s5056_s2 + $0x120] sm:$0xff] %v3639_v59   ;;  %v1885_v3 = vmul.f32 0.2, %v1450_v62  ;;  %v1949_v4 = vmul.f32 0.2, %v1610_v63  ;;  %v1133_v5 = vpop.f32.mrf.mxu0  ;;  %v1293_v6 = vpop.f32.mrf.mxu1 }
  0xef   :  { %v1758_v14 = vmul.f32 0.2, %v1133_v5  ;;  %v1822_v15 = vmul.f32 0.2, %v1293_v6 }
  0xf0   :  { %v2141_v10 = vmax.f32 %v1450_v62, %v1885_v3  ;;  %v2205_v11 = vmax.f32 %v1610_v63, %v1949_v4 }
  0xf1   :  { %1172 = vmatmul.bf16.gmra.mxu0 %v3333_v0  ;;  %1332 = vmatmul.bf16.gmra.mxu1 %v3365_v1  ;;  %v2014_v22 = vmax.f32 %v1133_v5, %v1758_v14  ;;  %v2078_v23 = vmax.f32 %v1293_v6, %v1822_v15  ;;  %v3335_v0 = vld [vmem:[%s5055_s0 + $0x78] sm:$0xff] }
  0xf2   :  { %v3799_v12 = vpack.c.bf16 %v2141_v10, %v2140_v8  ;;  %v3959_v13 = vpack.c.bf16 %v2205_v11, %v2204_v9  ;;  %1492 = vmatmul.bf16.gmra.mxu2 %v3397_v2  ;;  %1652 = vmatmul.bf16.gmra.mxu3 %v3429_v7  ;;  %v3367_v1 = vld [vmem:[%s5055_s0 + $0x178] sm:$0xff] }
  0xf3   :  { %v3399_v2 = vld [vmem:[%s5055_s0 + $0x278] sm:$0xff] }
  0xf4   :  { %4163 = vst [vmem:[%s5056_s2 + $0x220] sm:$0xff] %v3799_v12   ;;  %v3431_v7 = vld [vmem:[%s5055_s0 + $0x378] sm:$0xff] }
  0xf5   :  { %4195 = vst [vmem:[%s5056_s2 + $0x320] sm:$0xff] %v3959_v13   ;;  %v1453_v16 = vpop.f32.mrf.mxu2  ;;  %v1613_v17 = vpop.f32.mrf.mxu3 }
  0xf6   :  { %v1135_v18 = vpop.f32.mrf.mxu0  ;;  %v1295_v19 = vpop.f32.mrf.mxu1  ;;  %v1886_v28 = vmul.f32 0.2, %v1453_v16  ;;  %v1950_v29 = vmul.f32 0.2, %v1613_v17 }
  0xf7   :  { %v1759_v20 = vmul.f32 0.2, %v1135_v18  ;;  %v1823_v21 = vmul.f32 0.2, %v1295_v19 }
  0xf8   :  { %v2142_v40 = vmax.f32 %v1453_v16, %v1886_v28  ;;  %v2206_v41 = vmax.f32 %v1613_v17, %v1950_v29 }
  0xf9   :  { %v2015_v24 = vmax.f32 %v1135_v18, %v1759_v20  ;;  %v2079_v25 = vmax.f32 %v1295_v19, %v1823_v21 }
  0xfb   :  { %v3484_v26 = vpack.c.bf16 %v2015_v24, %v2014_v22  ;;  %v3644_v27 = vpack.c.bf16 %v2079_v25, %v2078_v23 }
  0xfd   :  { %4100 = vst [vmem:[%s5056_s2 + $0x28] sm:$0xff] %v3484_v26   ;;  %v1455_v30 = vpop.f32.mrf.mxu2  ;;  %v1615_v31 = vpop.f32.mrf.mxu3 }
  0xfe   :  { %4132 = vst [vmem:[%s5056_s2 + $0x128] sm:$0xff] %v3644_v27   ;;  %v1887_v35 = vmul.f32 0.2, %v1455_v30  ;;  %v1951_v36 = vmul.f32 0.2, %v1615_v31  ;;  %v1138_v37 = vpop.f32.mrf.mxu0  ;;  %v1298_v38 = vpop.f32.mrf.mxu1 }
  0xff   :  { %v1760_v46 = vmul.f32 0.2, %v1138_v37  ;;  %v1824_v47 = vmul.f32 0.2, %v1298_v38 }
 0x100   :  { %v2143_v42 = vmax.f32 %v1455_v30, %v1887_v35  ;;  %v2207_v43 = vmax.f32 %v1615_v31, %v1951_v36 }
 0x101   :  { %1177 = vmatmul.bf16.gmra.mxu0 %v3334_v32  ;;  %1337 = vmatmul.bf16.gmra.mxu1 %v3366_v33  ;;  %v2016_v54 = vmax.f32 %v1138_v37, %v1760_v46  ;;  %v2080_v55 = vmax.f32 %v1298_v38, %v1824_v47  ;;  %v3336_v32 = vld [vmem:[%s5055_s0 + $0x80] sm:$0xff] }
 0x102   :  { %v3804_v44 = vpack.c.bf16 %v2143_v42, %v2142_v40  ;;  %v3964_v45 = vpack.c.bf16 %v2207_v43, %v2206_v41  ;;  %1497 = vmatmul.bf16.gmra.mxu2 %v3398_v34  ;;  %1657 = vmatmul.bf16.gmra.mxu3 %v3430_v39  ;;  %v3368_v33 = vld [vmem:[%s5055_s0 + $0x180] sm:$0xff] }
 0x103   :  { %v3400_v34 = vld [vmem:[%s5055_s0 + $0x280] sm:$0xff] }
 0x104   :  { %4164 = vst [vmem:[%s5056_s2 + $0x228] sm:$0xff] %v3804_v44   ;;  %v3432_v39 = vld [vmem:[%s5055_s0 + $0x380] sm:$0xff] }
 0x105   :  { %4196 = vst [vmem:[%s5056_s2 + $0x328] sm:$0xff] %v3964_v45   ;;  %v1458_v48 = vpop.f32.mrf.mxu2  ;;  %v1618_v49 = vpop.f32.mrf.mxu3 }
 0x106   :  { %v1140_v50 = vpop.f32.mrf.mxu0  ;;  %v1300_v51 = vpop.f32.mrf.mxu1  ;;  %v1888_v60 = vmul.f32 0.2, %v1458_v48  ;;  %v1952_v61 = vmul.f32 0.2, %v1618_v49 }
 0x107   :  { %v1761_v52 = vmul.f32 0.2, %v1140_v50  ;;  %v1825_v53 = vmul.f32 0.2, %v1300_v51 }
 0x108   :  { %v2144_v8 = vmax.f32 %v1458_v48, %v1888_v60  ;;  %v2208_v9 = vmax.f32 %v1618_v49, %v1952_v61 }
 0x109   :  { %v2017_v56 = vmax.f32 %v1140_v50, %v1761_v52  ;;  %v2081_v57 = vmax.f32 %v1300_v51, %v1825_v53 }
 0x10b   :  { %v3489_v58 = vpack.c.bf16 %v2017_v56, %v2016_v54  ;;  %v3649_v59 = vpack.c.bf16 %v2081_v57, %v2080_v55 }
 0x10d   :  { %4101 = vst [vmem:[%s5056_s2 + $0x30] sm:$0xff] %v3489_v58   ;;  %v1460_v62 = vpop.f32.mrf.mxu2  ;;  %v1620_v63 = vpop.f32.mrf.mxu3 }
 0x10e   :  { %4133 = vst [vmem:[%s5056_s2 + $0x130] sm:$0xff] %v3649_v59   ;;  %v1889_v3 = vmul.f32 0.2, %v1460_v62  ;;  %v1953_v4 = vmul.f32 0.2, %v1620_v63  ;;  %v1143_v5 = vpop.f32.mrf.mxu0  ;;  %v1303_v6 = vpop.f32.mrf.mxu1 }
 0x10f   :  { %v1762_v14 = vmul.f32 0.2, %v1143_v5  ;;  %v1826_v15 = vmul.f32 0.2, %v1303_v6 }
 0x110   :  { %v2145_v10 = vmax.f32 %v1460_v62, %v1889_v3  ;;  %v2209_v11 = vmax.f32 %v1620_v63, %v1953_v4 }
 0x111   :  { %1182 = vmatmul.bf16.gmra.mxu0 %v3335_v0  ;;  %1342 = vmatmul.bf16.gmra.mxu1 %v3367_v1  ;;  %v2018_v22 = vmax.f32 %v1143_v5, %v1762_v14  ;;  %v2082_v23 = vmax.f32 %v1303_v6, %v1826_v15  ;;  %v3337_v0 = vld [vmem:[%s5055_s0 + $0x88] sm:$0xff] }
 0x112   :  { %v3809_v12 = vpack.c.bf16 %v2145_v10, %v2144_v8  ;;  %v3969_v13 = vpack.c.bf16 %v2209_v11, %v2208_v9  ;;  %1502 = vmatmul.bf16.gmra.mxu2 %v3399_v2  ;;  %1662 = vmatmul.bf16.gmra.mxu3 %v3431_v7  ;;  %v3369_v1 = vld [vmem:[%s5055_s0 + $0x188] sm:$0xff] }
 0x113   :  { %v3401_v2 = vld [vmem:[%s5055_s0 + $0x288] sm:$0xff] }
 0x114   :  { %4165 = vst [vmem:[%s5056_s2 + $0x230] sm:$0xff] %v3809_v12   ;;  %v3433_v7 = vld [vmem:[%s5055_s0 + $0x388] sm:$0xff] }
 0x115   :  { %4197 = vst [vmem:[%s5056_s2 + $0x330] sm:$0xff] %v3969_v13   ;;  %v1463_v16 = vpop.f32.mrf.mxu2  ;;  %v1623_v17 = vpop.f32.mrf.mxu3 }
 0x116   :  { %v1145_v18 = vpop.f32.mrf.mxu0  ;;  %v1305_v19 = vpop.f32.mrf.mxu1  ;;  %v1890_v28 = vmul.f32 0.2, %v1463_v16  ;;  %v1954_v29 = vmul.f32 0.2, %v1623_v17 }
 0x117   :  { %v1763_v20 = vmul.f32 0.2, %v1145_v18  ;;  %v1827_v21 = vmul.f32 0.2, %v1305_v19 }
 0x118   :  { %v2146_v40 = vmax.f32 %v1463_v16, %v1890_v28  ;;  %v2210_v41 = vmax.f32 %v1623_v17, %v1954_v29 }
 0x119   :  { %v2019_v24 = vmax.f32 %v1145_v18, %v1763_v20  ;;  %v2083_v25 = vmax.f32 %v1305_v19, %v1827_v21 }
 0x11b   :  { %v3494_v26 = vpack.c.bf16 %v2019_v24, %v2018_v22  ;;  %v3654_v27 = vpack.c.bf16 %v2083_v25, %v2082_v23 }
 0x11d   :  { %4102 = vst [vmem:[%s5056_s2 + $0x38] sm:$0xff] %v3494_v26   ;;  %v1465_v30 = vpop.f32.mrf.mxu2  ;;  %v1625_v31 = vpop.f32.mrf.mxu3 }
 0x11e   :  { %4134 = vst [vmem:[%s5056_s2 + $0x138] sm:$0xff] %v3654_v27   ;;  %v1891_v35 = vmul.f32 0.2, %v1465_v30  ;;  %v1955_v36 = vmul.f32 0.2, %v1625_v31  ;;  %v1148_v37 = vpop.f32.mrf.mxu0  ;;  %v1308_v38 = vpop.f32.mrf.mxu1 }
 0x11f   :  { %v1764_v46 = vmul.f32 0.2, %v1148_v37  ;;  %v1828_v47 = vmul.f32 0.2, %v1308_v38 }
 0x120   :  { %v2147_v42 = vmax.f32 %v1465_v30, %v1891_v35  ;;  %v2211_v43 = vmax.f32 %v1625_v31, %v1955_v36 }
 0x121   :  { %1187 = vmatmul.bf16.gmra.mxu0 %v3336_v32  ;;  %1347 = vmatmul.bf16.gmra.mxu1 %v3368_v33  ;;  %v2020_v54 = vmax.f32 %v1148_v37, %v1764_v46  ;;  %v2084_v55 = vmax.f32 %v1308_v38, %v1828_v47  ;;  %v3338_v32 = vld [vmem:[%s5055_s0 + $0x90] sm:$0xff] }
 0x122   :  { %v3814_v44 = vpack.c.bf16 %v2147_v42, %v2146_v40  ;;  %v3974_v45 = vpack.c.bf16 %v2211_v43, %v2210_v41  ;;  %1507 = vmatmul.bf16.gmra.mxu2 %v3400_v34  ;;  %1667 = vmatmul.bf16.gmra.mxu3 %v3432_v39  ;;  %v3370_v33 = vld [vmem:[%s5055_s0 + $0x190] sm:$0xff] }
 0x123   :  { %v3402_v34 = vld [vmem:[%s5055_s0 + $0x290] sm:$0xff] }
 0x124   :  { %4166 = vst [vmem:[%s5056_s2 + $0x238] sm:$0xff] %v3814_v44   ;;  %v3434_v39 = vld [vmem:[%s5055_s0 + $0x390] sm:$0xff] }
 0x125   :  { %4198 = vst [vmem:[%s5056_s2 + $0x338] sm:$0xff] %v3974_v45   ;;  %v1468_v48 = vpop.f32.mrf.mxu2  ;;  %v1628_v49 = vpop.f32.mrf.mxu3 }
 0x126   :  { %v1150_v50 = vpop.f32.mrf.mxu0  ;;  %v1310_v51 = vpop.f32.mrf.mxu1  ;;  %v1892_v60 = vmul.f32 0.2, %v1468_v48  ;;  %v1956_v61 = vmul.f32 0.2, %v1628_v49 }
 0x127   :  { %v1765_v52 = vmul.f32 0.2, %v1150_v50  ;;  %v1829_v53 = vmul.f32 0.2, %v1310_v51 }
 0x128   :  { %v2148_v8 = vmax.f32 %v1468_v48, %v1892_v60  ;;  %v2212_v9 = vmax.f32 %v1628_v49, %v1956_v61 }
 0x129   :  { %v2021_v56 = vmax.f32 %v1150_v50, %v1765_v52  ;;  %v2085_v57 = vmax.f32 %v1310_v51, %v1829_v53 }
 0x12b   :  { %v3499_v58 = vpack.c.bf16 %v2021_v56, %v2020_v54  ;;  %v3659_v59 = vpack.c.bf16 %v2085_v57, %v2084_v55 }
 0x12d   :  { %4103 = vst [vmem:[%s5056_s2 + $0x40] sm:$0xff] %v3499_v58   ;;  %v1470_v62 = vpop.f32.mrf.mxu2  ;;  %v1630_v63 = vpop.f32.mrf.mxu3 }
 0x12e   :  { %4135 = vst [vmem:[%s5056_s2 + $0x140] sm:$0xff] %v3659_v59   ;;  %v1893_v3 = vmul.f32 0.2, %v1470_v62  ;;  %v1957_v4 = vmul.f32 0.2, %v1630_v63  ;;  %v1153_v5 = vpop.f32.mrf.mxu0  ;;  %v1313_v6 = vpop.f32.mrf.mxu1 }
 0x12f   :  { %v1766_v14 = vmul.f32 0.2, %v1153_v5  ;;  %v1830_v15 = vmul.f32 0.2, %v1313_v6 }
 0x130   :  { %v2149_v10 = vmax.f32 %v1470_v62, %v1893_v3  ;;  %v2213_v11 = vmax.f32 %v1630_v63, %v1957_v4 }
 0x131   :  { %1192 = vmatmul.bf16.gmra.mxu0 %v3337_v0  ;;  %1352 = vmatmul.bf16.gmra.mxu1 %v3369_v1  ;;  %v2022_v22 = vmax.f32 %v1153_v5, %v1766_v14  ;;  %v2086_v23 = vmax.f32 %v1313_v6, %v1830_v15  ;;  %v3339_v0 = vld [vmem:[%s5055_s0 + $0x98] sm:$0xff] }
 0x132   :  { %v3819_v12 = vpack.c.bf16 %v2149_v10, %v2148_v8  ;;  %v3979_v13 = vpack.c.bf16 %v2213_v11, %v2212_v9  ;;  %1512 = vmatmul.bf16.gmra.mxu2 %v3401_v2  ;;  %1672 = vmatmul.bf16.gmra.mxu3 %v3433_v7  ;;  %v3371_v1 = vld [vmem:[%s5055_s0 + $0x198] sm:$0xff] }
 0x133   :  { %v3403_v2 = vld [vmem:[%s5055_s0 + $0x298] sm:$0xff] }
 0x134   :  { %4167 = vst [vmem:[%s5056_s2 + $0x240] sm:$0xff] %v3819_v12   ;;  %v3435_v7 = vld [vmem:[%s5055_s0 + $0x398] sm:$0xff] }
 0x135   :  { %4199 = vst [vmem:[%s5056_s2 + $0x340] sm:$0xff] %v3979_v13   ;;  %v1473_v16 = vpop.f32.mrf.mxu2  ;;  %v1633_v17 = vpop.f32.mrf.mxu3 }
 0x136   :  { %v1155_v18 = vpop.f32.mrf.mxu0  ;;  %v1315_v19 = vpop.f32.mrf.mxu1  ;;  %v1894_v28 = vmul.f32 0.2, %v1473_v16  ;;  %v1958_v29 = vmul.f32 0.2, %v1633_v17 }
 0x137   :  { %v1767_v20 = vmul.f32 0.2, %v1155_v18  ;;  %v1831_v21 = vmul.f32 0.2, %v1315_v19 }
 0x138   :  { %v2150_v40 = vmax.f32 %v1473_v16, %v1894_v28  ;;  %v2214_v41 = vmax.f32 %v1633_v17, %v1958_v29 }
 0x139   :  { %v2023_v24 = vmax.f32 %v1155_v18, %v1767_v20  ;;  %v2087_v25 = vmax.f32 %v1315_v19, %v1831_v21 }
 0x13b   :  { %v3504_v26 = vpack.c.bf16 %v2023_v24, %v2022_v22  ;;  %v3664_v27 = vpack.c.bf16 %v2087_v25, %v2086_v23 }
 0x13d   :  { %4104 = vst [vmem:[%s5056_s2 + $0x48] sm:$0xff] %v3504_v26   ;;  %v1475_v30 = vpop.f32.mrf.mxu2  ;;  %v1635_v31 = vpop.f32.mrf.mxu3 }
 0x13e   :  { %4136 = vst [vmem:[%s5056_s2 + $0x148] sm:$0xff] %v3664_v27   ;;  %v1895_v35 = vmul.f32 0.2, %v1475_v30  ;;  %v1959_v36 = vmul.f32 0.2, %v1635_v31  ;;  %v1158_v37 = vpop.f32.mrf.mxu0  ;;  %v1318_v38 = vpop.f32.mrf.mxu1 }
 0x13f   :  { %v1768_v46 = vmul.f32 0.2, %v1158_v37  ;;  %v1832_v47 = vmul.f32 0.2, %v1318_v38 }
 0x140   :  { %v2151_v42 = vmax.f32 %v1475_v30, %v1895_v35  ;;  %v2215_v43 = vmax.f32 %v1635_v31, %v1959_v36 }
 0x141   :  { %1197 = vmatmul.bf16.gmra.mxu0 %v3338_v32  ;;  %1357 = vmatmul.bf16.gmra.mxu1 %v3370_v33  ;;  %v2024_v54 = vmax.f32 %v1158_v37, %v1768_v46  ;;  %v2088_v55 = vmax.f32 %v1318_v38, %v1832_v47  ;;  %v3340_v32 = vld [vmem:[%s5055_s0 + $0xa0] sm:$0xff] }
 0x142   :  { %v3824_v44 = vpack.c.bf16 %v2151_v42, %v2150_v40  ;;  %v3984_v45 = vpack.c.bf16 %v2215_v43, %v2214_v41  ;;  %1517 = vmatmul.bf16.gmra.mxu2 %v3402_v34  ;;  %1677 = vmatmul.bf16.gmra.mxu3 %v3434_v39  ;;  %v3372_v33 = vld [vmem:[%s5055_s0 + $0x1a0] sm:$0xff] }
 0x143   :  { %v3404_v34 = vld [vmem:[%s5055_s0 + $0x2a0] sm:$0xff] }
 0x144   :  { %4168 = vst [vmem:[%s5056_s2 + $0x248] sm:$0xff] %v3824_v44   ;;  %v3436_v39 = vld [vmem:[%s5055_s0 + $0x3a0] sm:$0xff] }
 0x145   :  { %4200 = vst [vmem:[%s5056_s2 + $0x348] sm:$0xff] %v3984_v45   ;;  %v1478_v48 = vpop.f32.mrf.mxu2  ;;  %v1638_v49 = vpop.f32.mrf.mxu3 }
 0x146   :  { %v1160_v50 = vpop.f32.mrf.mxu0  ;;  %v1320_v51 = vpop.f32.mrf.mxu1  ;;  %v1896_v60 = vmul.f32 0.2, %v1478_v48  ;;  %v1960_v61 = vmul.f32 0.2, %v1638_v49 }
 0x147   :  { %v1769_v52 = vmul.f32 0.2, %v1160_v50  ;;  %v1833_v53 = vmul.f32 0.2, %v1320_v51 }
 0x148   :  { %v2152_v8 = vmax.f32 %v1478_v48, %v1896_v60  ;;  %v2216_v9 = vmax.f32 %v1638_v49, %v1960_v61 }
 0x149   :  { %v2025_v56 = vmax.f32 %v1160_v50, %v1769_v52  ;;  %v2089_v57 = vmax.f32 %v1320_v51, %v1833_v53 }
 0x14b   :  { %v3509_v58 = vpack.c.bf16 %v2025_v56, %v2024_v54  ;;  %v3669_v59 = vpack.c.bf16 %v2089_v57, %v2088_v55 }
 0x14d   :  { %4105 = vst [vmem:[%s5056_s2 + $0x50] sm:$0xff] %v3509_v58   ;;  %v1480_v62 = vpop.f32.mrf.mxu2  ;;  %v1640_v63 = vpop.f32.mrf.mxu3 }
 0x14e   :  { %4137 = vst [vmem:[%s5056_s2 + $0x150] sm:$0xff] %v3669_v59   ;;  %v1897_v3 = vmul.f32 0.2, %v1480_v62  ;;  %v1961_v4 = vmul.f32 0.2, %v1640_v63  ;;  %v1163_v5 = vpop.f32.mrf.mxu0  ;;  %v1323_v6 = vpop.f32.mrf.mxu1 }
 0x14f   :  { %v1770_v14 = vmul.f32 0.2, %v1163_v5  ;;  %v1834_v15 = vmul.f32 0.2, %v1323_v6 }
 0x150   :  { %v2153_v10 = vmax.f32 %v1480_v62, %v1897_v3  ;;  %v2217_v11 = vmax.f32 %v1640_v63, %v1961_v4 }
 0x151   :  { %1202 = vmatmul.bf16.gmra.mxu0 %v3339_v0  ;;  %1362 = vmatmul.bf16.gmra.mxu1 %v3371_v1  ;;  %v2026_v22 = vmax.f32 %v1163_v5, %v1770_v14  ;;  %v2090_v23 = vmax.f32 %v1323_v6, %v1834_v15  ;;  %v3341_v0 = vld [vmem:[%s5055_s0 + $0xa8] sm:$0xff] }
 0x152   :  { %v3829_v12 = vpack.c.bf16 %v2153_v10, %v2152_v8  ;;  %v3989_v13 = vpack.c.bf16 %v2217_v11, %v2216_v9  ;;  %1522 = vmatmul.bf16.gmra.mxu2 %v3403_v2  ;;  %1682 = vmatmul.bf16.gmra.mxu3 %v3435_v7  ;;  %v3373_v1 = vld [vmem:[%s5055_s0 + $0x1a8] sm:$0xff] }
 0x153   :  { %v3405_v2 = vld [vmem:[%s5055_s0 + $0x2a8] sm:$0xff] }
 0x154   :  { %4169 = vst [vmem:[%s5056_s2 + $0x250] sm:$0xff] %v3829_v12   ;;  %v3437_v7 = vld [vmem:[%s5055_s0 + $0x3a8] sm:$0xff] }
 0x155   :  { %4201 = vst [vmem:[%s5056_s2 + $0x350] sm:$0xff] %v3989_v13   ;;  %v1483_v16 = vpop.f32.mrf.mxu2  ;;  %v1643_v17 = vpop.f32.mrf.mxu3 }
 0x156   :  { %v1165_v18 = vpop.f32.mrf.mxu0  ;;  %v1325_v19 = vpop.f32.mrf.mxu1  ;;  %v1898_v28 = vmul.f32 0.2, %v1483_v16  ;;  %v1962_v29 = vmul.f32 0.2, %v1643_v17 }
 0x157   :  { %v1771_v20 = vmul.f32 0.2, %v1165_v18  ;;  %v1835_v21 = vmul.f32 0.2, %v1325_v19 }
 0x158   :  { %v2154_v40 = vmax.f32 %v1483_v16, %v1898_v28  ;;  %v2218_v41 = vmax.f32 %v1643_v17, %v1962_v29 }
 0x159   :  { %v2027_v24 = vmax.f32 %v1165_v18, %v1771_v20  ;;  %v2091_v25 = vmax.f32 %v1325_v19, %v1835_v21 }
 0x15b   :  { %v3514_v26 = vpack.c.bf16 %v2027_v24, %v2026_v22  ;;  %v3674_v27 = vpack.c.bf16 %v2091_v25, %v2090_v23 }
 0x15d   :  { %4106 = vst [vmem:[%s5056_s2 + $0x58] sm:$0xff] %v3514_v26   ;;  %v1485_v30 = vpop.f32.mrf.mxu2  ;;  %v1645_v31 = vpop.f32.mrf.mxu3 }
 0x15e   :  { %4138 = vst [vmem:[%s5056_s2 + $0x158] sm:$0xff] %v3674_v27   ;;  %v1899_v35 = vmul.f32 0.2, %v1485_v30  ;;  %v1963_v36 = vmul.f32 0.2, %v1645_v31  ;;  %v1168_v37 = vpop.f32.mrf.mxu0  ;;  %v1328_v38 = vpop.f32.mrf.mxu1 }
 0x15f   :  { %v1772_v46 = vmul.f32 0.2, %v1168_v37  ;;  %v1836_v47 = vmul.f32 0.2, %v1328_v38 }
 0x160   :  { %v2155_v42 = vmax.f32 %v1485_v30, %v1899_v35  ;;  %v2219_v43 = vmax.f32 %v1645_v31, %v1963_v36 }
 0x161   :  { %1207 = vmatmul.bf16.gmra.mxu0 %v3340_v32  ;;  %1367 = vmatmul.bf16.gmra.mxu1 %v3372_v33  ;;  %v2028_v54 = vmax.f32 %v1168_v37, %v1772_v46  ;;  %v2092_v55 = vmax.f32 %v1328_v38, %v1836_v47  ;;  %v3342_v32 = vld [vmem:[%s5055_s0 + $0xb0] sm:$0xff] }
 0x162   :  { %v3834_v44 = vpack.c.bf16 %v2155_v42, %v2154_v40  ;;  %v3994_v45 = vpack.c.bf16 %v2219_v43, %v2218_v41  ;;  %1527 = vmatmul.bf16.gmra.mxu2 %v3404_v34  ;;  %1687 = vmatmul.bf16.gmra.mxu3 %v3436_v39  ;;  %v3374_v33 = vld [vmem:[%s5055_s0 + $0x1b0] sm:$0xff] }
 0x163   :  { %v3406_v34 = vld [vmem:[%s5055_s0 + $0x2b0] sm:$0xff] }
 0x164   :  { %4170 = vst [vmem:[%s5056_s2 + $0x258] sm:$0xff] %v3834_v44   ;;  %v3438_v39 = vld [vmem:[%s5055_s0 + $0x3b0] sm:$0xff] }
 0x165   :  { %4202 = vst [vmem:[%s5056_s2 + $0x358] sm:$0xff] %v3994_v45   ;;  %v1488_v48 = vpop.f32.mrf.mxu2  ;;  %v1648_v49 = vpop.f32.mrf.mxu3 }
 0x166   :  { %v1170_v50 = vpop.f32.mrf.mxu0  ;;  %v1330_v51 = vpop.f32.mrf.mxu1  ;;  %v1900_v60 = vmul.f32 0.2, %v1488_v48  ;;  %v1964_v61 = vmul.f32 0.2, %v1648_v49 }
 0x167   :  { %v1773_v52 = vmul.f32 0.2, %v1170_v50  ;;  %v1837_v53 = vmul.f32 0.2, %v1330_v51 }
 0x168   :  { %v2156_v8 = vmax.f32 %v1488_v48, %v1900_v60  ;;  %v2220_v9 = vmax.f32 %v1648_v49, %v1964_v61 }
 0x169   :  { %v2029_v56 = vmax.f32 %v1170_v50, %v1773_v52  ;;  %v2093_v57 = vmax.f32 %v1330_v51, %v1837_v53 }
 0x16b   :  { %v3519_v58 = vpack.c.bf16 %v2029_v56, %v2028_v54  ;;  %v3679_v59 = vpack.c.bf16 %v2093_v57, %v2092_v55 }
 0x16d   :  { %4107 = vst [vmem:[%s5056_s2 + $0x60] sm:$0xff] %v3519_v58   ;;  %v1490_v62 = vpop.f32.mrf.mxu2  ;;  %v1650_v63 = vpop.f32.mrf.mxu3 }
 0x16e   :  { %4139 = vst [vmem:[%s5056_s2 + $0x160] sm:$0xff] %v3679_v59   ;;  %v1901_v3 = vmul.f32 0.2, %v1490_v62  ;;  %v1965_v4 = vmul.f32 0.2, %v1650_v63  ;;  %v1173_v5 = vpop.f32.mrf.mxu0  ;;  %v1333_v6 = vpop.f32.mrf.mxu1 }
 0x16f   :  { %v1774_v14 = vmul.f32 0.2, %v1173_v5  ;;  %v1838_v15 = vmul.f32 0.2, %v1333_v6 }
 0x170   :  { %v2157_v10 = vmax.f32 %v1490_v62, %v1901_v3  ;;  %v2221_v11 = vmax.f32 %v1650_v63, %v1965_v4 }
 0x171   :  { %1212 = vmatmul.bf16.gmra.mxu0 %v3341_v0  ;;  %1372 = vmatmul.bf16.gmra.mxu1 %v3373_v1  ;;  %v2030_v22 = vmax.f32 %v1173_v5, %v1774_v14  ;;  %v2094_v23 = vmax.f32 %v1333_v6, %v1838_v15  ;;  %v3343_v0 = vld [vmem:[%s5055_s0 + $0xb8] sm:$0xff] }
 0x172   :  { %v3839_v12 = vpack.c.bf16 %v2157_v10, %v2156_v8  ;;  %v3999_v13 = vpack.c.bf16 %v2221_v11, %v2220_v9  ;;  %1532 = vmatmul.bf16.gmra.mxu2 %v3405_v2  ;;  %1692 = vmatmul.bf16.gmra.mxu3 %v3437_v7  ;;  %v3375_v1 = vld [vmem:[%s5055_s0 + $0x1b8] sm:$0xff] }
 0x173   :  { %v3407_v2 = vld [vmem:[%s5055_s0 + $0x2b8] sm:$0xff] }
 0x174   :  { %4171 = vst [vmem:[%s5056_s2 + $0x260] sm:$0xff] %v3839_v12   ;;  %v3439_v7 = vld [vmem:[%s5055_s0 + $0x3b8] sm:$0xff] }
 0x175   :  { %4203 = vst [vmem:[%s5056_s2 + $0x360] sm:$0xff] %v3999_v13   ;;  %v1493_v16 = vpop.f32.mrf.mxu2  ;;  %v1653_v17 = vpop.f32.mrf.mxu3 }
 0x176   :  { %v1175_v18 = vpop.f32.mrf.mxu0  ;;  %v1335_v19 = vpop.f32.mrf.mxu1  ;;  %v1902_v28 = vmul.f32 0.2, %v1493_v16  ;;  %v1966_v29 = vmul.f32 0.2, %v1653_v17 }
 0x177   :  { %v1775_v20 = vmul.f32 0.2, %v1175_v18  ;;  %v1839_v21 = vmul.f32 0.2, %v1335_v19 }
 0x178   :  { %v2158_v40 = vmax.f32 %v1493_v16, %v1902_v28  ;;  %v2222_v41 = vmax.f32 %v1653_v17, %v1966_v29 }
 0x179   :  { %v2031_v24 = vmax.f32 %v1175_v18, %v1775_v20  ;;  %v2095_v25 = vmax.f32 %v1335_v19, %v1839_v21 }
 0x17b   :  { %v3524_v26 = vpack.c.bf16 %v2031_v24, %v2030_v22  ;;  %v3684_v27 = vpack.c.bf16 %v2095_v25, %v2094_v23 }
 0x17d   :  { %4108 = vst [vmem:[%s5056_s2 + $0x68] sm:$0xff] %v3524_v26   ;;  %v1495_v30 = vpop.f32.mrf.mxu2  ;;  %v1655_v31 = vpop.f32.mrf.mxu3 }
 0x17e   :  { %4140 = vst [vmem:[%s5056_s2 + $0x168] sm:$0xff] %v3684_v27   ;;  %v1903_v35 = vmul.f32 0.2, %v1495_v30  ;;  %v1967_v36 = vmul.f32 0.2, %v1655_v31  ;;  %v1178_v37 = vpop.f32.mrf.mxu0  ;;  %v1338_v38 = vpop.f32.mrf.mxu1 }
 0x17f   :  { %v1776_v46 = vmul.f32 0.2, %v1178_v37  ;;  %v1840_v47 = vmul.f32 0.2, %v1338_v38 }
 0x180   :  { %v2159_v42 = vmax.f32 %v1495_v30, %v1903_v35  ;;  %v2223_v43 = vmax.f32 %v1655_v31, %v1967_v36 }
 0x181   :  { %1217 = vmatmul.bf16.gmra.mxu0 %v3342_v32  ;;  %1377 = vmatmul.bf16.gmra.mxu1 %v3374_v33  ;;  %v2032_v54 = vmax.f32 %v1178_v37, %v1776_v46  ;;  %v2096_v55 = vmax.f32 %v1338_v38, %v1840_v47  ;;  %v3344_v32 = vld [vmem:[%s5055_s0 + $0xc0] sm:$0xff] }
 0x182   :  { %v3844_v44 = vpack.c.bf16 %v2159_v42, %v2158_v40  ;;  %v4004_v45 = vpack.c.bf16 %v2223_v43, %v2222_v41  ;;  %1537 = vmatmul.bf16.gmra.mxu2 %v3406_v34  ;;  %1697 = vmatmul.bf16.gmra.mxu3 %v3438_v39  ;;  %v3376_v33 = vld [vmem:[%s5055_s0 + $0x1c0] sm:$0xff] }
 0x183   :  { %v3408_v34 = vld [vmem:[%s5055_s0 + $0x2c0] sm:$0xff] }
 0x184   :  { %4172 = vst [vmem:[%s5056_s2 + $0x268] sm:$0xff] %v3844_v44   ;;  %v3440_v39 = vld [vmem:[%s5055_s0 + $0x3c0] sm:$0xff] }
 0x185   :  { %4204 = vst [vmem:[%s5056_s2 + $0x368] sm:$0xff] %v4004_v45   ;;  %v1498_v48 = vpop.f32.mrf.mxu2  ;;  %v1658_v49 = vpop.f32.mrf.mxu3 }
 0x186   :  { %v1180_v50 = vpop.f32.mrf.mxu0  ;;  %v1340_v51 = vpop.f32.mrf.mxu1  ;;  %v1904_v60 = vmul.f32 0.2, %v1498_v48  ;;  %v1968_v61 = vmul.f32 0.2, %v1658_v49 }
 0x187   :  { %v1777_v52 = vmul.f32 0.2, %v1180_v50  ;;  %v1841_v53 = vmul.f32 0.2, %v1340_v51 }
 0x188   :  { %v2160_v8 = vmax.f32 %v1498_v48, %v1904_v60  ;;  %v2224_v9 = vmax.f32 %v1658_v49, %v1968_v61 }
 0x189   :  { %v2033_v56 = vmax.f32 %v1180_v50, %v1777_v52  ;;  %v2097_v57 = vmax.f32 %v1340_v51, %v1841_v53 }
 0x18b   :  { %v3529_v58 = vpack.c.bf16 %v2033_v56, %v2032_v54  ;;  %v3689_v59 = vpack.c.bf16 %v2097_v57, %v2096_v55 }
 0x18d   :  { %4109 = vst [vmem:[%s5056_s2 + $0x70] sm:$0xff] %v3529_v58   ;;  %v1500_v62 = vpop.f32.mrf.mxu2  ;;  %v1660_v63 = vpop.f32.mrf.mxu3 }
 0x18e   :  { %4141 = vst [vmem:[%s5056_s2 + $0x170] sm:$0xff] %v3689_v59   ;;  %v1905_v3 = vmul.f32 0.2, %v1500_v62  ;;  %v1969_v4 = vmul.f32 0.2, %v1660_v63  ;;  %v1183_v5 = vpop.f32.mrf.mxu0  ;;  %v1343_v6 = vpop.f32.mrf.mxu1 }
 0x18f   :  { %v1778_v14 = vmul.f32 0.2, %v1183_v5  ;;  %v1842_v15 = vmul.f32 0.2, %v1343_v6 }
 0x190   :  { %v2161_v10 = vmax.f32 %v1500_v62, %v1905_v3  ;;  %v2225_v11 = vmax.f32 %v1660_v63, %v1969_v4 }
 0x191   :  { %1222 = vmatmul.bf16.gmra.mxu0 %v3343_v0  ;;  %1382 = vmatmul.bf16.gmra.mxu1 %v3375_v1  ;;  %v2034_v22 = vmax.f32 %v1183_v5, %v1778_v14  ;;  %v2098_v23 = vmax.f32 %v1343_v6, %v1842_v15  ;;  %v3345_v0 = vld [vmem:[%s5055_s0 + $0xc8] sm:$0xff] }
 0x192   :  { %v3849_v12 = vpack.c.bf16 %v2161_v10, %v2160_v8  ;;  %v4009_v13 = vpack.c.bf16 %v2225_v11, %v2224_v9  ;;  %1542 = vmatmul.bf16.gmra.mxu2 %v3407_v2  ;;  %1702 = vmatmul.bf16.gmra.mxu3 %v3439_v7  ;;  %v3377_v1 = vld [vmem:[%s5055_s0 + $0x1c8] sm:$0xff] }
 0x193   :  { %v3409_v2 = vld [vmem:[%s5055_s0 + $0x2c8] sm:$0xff] }
 0x194   :  { %4173 = vst [vmem:[%s5056_s2 + $0x270] sm:$0xff] %v3849_v12   ;;  %v3441_v7 = vld [vmem:[%s5055_s0 + $0x3c8] sm:$0xff] }
 0x195   :  { %4205 = vst [vmem:[%s5056_s2 + $0x370] sm:$0xff] %v4009_v13   ;;  %v1503_v16 = vpop.f32.mrf.mxu2  ;;  %v1663_v17 = vpop.f32.mrf.mxu3 }
 0x196   :  { %v1185_v18 = vpop.f32.mrf.mxu0  ;;  %v1345_v19 = vpop.f32.mrf.mxu1  ;;  %v1906_v28 = vmul.f32 0.2, %v1503_v16  ;;  %v1970_v29 = vmul.f32 0.2, %v1663_v17 }
 0x197   :  { %v1779_v20 = vmul.f32 0.2, %v1185_v18  ;;  %v1843_v21 = vmul.f32 0.2, %v1345_v19 }
 0x198   :  { %v2162_v40 = vmax.f32 %v1503_v16, %v1906_v28  ;;  %v2226_v41 = vmax.f32 %v1663_v17, %v1970_v29 }
 0x199   :  { %v2035_v24 = vmax.f32 %v1185_v18, %v1779_v20  ;;  %v2099_v25 = vmax.f32 %v1345_v19, %v1843_v21 }
 0x19b   :  { %v3534_v26 = vpack.c.bf16 %v2035_v24, %v2034_v22  ;;  %v3694_v27 = vpack.c.bf16 %v2099_v25, %v2098_v23 }
 0x19d   :  { %4110 = vst [vmem:[%s5056_s2 + $0x78] sm:$0xff] %v3534_v26   ;;  %v1505_v30 = vpop.f32.mrf.mxu2  ;;  %v1665_v31 = vpop.f32.mrf.mxu3 }
 0x19e   :  { %4142 = vst [vmem:[%s5056_s2 + $0x178] sm:$0xff] %v3694_v27   ;;  %v1907_v35 = vmul.f32 0.2, %v1505_v30  ;;  %v1971_v36 = vmul.f32 0.2, %v1665_v31  ;;  %v1188_v37 = vpop.f32.mrf.mxu0  ;;  %v1348_v38 = vpop.f32.mrf.mxu1 }
 0x19f   :  { %v1780_v46 = vmul.f32 0.2, %v1188_v37  ;;  %v1844_v47 = vmul.f32 0.2, %v1348_v38 }
 0x1a0   :  { %v2163_v42 = vmax.f32 %v1505_v30, %v1907_v35  ;;  %v2227_v43 = vmax.f32 %v1665_v31, %v1971_v36 }
 0x1a1   :  { %1227 = vmatmul.bf16.gmra.mxu0 %v3344_v32  ;;  %1387 = vmatmul.bf16.gmra.mxu1 %v3376_v33  ;;  %v2036_v54 = vmax.f32 %v1188_v37, %v1780_v46  ;;  %v2100_v55 = vmax.f32 %v1348_v38, %v1844_v47  ;;  %v3346_v32 = vld [vmem:[%s5055_s0 + $0xd0] sm:$0xff] }
 0x1a2   :  { %v3854_v44 = vpack.c.bf16 %v2163_v42, %v2162_v40  ;;  %v4014_v45 = vpack.c.bf16 %v2227_v43, %v2226_v41  ;;  %1547 = vmatmul.bf16.gmra.mxu2 %v3408_v34  ;;  %1707 = vmatmul.bf16.gmra.mxu3 %v3440_v39  ;;  %v3378_v33 = vld [vmem:[%s5055_s0 + $0x1d0] sm:$0xff] }
 0x1a3   :  { %v3410_v34 = vld [vmem:[%s5055_s0 + $0x2d0] sm:$0xff] }
 0x1a4   :  { %4174 = vst [vmem:[%s5056_s2 + $0x278] sm:$0xff] %v3854_v44   ;;  %v3442_v39 = vld [vmem:[%s5055_s0 + $0x3d0] sm:$0xff] }
 0x1a5   :  { %4206 = vst [vmem:[%s5056_s2 + $0x378] sm:$0xff] %v4014_v45   ;;  %v1508_v48 = vpop.f32.mrf.mxu2  ;;  %v1668_v49 = vpop.f32.mrf.mxu3 }
 0x1a6   :  { %v1190_v50 = vpop.f32.mrf.mxu0  ;;  %v1350_v51 = vpop.f32.mrf.mxu1  ;;  %v1908_v60 = vmul.f32 0.2, %v1508_v48  ;;  %v1972_v61 = vmul.f32 0.2, %v1668_v49 }
 0x1a7   :  { %v1781_v52 = vmul.f32 0.2, %v1190_v50  ;;  %v1845_v53 = vmul.f32 0.2, %v1350_v51 }
 0x1a8   :  { %v2164_v8 = vmax.f32 %v1508_v48, %v1908_v60  ;;  %v2228_v9 = vmax.f32 %v1668_v49, %v1972_v61 }
 0x1a9   :  { %v2037_v56 = vmax.f32 %v1190_v50, %v1781_v52  ;;  %v2101_v57 = vmax.f32 %v1350_v51, %v1845_v53 }
 0x1ab   :  { %v3539_v58 = vpack.c.bf16 %v2037_v56, %v2036_v54  ;;  %v3699_v59 = vpack.c.bf16 %v2101_v57, %v2100_v55 }
 0x1ad   :  { %4111 = vst [vmem:[%s5056_s2 + $0x80] sm:$0xff] %v3539_v58   ;;  %v1510_v62 = vpop.f32.mrf.mxu2  ;;  %v1670_v63 = vpop.f32.mrf.mxu3 }
 0x1ae   :  { %4143 = vst [vmem:[%s5056_s2 + $0x180] sm:$0xff] %v3699_v59   ;;  %v1909_v3 = vmul.f32 0.2, %v1510_v62  ;;  %v1973_v4 = vmul.f32 0.2, %v1670_v63  ;;  %v1193_v5 = vpop.f32.mrf.mxu0  ;;  %v1353_v6 = vpop.f32.mrf.mxu1 }
 0x1af   :  { %v1782_v14 = vmul.f32 0.2, %v1193_v5  ;;  %v1846_v15 = vmul.f32 0.2, %v1353_v6 }
 0x1b0   :  { %v2165_v10 = vmax.f32 %v1510_v62, %v1909_v3  ;;  %v2229_v11 = vmax.f32 %v1670_v63, %v1973_v4 }
 0x1b1   :  { %1232 = vmatmul.bf16.gmra.mxu0 %v3345_v0  ;;  %1392 = vmatmul.bf16.gmra.mxu1 %v3377_v1  ;;  %v2038_v22 = vmax.f32 %v1193_v5, %v1782_v14  ;;  %v2102_v23 = vmax.f32 %v1353_v6, %v1846_v15  ;;  %v3347_v0 = vld [vmem:[%s5055_s0 + $0xd8] sm:$0xff] }
 0x1b2   :  { %v3859_v12 = vpack.c.bf16 %v2165_v10, %v2164_v8  ;;  %v4019_v13 = vpack.c.bf16 %v2229_v11, %v2228_v9  ;;  %1552 = vmatmul.bf16.gmra.mxu2 %v3409_v2  ;;  %1712 = vmatmul.bf16.gmra.mxu3 %v3441_v7  ;;  %v3379_v1 = vld [vmem:[%s5055_s0 + $0x1d8] sm:$0xff] }
 0x1b3   :  { %v3411_v2 = vld [vmem:[%s5055_s0 + $0x2d8] sm:$0xff] }
 0x1b4   :  { %4175 = vst [vmem:[%s5056_s2 + $0x280] sm:$0xff] %v3859_v12   ;;  %v3443_v7 = vld [vmem:[%s5055_s0 + $0x3d8] sm:$0xff] }
 0x1b5   :  { %4207 = vst [vmem:[%s5056_s2 + $0x380] sm:$0xff] %v4019_v13   ;;  %v1513_v16 = vpop.f32.mrf.mxu2  ;;  %v1673_v17 = vpop.f32.mrf.mxu3 }
 0x1b6   :  { %v1195_v18 = vpop.f32.mrf.mxu0  ;;  %v1355_v19 = vpop.f32.mrf.mxu1  ;;  %v1910_v28 = vmul.f32 0.2, %v1513_v16  ;;  %v1974_v29 = vmul.f32 0.2, %v1673_v17 }
 0x1b7   :  { %v1783_v20 = vmul.f32 0.2, %v1195_v18  ;;  %v1847_v21 = vmul.f32 0.2, %v1355_v19 }
 0x1b8   :  { %v2166_v40 = vmax.f32 %v1513_v16, %v1910_v28  ;;  %v2230_v41 = vmax.f32 %v1673_v17, %v1974_v29 }
 0x1b9   :  { %v2039_v24 = vmax.f32 %v1195_v18, %v1783_v20  ;;  %v2103_v25 = vmax.f32 %v1355_v19, %v1847_v21 }
 0x1bb   :  { %v3544_v26 = vpack.c.bf16 %v2039_v24, %v2038_v22  ;;  %v3704_v27 = vpack.c.bf16 %v2103_v25, %v2102_v23 }
 0x1bd   :  { %4112 = vst [vmem:[%s5056_s2 + $0x88] sm:$0xff] %v3544_v26   ;;  %v1515_v30 = vpop.f32.mrf.mxu2  ;;  %v1675_v31 = vpop.f32.mrf.mxu3 }
 0x1be   :  { %4144 = vst [vmem:[%s5056_s2 + $0x188] sm:$0xff] %v3704_v27   ;;  %v1911_v35 = vmul.f32 0.2, %v1515_v30  ;;  %v1975_v36 = vmul.f32 0.2, %v1675_v31  ;;  %v1198_v37 = vpop.f32.mrf.mxu0  ;;  %v1358_v38 = vpop.f32.mrf.mxu1 }
 0x1bf   :  { %v1784_v46 = vmul.f32 0.2, %v1198_v37  ;;  %v1848_v47 = vmul.f32 0.2, %v1358_v38 }
 0x1c0   :  { %v2167_v42 = vmax.f32 %v1515_v30, %v1911_v35  ;;  %v2231_v43 = vmax.f32 %v1675_v31, %v1975_v36 }
 0x1c1   :  { %1237 = vmatmul.bf16.gmra.mxu0 %v3346_v32  ;;  %1397 = vmatmul.bf16.gmra.mxu1 %v3378_v33  ;;  %v2040_v54 = vmax.f32 %v1198_v37, %v1784_v46  ;;  %v2104_v55 = vmax.f32 %v1358_v38, %v1848_v47  ;;  %v3348_v32 = vld [vmem:[%s5055_s0 + $0xe0] sm:$0xff] }
 0x1c2   :  { %v3864_v44 = vpack.c.bf16 %v2167_v42, %v2166_v40  ;;  %v4024_v45 = vpack.c.bf16 %v2231_v43, %v2230_v41  ;;  %1557 = vmatmul.bf16.gmra.mxu2 %v3410_v34  ;;  %1717 = vmatmul.bf16.gmra.mxu3 %v3442_v39  ;;  %v3380_v33 = vld [vmem:[%s5055_s0 + $0x1e0] sm:$0xff] }
 0x1c3   :  { %v3412_v34 = vld [vmem:[%s5055_s0 + $0x2e0] sm:$0xff] }
 0x1c4   :  { %4176 = vst [vmem:[%s5056_s2 + $0x288] sm:$0xff] %v3864_v44   ;;  %v3444_v39 = vld [vmem:[%s5055_s0 + $0x3e0] sm:$0xff] }
 0x1c5   :  { %4208 = vst [vmem:[%s5056_s2 + $0x388] sm:$0xff] %v4024_v45   ;;  %v1518_v48 = vpop.f32.mrf.mxu2  ;;  %v1678_v49 = vpop.f32.mrf.mxu3 }
 0x1c6   :  { %v1200_v50 = vpop.f32.mrf.mxu0  ;;  %v1360_v51 = vpop.f32.mrf.mxu1  ;;  %v1912_v60 = vmul.f32 0.2, %v1518_v48  ;;  %v1976_v61 = vmul.f32 0.2, %v1678_v49 }
 0x1c7   :  { %v1785_v52 = vmul.f32 0.2, %v1200_v50  ;;  %v1849_v53 = vmul.f32 0.2, %v1360_v51 }
 0x1c8   :  { %v2168_v8 = vmax.f32 %v1518_v48, %v1912_v60  ;;  %v2232_v9 = vmax.f32 %v1678_v49, %v1976_v61 }
 0x1c9   :  { %v2041_v56 = vmax.f32 %v1200_v50, %v1785_v52  ;;  %v2105_v57 = vmax.f32 %v1360_v51, %v1849_v53 }
 0x1cb   :  { %v3549_v58 = vpack.c.bf16 %v2041_v56, %v2040_v54  ;;  %v3709_v59 = vpack.c.bf16 %v2105_v57, %v2104_v55 }
 0x1cd   :  { %4113 = vst [vmem:[%s5056_s2 + $0x90] sm:$0xff] %v3549_v58   ;;  %v1520_v62 = vpop.f32.mrf.mxu2  ;;  %v1680_v63 = vpop.f32.mrf.mxu3 }
 0x1ce   :  { %4145 = vst [vmem:[%s5056_s2 + $0x190] sm:$0xff] %v3709_v59   ;;  %v1913_v3 = vmul.f32 0.2, %v1520_v62  ;;  %v1977_v4 = vmul.f32 0.2, %v1680_v63  ;;  %v1203_v5 = vpop.f32.mrf.mxu0  ;;  %v1363_v6 = vpop.f32.mrf.mxu1 }
 0x1cf   :  { %v1786_v14 = vmul.f32 0.2, %v1203_v5  ;;  %v1850_v15 = vmul.f32 0.2, %v1363_v6 }
 0x1d0   :  { %v2169_v10 = vmax.f32 %v1520_v62, %v1913_v3  ;;  %v2233_v11 = vmax.f32 %v1680_v63, %v1977_v4 }
 0x1d1   :  { %1242 = vmatmul.bf16.gmra.mxu0 %v3347_v0  ;;  %1402 = vmatmul.bf16.gmra.mxu1 %v3379_v1  ;;  %v2042_v22 = vmax.f32 %v1203_v5, %v1786_v14  ;;  %v2106_v23 = vmax.f32 %v1363_v6, %v1850_v15  ;;  %v3349_v0 = vld [vmem:[%s5055_s0 + $0xe8] sm:$0xff] }
 0x1d2   :  { %v3869_v12 = vpack.c.bf16 %v2169_v10, %v2168_v8  ;;  %v4029_v13 = vpack.c.bf16 %v2233_v11, %v2232_v9  ;;  %1562 = vmatmul.bf16.gmra.mxu2 %v3411_v2  ;;  %1722 = vmatmul.bf16.gmra.mxu3 %v3443_v7  ;;  %v3381_v1 = vld [vmem:[%s5055_s0 + $0x1e8] sm:$0xff] }
 0x1d3   :  { %v3413_v2 = vld [vmem:[%s5055_s0 + $0x2e8] sm:$0xff] }
 0x1d4   :  { %4177 = vst [vmem:[%s5056_s2 + $0x290] sm:$0xff] %v3869_v12   ;;  %v3445_v7 = vld [vmem:[%s5055_s0 + $0x3e8] sm:$0xff] }
 0x1d5   :  { %4209 = vst [vmem:[%s5056_s2 + $0x390] sm:$0xff] %v4029_v13   ;;  %v1523_v16 = vpop.f32.mrf.mxu2  ;;  %v1683_v17 = vpop.f32.mrf.mxu3 }
 0x1d6   :  { %v1205_v18 = vpop.f32.mrf.mxu0  ;;  %v1365_v19 = vpop.f32.mrf.mxu1  ;;  %v1914_v28 = vmul.f32 0.2, %v1523_v16  ;;  %v1978_v29 = vmul.f32 0.2, %v1683_v17 }
 0x1d7   :  { %v1787_v20 = vmul.f32 0.2, %v1205_v18  ;;  %v1851_v21 = vmul.f32 0.2, %v1365_v19 }
 0x1d8   :  { %v2170_v40 = vmax.f32 %v1523_v16, %v1914_v28  ;;  %v2234_v41 = vmax.f32 %v1683_v17, %v1978_v29 }
 0x1d9   :  { %v2043_v24 = vmax.f32 %v1205_v18, %v1787_v20  ;;  %v2107_v25 = vmax.f32 %v1365_v19, %v1851_v21 }
 0x1db   :  { %v3554_v26 = vpack.c.bf16 %v2043_v24, %v2042_v22  ;;  %v3714_v27 = vpack.c.bf16 %v2107_v25, %v2106_v23 }
 0x1dd   :  { %4114 = vst [vmem:[%s5056_s2 + $0x98] sm:$0xff] %v3554_v26   ;;  %v1525_v30 = vpop.f32.mrf.mxu2  ;;  %v1685_v31 = vpop.f32.mrf.mxu3 }
 0x1de   :  { %4146 = vst [vmem:[%s5056_s2 + $0x198] sm:$0xff] %v3714_v27   ;;  %v1915_v35 = vmul.f32 0.2, %v1525_v30  ;;  %v1979_v36 = vmul.f32 0.2, %v1685_v31  ;;  %v1208_v37 = vpop.f32.mrf.mxu0  ;;  %v1368_v38 = vpop.f32.mrf.mxu1 }
 0x1df   :  { %v1788_v46 = vmul.f32 0.2, %v1208_v37  ;;  %v1852_v47 = vmul.f32 0.2, %v1368_v38 }
 0x1e0   :  { %v2171_v42 = vmax.f32 %v1525_v30, %v1915_v35  ;;  %v2235_v43 = vmax.f32 %v1685_v31, %v1979_v36 }
 0x1e1   :  { %1247 = vmatmul.bf16.gmra.mxu0 %v3348_v32  ;;  %1407 = vmatmul.bf16.gmra.mxu1 %v3380_v33  ;;  %v2044_v54 = vmax.f32 %v1208_v37, %v1788_v46  ;;  %v2108_v55 = vmax.f32 %v1368_v38, %v1852_v47  ;;  %v3350_v32 = vld [vmem:[%s5055_s0 + $0xf0] sm:$0xff] }
 0x1e2   :  { %v3874_v44 = vpack.c.bf16 %v2171_v42, %v2170_v40  ;;  %v4034_v45 = vpack.c.bf16 %v2235_v43, %v2234_v41  ;;  %1567 = vmatmul.bf16.gmra.mxu2 %v3412_v34  ;;  %1727 = vmatmul.bf16.gmra.mxu3 %v3444_v39  ;;  %v3382_v33 = vld [vmem:[%s5055_s0 + $0x1f0] sm:$0xff] }
 0x1e3   :  { %v3414_v34 = vld [vmem:[%s5055_s0 + $0x2f0] sm:$0xff] }
 0x1e4   :  { %4178 = vst [vmem:[%s5056_s2 + $0x298] sm:$0xff] %v3874_v44   ;;  %v3446_v39 = vld [vmem:[%s5055_s0 + $0x3f0] sm:$0xff] }
 0x1e5   :  { %4210 = vst [vmem:[%s5056_s2 + $0x398] sm:$0xff] %v4034_v45   ;;  %v1528_v48 = vpop.f32.mrf.mxu2  ;;  %v1688_v49 = vpop.f32.mrf.mxu3 }
 0x1e6   :  { %v1210_v50 = vpop.f32.mrf.mxu0  ;;  %v1370_v51 = vpop.f32.mrf.mxu1  ;;  %v1916_v60 = vmul.f32 0.2, %v1528_v48  ;;  %v1980_v61 = vmul.f32 0.2, %v1688_v49 }
 0x1e7   :  { %v1789_v52 = vmul.f32 0.2, %v1210_v50  ;;  %v1853_v53 = vmul.f32 0.2, %v1370_v51 }
 0x1e8   :  { %v2172_v8 = vmax.f32 %v1528_v48, %v1916_v60  ;;  %v2236_v9 = vmax.f32 %v1688_v49, %v1980_v61 }
 0x1e9   :  { %v2045_v56 = vmax.f32 %v1210_v50, %v1789_v52  ;;  %v2109_v57 = vmax.f32 %v1370_v51, %v1853_v53 }
 0x1eb   :  { %v3559_v58 = vpack.c.bf16 %v2045_v56, %v2044_v54  ;;  %v3719_v59 = vpack.c.bf16 %v2109_v57, %v2108_v55 }
 0x1ed   :  { %4115 = vst [vmem:[%s5056_s2 + $0xa0] sm:$0xff] %v3559_v58   ;;  %v1530_v62 = vpop.f32.mrf.mxu2  ;;  %v1690_v63 = vpop.f32.mrf.mxu3 }
 0x1ee   :  { %4147 = vst [vmem:[%s5056_s2 + $0x1a0] sm:$0xff] %v3719_v59   ;;  %v1917_v3 = vmul.f32 0.2, %v1530_v62  ;;  %v1981_v4 = vmul.f32 0.2, %v1690_v63  ;;  %v1213_v5 = vpop.f32.mrf.mxu0  ;;  %v1373_v6 = vpop.f32.mrf.mxu1 }
 0x1ef   :  { %v1790_v14 = vmul.f32 0.2, %v1213_v5  ;;  %v1854_v15 = vmul.f32 0.2, %v1373_v6 }
 0x1f0   :  { %v2173_v10 = vmax.f32 %v1530_v62, %v1917_v3  ;;  %v2237_v11 = vmax.f32 %v1690_v63, %v1981_v4 }
 0x1f1   :  { %1252 = vmatmul.bf16.gmra.mxu0 %v3349_v0  ;;  %1412 = vmatmul.bf16.gmra.mxu1 %v3381_v1  ;;  %v2046_v22 = vmax.f32 %v1213_v5, %v1790_v14  ;;  %v2110_v23 = vmax.f32 %v1373_v6, %v1854_v15  ;;  %v3351_v0 = vld [vmem:[%s5055_s0 + $0xf8] sm:$0xff] }
 0x1f2   :  { %v3879_v12 = vpack.c.bf16 %v2173_v10, %v2172_v8  ;;  %v4039_v13 = vpack.c.bf16 %v2237_v11, %v2236_v9  ;;  %1572 = vmatmul.bf16.gmra.mxu2 %v3413_v2  ;;  %1732 = vmatmul.bf16.gmra.mxu3 %v3445_v7  ;;  %v3383_v1 = vld [vmem:[%s5055_s0 + $0x1f8] sm:$0xff] }
 0x1f3   :  { %v3415_v2 = vld [vmem:[%s5055_s0 + $0x2f8] sm:$0xff] }
 0x1f4   :  { %4179 = vst [vmem:[%s5056_s2 + $0x2a0] sm:$0xff] %v3879_v12   ;;  %v3447_v7 = vld [vmem:[%s5055_s0 + $0x3f8] sm:$0xff] }
 0x1f5   :  { %4211 = vst [vmem:[%s5056_s2 + $0x3a0] sm:$0xff] %v4039_v13   ;;  %v1533_v16 = vpop.f32.mrf.mxu2  ;;  %v1693_v17 = vpop.f32.mrf.mxu3 }
 0x1f6   :  { %v1215_v18 = vpop.f32.mrf.mxu0  ;;  %v1375_v19 = vpop.f32.mrf.mxu1  ;;  %v1918_v28 = vmul.f32 0.2, %v1533_v16  ;;  %v1982_v29 = vmul.f32 0.2, %v1693_v17 }
 0x1f7   :  { %v1791_v20 = vmul.f32 0.2, %v1215_v18  ;;  %v1855_v21 = vmul.f32 0.2, %v1375_v19 }
 0x1f8   :  { %v2174_v40 = vmax.f32 %v1533_v16, %v1918_v28  ;;  %v2238_v41 = vmax.f32 %v1693_v17, %v1982_v29 }
 0x1f9   :  { %v2047_v24 = vmax.f32 %v1215_v18, %v1791_v20  ;;  %v2111_v25 = vmax.f32 %v1375_v19, %v1855_v21 }
 0x1fb   :  { %v3564_v26 = vpack.c.bf16 %v2047_v24, %v2046_v22  ;;  %v3724_v27 = vpack.c.bf16 %v2111_v25, %v2110_v23 }
 0x1fd   :  { %4116 = vst [vmem:[%s5056_s2 + $0xa8] sm:$0xff] %v3564_v26   ;;  %v1535_v30 = vpop.f32.mrf.mxu2  ;;  %v1695_v31 = vpop.f32.mrf.mxu3 }
 0x1fe   :  { %4148 = vst [vmem:[%s5056_s2 + $0x1a8] sm:$0xff] %v3724_v27   ;;  %v1919_v35 = vmul.f32 0.2, %v1535_v30  ;;  %v1983_v36 = vmul.f32 0.2, %v1695_v31  ;;  %v1218_v37 = vpop.f32.mrf.mxu0  ;;  %v1378_v38 = vpop.f32.mrf.mxu1 }
 0x1ff   :  { %v1792_v46 = vmul.f32 0.2, %v1218_v37  ;;  %v1856_v47 = vmul.f32 0.2, %v1378_v38 }
 0x200   :  { %v2175_v42 = vmax.f32 %v1535_v30, %v1919_v35  ;;  %v2239_v43 = vmax.f32 %v1695_v31, %v1983_v36 }
 0x201   :  { %1257 = vmatmul.bf16.gmra.mxu0 %v3350_v32  ;;  %1417 = vmatmul.bf16.gmra.mxu1 %v3382_v33  ;;  %v2048_v54 = vmax.f32 %v1218_v37, %v1792_v46  ;;  %v2112_v55 = vmax.f32 %v1378_v38, %v1856_v47 }
 0x202   :  { %v3884_v44 = vpack.c.bf16 %v2175_v42, %v2174_v40  ;;  %v4044_v45 = vpack.c.bf16 %v2239_v43, %v2238_v41  ;;  %1577 = vmatmul.bf16.gmra.mxu2 %v3414_v34  ;;  %1737 = vmatmul.bf16.gmra.mxu3 %v3446_v39 }
 0x204   :  { %4180 = vst [vmem:[%s5056_s2 + $0x2a8] sm:$0xff] %v3884_v44  }
 0x205   :  { %4212 = vst [vmem:[%s5056_s2 + $0x3a8] sm:$0xff] %v4044_v45   ;;  %v1538_v48 = vpop.f32.mrf.mxu2  ;;  %v1698_v49 = vpop.f32.mrf.mxu3 }
 0x206   :  { %v1220_v50 = vpop.f32.mrf.mxu0  ;;  %v1380_v51 = vpop.f32.mrf.mxu1  ;;  %v1920_v60 = vmul.f32 0.2, %v1538_v48  ;;  %v1984_v61 = vmul.f32 0.2, %v1698_v49 }
 0x207   :  { %v1793_v52 = vmul.f32 0.2, %v1220_v50  ;;  %v1857_v53 = vmul.f32 0.2, %v1380_v51 }
 0x208   :  { %v2176_v8 = vmax.f32 %v1538_v48, %v1920_v60  ;;  %v2240_v9 = vmax.f32 %v1698_v49, %v1984_v61 }
 0x209   :  { %v2049_v56 = vmax.f32 %v1220_v50, %v1793_v52  ;;  %v2113_v57 = vmax.f32 %v1380_v51, %v1857_v53 }
 0x20b   :  { %v3569_v58 = vpack.c.bf16 %v2049_v56, %v2048_v54  ;;  %v3729_v59 = vpack.c.bf16 %v2113_v57, %v2112_v55 }
 0x20d   :  { %4117 = vst [vmem:[%s5056_s2 + $0xb0] sm:$0xff] %v3569_v58   ;;  %v1540_v62 = vpop.f32.mrf.mxu2  ;;  %v1700_v63 = vpop.f32.mrf.mxu3 }
 0x20e   :  { %4149 = vst [vmem:[%s5056_s2 + $0x1b0] sm:$0xff] %v3729_v59   ;;  %v1921_v3 = vmul.f32 0.2, %v1540_v62  ;;  %v1985_v4 = vmul.f32 0.2, %v1700_v63  ;;  %v1223_v5 = vpop.f32.mrf.mxu0  ;;  %v1383_v6 = vpop.f32.mrf.mxu1 }
 0x20f   :  { %v1794_v14 = vmul.f32 0.2, %v1223_v5  ;;  %v1858_v15 = vmul.f32 0.2, %v1383_v6 }
 0x210   :  { %v2177_v10 = vmax.f32 %v1540_v62, %v1921_v3  ;;  %v2241_v11 = vmax.f32 %v1700_v63, %v1985_v4 }
 0x211   :  { %1262 = vmatmul.bf16.gmra.mxu0 %v3351_v0  ;;  %1422 = vmatmul.bf16.gmra.mxu1 %v3383_v1  ;;  %v2050_v22 = vmax.f32 %v1223_v5, %v1794_v14  ;;  %v2114_v23 = vmax.f32 %v1383_v6, %v1858_v15 }
 0x212   :  { %v3889_v12 = vpack.c.bf16 %v2177_v10, %v2176_v8  ;;  %v4049_v13 = vpack.c.bf16 %v2241_v11, %v2240_v9  ;;  %1582 = vmatmul.bf16.gmra.mxu2 %v3415_v2  ;;  %1742 = vmatmul.bf16.gmra.mxu3 %v3447_v7 }
 0x214   :  { %4181 = vst [vmem:[%s5056_s2 + $0x2b0] sm:$0xff] %v3889_v12  }
 0x215   :  { %4213 = vst [vmem:[%s5056_s2 + $0x3b0] sm:$0xff] %v4049_v13   ;;  %v1543_v16 = vpop.f32.mrf.mxu2  ;;  %v1703_v17 = vpop.f32.mrf.mxu3 }
 0x216   :  { %v1225_v18 = vpop.f32.mrf.mxu0  ;;  %v1385_v19 = vpop.f32.mrf.mxu1  ;;  %v1922_v28 = vmul.f32 0.2, %v1543_v16  ;;  %v1986_v29 = vmul.f32 0.2, %v1703_v17 }
 0x217   :  { %v1795_v20 = vmul.f32 0.2, %v1225_v18  ;;  %v1859_v21 = vmul.f32 0.2, %v1385_v19 }
 0x218   :  { %v2178_v36 = vmax.f32 %v1543_v16, %v1922_v28  ;;  %v2242_v37 = vmax.f32 %v1703_v17, %v1986_v29 }
 0x219   :  { %v2051_v24 = vmax.f32 %v1225_v18, %v1795_v20  ;;  %v2115_v25 = vmax.f32 %v1385_v19, %v1859_v21 }
 0x21b   :  { %v3574_v26 = vpack.c.bf16 %v2051_v24, %v2050_v22  ;;  %v3734_v27 = vpack.c.bf16 %v2115_v25, %v2114_v23 }
 0x21d   :  { %4118 = vst [vmem:[%s5056_s2 + $0xb8] sm:$0xff] %v3574_v26   ;;  %v1545_v30 = vpop.f32.mrf.mxu2  ;;  %v1705_v31 = vpop.f32.mrf.mxu3 }
 0x21e   :  { %4150 = vst [vmem:[%s5056_s2 + $0x1b8] sm:$0xff] %v3734_v27   ;;  %v1923_v32 = vmul.f32 0.2, %v1545_v30  ;;  %v1987_v33 = vmul.f32 0.2, %v1705_v31  ;;  %v1228_v34 = vpop.f32.mrf.mxu0  ;;  %v1388_v35 = vpop.f32.mrf.mxu1 }
 0x21f   :  { %v1796_v42 = vmul.f32 0.2, %v1228_v34  ;;  %v1860_v43 = vmul.f32 0.2, %v1388_v35 }
 0x220   :  { %v2179_v38 = vmax.f32 %v1545_v30, %v1923_v32  ;;  %v2243_v39 = vmax.f32 %v1705_v31, %v1987_v33 }
 0x221   :  { %v2052_v50 = vmax.f32 %v1228_v34, %v1796_v42  ;;  %v2116_v51 = vmax.f32 %v1388_v35, %v1860_v43 }
 0x222   :  { %v3894_v40 = vpack.c.bf16 %v2179_v38, %v2178_v36  ;;  %v4054_v41 = vpack.c.bf16 %v2243_v39, %v2242_v37 }
 0x224   :  { %4182 = vst [vmem:[%s5056_s2 + $0x2b8] sm:$0xff] %v3894_v40  }
 0x225   :  { %4214 = vst [vmem:[%s5056_s2 + $0x3b8] sm:$0xff] %v4054_v41   ;;  %v1548_v44 = vpop.f32.mrf.mxu2  ;;  %v1708_v45 = vpop.f32.mrf.mxu3 }
 0x226   :  { %v1230_v46 = vpop.f32.mrf.mxu0  ;;  %v1390_v47 = vpop.f32.mrf.mxu1  ;;  %v1924_v56 = vmul.f32 0.2, %v1548_v44  ;;  %v1988_v57 = vmul.f32 0.2, %v1708_v45 }
 0x227   :  { %v1797_v48 = vmul.f32 0.2, %v1230_v46  ;;  %v1861_v49 = vmul.f32 0.2, %v1390_v47 }
 0x228   :  { %v2180_v0 = vmax.f32 %v1548_v44, %v1924_v56  ;;  %v2244_v1 = vmax.f32 %v1708_v45, %v1988_v57 }
 0x229   :  { %v2053_v52 = vmax.f32 %v1230_v46, %v1797_v48  ;;  %v2117_v53 = vmax.f32 %v1390_v47, %v1861_v49 }
 0x22b   :  { %v3579_v54 = vpack.c.bf16 %v2053_v52, %v2052_v50  ;;  %v3739_v55 = vpack.c.bf16 %v2117_v53, %v2116_v51 }
 0x22d   :  { %4119 = vst [vmem:[%s5056_s2 + $0xc0] sm:$0xff] %v3579_v54   ;;  %v1550_v58 = vpop.f32.mrf.mxu2  ;;  %v1710_v59 = vpop.f32.mrf.mxu3 }
 0x22e   :  { %4151 = vst [vmem:[%s5056_s2 + $0x1c0] sm:$0xff] %v3739_v55   ;;  %v1925_v60 = vmul.f32 0.2, %v1550_v58  ;;  %v1989_v61 = vmul.f32 0.2, %v1710_v59  ;;  %v1233_v62 = vpop.f32.mrf.mxu0  ;;  %v1393_v63 = vpop.f32.mrf.mxu1 }
 0x22f   :  { %v1798_v6 = vmul.f32 0.2, %v1233_v62  ;;  %v1862_v7 = vmul.f32 0.2, %v1393_v63 }
 0x230   :  { %v2181_v2 = vmax.f32 %v1550_v58, %v1925_v60  ;;  %v2245_v3 = vmax.f32 %v1710_v59, %v1989_v61 }
 0x231   :  { %v2054_v14 = vmax.f32 %v1233_v62, %v1798_v6  ;;  %v2118_v15 = vmax.f32 %v1393_v63, %v1862_v7 }
 0x232   :  { %v3899_v4 = vpack.c.bf16 %v2181_v2, %v2180_v0  ;;  %v4059_v5 = vpack.c.bf16 %v2245_v3, %v2244_v1 }
 0x234   :  { %4183 = vst [vmem:[%s5056_s2 + $0x2c0] sm:$0xff] %v3899_v4  }
 0x235   :  { %4215 = vst [vmem:[%s5056_s2 + $0x3c0] sm:$0xff] %v4059_v5   ;;  %v1553_v8 = vpop.f32.mrf.mxu2  ;;  %v1713_v9 = vpop.f32.mrf.mxu3 }
 0x236   :  { %v1235_v10 = vpop.f32.mrf.mxu0  ;;  %v1395_v11 = vpop.f32.mrf.mxu1  ;;  %v1926_v20 = vmul.f32 0.2, %v1553_v8  ;;  %v1990_v21 = vmul.f32 0.2, %v1713_v9 }
 0x237   :  { %v1799_v12 = vmul.f32 0.2, %v1235_v10  ;;  %v1863_v13 = vmul.f32 0.2, %v1395_v11 }
 0x238   :  { %v2182_v28 = vmax.f32 %v1553_v8, %v1926_v20  ;;  %v2246_v29 = vmax.f32 %v1713_v9, %v1990_v21 }
 0x239   :  { %v2055_v16 = vmax.f32 %v1235_v10, %v1799_v12  ;;  %v2119_v17 = vmax.f32 %v1395_v11, %v1863_v13 }
 0x23b   :  { %v3584_v18 = vpack.c.bf16 %v2055_v16, %v2054_v14  ;;  %v3744_v19 = vpack.c.bf16 %v2119_v17, %v2118_v15 }
 0x23d   :  { %4120 = vst [vmem:[%s5056_s2 + $0xc8] sm:$0xff] %v3584_v18   ;;  %v1555_v22 = vpop.f32.mrf.mxu2  ;;  %v1715_v23 = vpop.f32.mrf.mxu3 }
 0x23e   :  { %4152 = vst [vmem:[%s5056_s2 + $0x1c8] sm:$0xff] %v3744_v19   ;;  %v1927_v24 = vmul.f32 0.2, %v1555_v22  ;;  %v1991_v25 = vmul.f32 0.2, %v1715_v23  ;;  %v1238_v26 = vpop.f32.mrf.mxu0  ;;  %v1398_v27 = vpop.f32.mrf.mxu1 }
 0x23f   :  { %v1800_v34 = vmul.f32 0.2, %v1238_v26  ;;  %v1864_v35 = vmul.f32 0.2, %v1398_v27 }
 0x240   :  { %v2183_v30 = vmax.f32 %v1555_v22, %v1927_v24  ;;  %v2247_v31 = vmax.f32 %v1715_v23, %v1991_v25 }
 0x241   :  { %v2056_v42 = vmax.f32 %v1238_v26, %v1800_v34  ;;  %v2120_v43 = vmax.f32 %v1398_v27, %v1864_v35 }
 0x242   :  { %v3904_v32 = vpack.c.bf16 %v2183_v30, %v2182_v28  ;;  %v4064_v33 = vpack.c.bf16 %v2247_v31, %v2246_v29 }
 0x244   :  { %4184 = vst [vmem:[%s5056_s2 + $0x2c8] sm:$0xff] %v3904_v32  }
 0x245   :  { %4216 = vst [vmem:[%s5056_s2 + $0x3c8] sm:$0xff] %v4064_v33   ;;  %v1558_v36 = vpop.f32.mrf.mxu2  ;;  %v1718_v37 = vpop.f32.mrf.mxu3 }
 0x246   :  { %v1240_v38 = vpop.f32.mrf.mxu0  ;;  %v1400_v39 = vpop.f32.mrf.mxu1  ;;  %v1928_v48 = vmul.f32 0.2, %v1558_v36  ;;  %v1992_v49 = vmul.f32 0.2, %v1718_v37 }
 0x247   :  { %v1801_v40 = vmul.f32 0.2, %v1240_v38  ;;  %v1865_v41 = vmul.f32 0.2, %v1400_v39 }
 0x248   :  { %v2184_v56 = vmax.f32 %v1558_v36, %v1928_v48  ;;  %v2248_v57 = vmax.f32 %v1718_v37, %v1992_v49 }
 0x249   :  { %v2057_v44 = vmax.f32 %v1240_v38, %v1801_v40  ;;  %v2121_v45 = vmax.f32 %v1400_v39, %v1865_v41 }
 0x24b   :  { %v3589_v46 = vpack.c.bf16 %v2057_v44, %v2056_v42  ;;  %v3749_v47 = vpack.c.bf16 %v2121_v45, %v2120_v43 }
 0x24d   :  { %4121 = vst [vmem:[%s5056_s2 + $0xd0] sm:$0xff] %v3589_v46   ;;  %v1560_v50 = vpop.f32.mrf.mxu2  ;;  %v1720_v51 = vpop.f32.mrf.mxu3 }
 0x24e   :  { %4153 = vst [vmem:[%s5056_s2 + $0x1d0] sm:$0xff] %v3749_v47   ;;  %v1929_v52 = vmul.f32 0.2, %v1560_v50  ;;  %v1993_v53 = vmul.f32 0.2, %v1720_v51  ;;  %v1243_v54 = vpop.f32.mrf.mxu0  ;;  %v1403_v55 = vpop.f32.mrf.mxu1 }
 0x24f   :  { %v1802_v62 = vmul.f32 0.2, %v1243_v54  ;;  %v1866_v63 = vmul.f32 0.2, %v1403_v55 }
 0x250   :  { %v2185_v58 = vmax.f32 %v1560_v50, %v1929_v52  ;;  %v2249_v59 = vmax.f32 %v1720_v51, %v1993_v53 }
 0x251   :  { %v2058_v6 = vmax.f32 %v1243_v54, %v1802_v62  ;;  %v2122_v7 = vmax.f32 %v1403_v55, %v1866_v63 }
 0x252   :  { %v3909_v60 = vpack.c.bf16 %v2185_v58, %v2184_v56  ;;  %v4069_v61 = vpack.c.bf16 %v2249_v59, %v2248_v57 }
 0x254   :  { %4185 = vst [vmem:[%s5056_s2 + $0x2d0] sm:$0xff] %v3909_v60  }
 0x255   :  { %4217 = vst [vmem:[%s5056_s2 + $0x3d0] sm:$0xff] %v4069_v61   ;;  %v1563_v0 = vpop.f32.mrf.mxu2  ;;  %v1723_v1 = vpop.f32.mrf.mxu3 }
 0x256   :  { %v1245_v2 = vpop.f32.mrf.mxu0  ;;  %v1405_v3 = vpop.f32.mrf.mxu1  ;;  %v1930_v12 = vmul.f32 0.2, %v1563_v0  ;;  %v1994_v13 = vmul.f32 0.2, %v1723_v1 }
 0x257   :  { %v1803_v4 = vmul.f32 0.2, %v1245_v2  ;;  %v1867_v5 = vmul.f32 0.2, %v1405_v3 }
 0x258   :  { %v2186_v20 = vmax.f32 %v1563_v0, %v1930_v12  ;;  %v2250_v21 = vmax.f32 %v1723_v1, %v1994_v13 }
 0x259   :  { %v2059_v8 = vmax.f32 %v1245_v2, %v1803_v4  ;;  %v2123_v9 = vmax.f32 %v1405_v3, %v1867_v5 }
 0x25b   :  { %v3594_v10 = vpack.c.bf16 %v2059_v8, %v2058_v6  ;;  %v3754_v11 = vpack.c.bf16 %v2123_v9, %v2122_v7 }
 0x25d   :  { %4122 = vst [vmem:[%s5056_s2 + $0xd8] sm:$0xff] %v3594_v10   ;;  %v1565_v14 = vpop.f32.mrf.mxu2  ;;  %v1725_v15 = vpop.f32.mrf.mxu3 }
 0x25e   :  { %4154 = vst [vmem:[%s5056_s2 + $0x1d8] sm:$0xff] %v3754_v11   ;;  %v1931_v16 = vmul.f32 0.2, %v1565_v14  ;;  %v1995_v17 = vmul.f32 0.2, %v1725_v15  ;;  %v1248_v18 = vpop.f32.mrf.mxu0  ;;  %v1408_v19 = vpop.f32.mrf.mxu1 }
 0x25f   :  { %v1804_v26 = vmul.f32 0.2, %v1248_v18  ;;  %v1868_v27 = vmul.f32 0.2, %v1408_v19 }
 0x260   :  { %v2187_v22 = vmax.f32 %v1565_v14, %v1931_v16  ;;  %v2251_v23 = vmax.f32 %v1725_v15, %v1995_v17 }
 0x261   :  { %v2060_v34 = vmax.f32 %v1248_v18, %v1804_v26  ;;  %v2124_v35 = vmax.f32 %v1408_v19, %v1868_v27 }
 0x262   :  { %v3914_v24 = vpack.c.bf16 %v2187_v22, %v2186_v20  ;;  %v4074_v25 = vpack.c.bf16 %v2251_v23, %v2250_v21 }
 0x264   :  { %4186 = vst [vmem:[%s5056_s2 + $0x2d8] sm:$0xff] %v3914_v24  }
 0x265   :  { %4218 = vst [vmem:[%s5056_s2 + $0x3d8] sm:$0xff] %v4074_v25   ;;  %v1568_v28 = vpop.f32.mrf.mxu2  ;;  %v1728_v29 = vpop.f32.mrf.mxu3 }
 0x266   :  { %v1250_v30 = vpop.f32.mrf.mxu0  ;;  %v1410_v31 = vpop.f32.mrf.mxu1  ;;  %v1932_v40 = vmul.f32 0.2, %v1568_v28  ;;  %v1996_v41 = vmul.f32 0.2, %v1728_v29 }
 0x267   :  { %v1805_v32 = vmul.f32 0.2, %v1250_v30  ;;  %v1869_v33 = vmul.f32 0.2, %v1410_v31 }
 0x268   :  { %v2188_v48 = vmax.f32 %v1568_v28, %v1932_v40  ;;  %v2252_v49 = vmax.f32 %v1728_v29, %v1996_v41 }
 0x269   :  { %v2061_v36 = vmax.f32 %v1250_v30, %v1805_v32  ;;  %v2125_v37 = vmax.f32 %v1410_v31, %v1869_v33 }
 0x26b   :  { %v3599_v38 = vpack.c.bf16 %v2061_v36, %v2060_v34  ;;  %v3759_v39 = vpack.c.bf16 %v2125_v37, %v2124_v35 }
 0x26d   :  { %4123 = vst [vmem:[%s5056_s2 + $0xe0] sm:$0xff] %v3599_v38   ;;  %v1570_v42 = vpop.f32.mrf.mxu2  ;;  %v1730_v43 = vpop.f32.mrf.mxu3 }
 0x26e   :  { %4155 = vst [vmem:[%s5056_s2 + $0x1e0] sm:$0xff] %v3759_v39   ;;  %v1933_v44 = vmul.f32 0.2, %v1570_v42  ;;  %v1997_v45 = vmul.f32 0.2, %v1730_v43  ;;  %v1253_v46 = vpop.f32.mrf.mxu0  ;;  %v1413_v47 = vpop.f32.mrf.mxu1 }
 0x26f   :  { %v1806_v54 = vmul.f32 0.2, %v1253_v46  ;;  %v1870_v55 = vmul.f32 0.2, %v1413_v47 }
 0x270   :  { %v2189_v50 = vmax.f32 %v1570_v42, %v1933_v44  ;;  %v2253_v51 = vmax.f32 %v1730_v43, %v1997_v45 }
 0x271   :  { %v2062_v62 = vmax.f32 %v1253_v46, %v1806_v54  ;;  %v2126_v63 = vmax.f32 %v1413_v47, %v1870_v55 }
 0x272   :  { %v3919_v52 = vpack.c.bf16 %v2189_v50, %v2188_v48  ;;  %v4079_v53 = vpack.c.bf16 %v2253_v51, %v2252_v49 }
 0x274   :  { %4187 = vst [vmem:[%s5056_s2 + $0x2e0] sm:$0xff] %v3919_v52  }
 0x275   :  { %4219 = vst [vmem:[%s5056_s2 + $0x3e0] sm:$0xff] %v4079_v53   ;;  %v1573_v56 = vpop.f32.mrf.mxu2  ;;  %v1733_v57 = vpop.f32.mrf.mxu3 }
 0x276   :  { %v1255_v58 = vpop.f32.mrf.mxu0  ;;  %v1415_v59 = vpop.f32.mrf.mxu1  ;;  %v1934_v4 = vmul.f32 0.2, %v1573_v56  ;;  %v1998_v5 = vmul.f32 0.2, %v1733_v57 }
 0x277   :  { %v1807_v60 = vmul.f32 0.2, %v1255_v58  ;;  %v1871_v61 = vmul.f32 0.2, %v1415_v59 }
 0x278   :  { %v2190_v12 = vmax.f32 %v1573_v56, %v1934_v4  ;;  %v2254_v13 = vmax.f32 %v1733_v57, %v1998_v5 }
 0x279   :  { %v2063_v0 = vmax.f32 %v1255_v58, %v1807_v60  ;;  %v2127_v1 = vmax.f32 %v1415_v59, %v1871_v61 }
 0x27b   :  { %v3604_v2 = vpack.c.bf16 %v2063_v0, %v2062_v62  ;;  %v3764_v3 = vpack.c.bf16 %v2127_v1, %v2126_v63 }
 0x27d   :  { %4124 = vst [vmem:[%s5056_s2 + $0xe8] sm:$0xff] %v3604_v2   ;;  %v1575_v6 = vpop.f32.mrf.mxu2  ;;  %v1735_v7 = vpop.f32.mrf.mxu3 }
 0x27e   :  { %4156 = vst [vmem:[%s5056_s2 + $0x1e8] sm:$0xff] %v3764_v3   ;;  %v1935_v8 = vmul.f32 0.2, %v1575_v6  ;;  %v1999_v9 = vmul.f32 0.2, %v1735_v7  ;;  %v1258_v10 = vpop.f32.mrf.mxu0  ;;  %v1418_v11 = vpop.f32.mrf.mxu1 }
 0x27f   :  { %v1808_v18 = vmul.f32 0.2, %v1258_v10  ;;  %v1872_v19 = vmul.f32 0.2, %v1418_v11 }
 0x280   :  { %v2191_v14 = vmax.f32 %v1575_v6, %v1935_v8  ;;  %v2255_v15 = vmax.f32 %v1735_v7, %v1999_v9 }
 0x281   :  { %v2064_v26 = vmax.f32 %v1258_v10, %v1808_v18  ;;  %v2128_v27 = vmax.f32 %v1418_v11, %v1872_v19 }
 0x282   :  { %v3924_v16 = vpack.c.bf16 %v2191_v14, %v2190_v12  ;;  %v4084_v17 = vpack.c.bf16 %v2255_v15, %v2254_v13 }
 0x284   :  { %4188 = vst [vmem:[%s5056_s2 + $0x2e8] sm:$0xff] %v3924_v16  }
 0x285   :  { %4220 = vst [vmem:[%s5056_s2 + $0x3e8] sm:$0xff] %v4084_v17   ;;  %v1578_v20 = vpop.f32.mrf.mxu2  ;;  %v1738_v21 = vpop.f32.mrf.mxu3 }
 0x286   :  { %v1260_v22 = vpop.f32.mrf.mxu0  ;;  %v1420_v23 = vpop.f32.mrf.mxu1  ;;  %v1936_v32 = vmul.f32 0.2, %v1578_v20  ;;  %v2000_v33 = vmul.f32 0.2, %v1738_v21 }
 0x287   :  { %v1809_v24 = vmul.f32 0.2, %v1260_v22  ;;  %v1873_v25 = vmul.f32 0.2, %v1420_v23 }
 0x288   :  { %v2192_v40 = vmax.f32 %v1578_v20, %v1936_v32  ;;  %v2256_v41 = vmax.f32 %v1738_v21, %v2000_v33 }
 0x289   :  { %v2065_v28 = vmax.f32 %v1260_v22, %v1809_v24  ;;  %v2129_v29 = vmax.f32 %v1420_v23, %v1873_v25 }
 0x28b   :  { %v3609_v30 = vpack.c.bf16 %v2065_v28, %v2064_v26  ;;  %v3769_v31 = vpack.c.bf16 %v2129_v29, %v2128_v27 }
 0x28d   :  { %4125 = vst [vmem:[%s5056_s2 + $0xf0] sm:$0xff] %v3609_v30   ;;  %v1580_v34 = vpop.f32.mrf.mxu2  ;;  %v1740_v35 = vpop.f32.mrf.mxu3 }
 0x28e   :  { %4157 = vst [vmem:[%s5056_s2 + $0x1f0] sm:$0xff] %v3769_v31   ;;  %v1937_v36 = vmul.f32 0.2, %v1580_v34  ;;  %v2001_v37 = vmul.f32 0.2, %v1740_v35  ;;  %v1263_v38 = vpop.f32.mrf.mxu0  ;;  %v1423_v39 = vpop.f32.mrf.mxu1 }
 0x28f   :  { %v1810_v46 = vmul.f32 0.2, %v1263_v38  ;;  %v1874_v47 = vmul.f32 0.2, %v1423_v39 }
 0x290   :  { %v2193_v42 = vmax.f32 %v1580_v34, %v1937_v36  ;;  %v2257_v43 = vmax.f32 %v1740_v35, %v2001_v37 }
 0x291   :  { %v2066_v54 = vmax.f32 %v1263_v38, %v1810_v46  ;;  %v2130_v55 = vmax.f32 %v1423_v39, %v1874_v47 }
 0x292   :  { %v3929_v44 = vpack.c.bf16 %v2193_v42, %v2192_v40  ;;  %v4089_v45 = vpack.c.bf16 %v2257_v43, %v2256_v41 }
 0x294   :  { %4189 = vst [vmem:[%s5056_s2 + $0x2f0] sm:$0xff] %v3929_v44  }
 0x295   :  { %4221 = vst [vmem:[%s5056_s2 + $0x3f0] sm:$0xff] %v4089_v45   ;;  %v1583_v48 = vpop.f32.mrf.mxu2  ;;  %v1743_v49 = vpop.f32.mrf.mxu3 }
 0x296   :  { %v1265_v50 = vpop.f32.mrf.mxu0  ;;  %v1425_v51 = vpop.f32.mrf.mxu1  ;;  %v1938_v60 = vmul.f32 0.2, %v1583_v48  ;;  %v2002_v61 = vmul.f32 0.2, %v1743_v49 }
 0x297   :  { %v1811_v52 = vmul.f32 0.2, %v1265_v50  ;;  %v1875_v53 = vmul.f32 0.2, %v1425_v51 }
 0x298   :  { %v2194_v2 = vmax.f32 %v1583_v48, %v1938_v60  ;;  %v2258_v3 = vmax.f32 %v1743_v49, %v2002_v61 }
 0x299   :  { %v2067_v56 = vmax.f32 %v1265_v50, %v1811_v52  ;;  %v2131_v57 = vmax.f32 %v1425_v51, %v1875_v53 }
 0x29b   :  { %v3614_v58 = vpack.c.bf16 %v2067_v56, %v2066_v54  ;;  %v3774_v59 = vpack.c.bf16 %v2131_v57, %v2130_v55 }
 0x29d   :  { %4126 = vst [vmem:[%s5056_s2 + $0xf8] sm:$0xff] %v3614_v58   ;;  %v1585_v62 = vpop.f32.mrf.mxu2  ;;  %v1745_v63 = vpop.f32.mrf.mxu3 }
 0x29e   :  { %4158 = vst [vmem:[%s5056_s2 + $0x1f8] sm:$0xff] %v3774_v59   ;;  %v1939_v0 = vmul.f32 0.2, %v1585_v62  ;;  %v2003_v1 = vmul.f32 0.2, %v1745_v63 }
 0x2a0   :  { %v2195_v4 = vmax.f32 %v1585_v62, %v1939_v0  ;;  %v2259_v5 = vmax.f32 %v1745_v63, %v2003_v1 }
 0x2a2   :  { %v3934_v6 = vpack.c.bf16 %v2195_v4, %v2194_v2  ;;  %v4094_v7 = vpack.c.bf16 %v2259_v5, %v2258_v3 }
 0x2a4   :  { %4190 = vst [vmem:[%s5056_s2 + $0x2f8] sm:$0xff] %v3934_v6  }
 0x2a5   :  { %4222 = vst [vmem:[%s5056_s2 + $0x3f8] sm:$0xff] %v4094_v7  }

// kernel: discriminator_forward.6
= control target key start
LH: loop header
LB: loop body
LE: loop exit
PB: predicated region body
PF: predicated region fallthrough
CT: control target
= control target key end

     0   :  { %vm704_vm0 = vcmask 1040384   ;;  %s1785_s1 = inlined_call_operand.vmem [shape: bf16[128,128], index: 1, kind: input, shape index: {}]   ;;  %s1786_s0 = inlined_call_operand.vmem [shape: bf16[512,128], index: 0, kind: input, shape index: {}]   ;;  %s1787_s2 = inlined_call_operand.vmem [shape: bf16[512,128], index: 2, kind: output, shape index: {0}]   ;;  %s1788_s3 = inlined_call_operand.vmem [shape: f32[1,2,128], index: 3, kind: output, shape index: {1}]  }
   0x1   :  { %v1042_v0 = vld [vmem:[%s1785_s1 + $0x38] sm:$0xff]  ;;  %v1041_v1 = vld [vmem:[%s1785_s1 + $0x30] sm:$0xff]  ;;  %v1040_v2 = vld [vmem:[%s1785_s1 + $0x28] sm:$0xff] }
   0x2   :  { %333 = vmatpush.bf16.msra.mxu0 %v1042_v0  ;;  %1234 = vmatpush.bf16.msra.mxu1 %v1042_v0  ;;  %v1039_v3 = vld [vmem:[%s1785_s1 + $0x20] sm:$0xff]  ;;  %v1038_v4 = vld [vmem:[%s1785_s1 + $0x18] sm:$0xff]  ;;  %v1037_v5 = vld [vmem:[%s1785_s1 + $0x10] sm:$0xff] }
   0x3   :  { %1235 = vmatpush.bf16.msra.mxu2 %v1042_v0  ;;  %1236 = vmatpush.bf16.msra.mxu3 %v1042_v0  ;;  %v1036_v6 = vld [vmem:[%s1785_s1 + $0x8] sm:$0xff]  ;;  %v1035_v7 = vld [vmem:[%s1785_s1] sm:$0xff]  ;;  %v1005_v13 = vld [vmem:[%s1786_s0 + $0x10] sm:$0xff] }
   0x4   :  { %v1003_v8 = vld [vmem:[%s1786_s0] sm:$0xff]  ;;  %v1004_v10 = vld [vmem:[%s1786_s0 + $0x8] sm:$0xff]  ;;  %v1013_v14 = vld [vmem:[%s1786_s0 + $0x50] sm:$0xff] }
   0x5   :  { %v1011_v9 = vld [vmem:[%s1786_s0 + $0x40] sm:$0xff]  ;;  %v1012_v11 = vld [vmem:[%s1786_s0 + $0x48] sm:$0xff]  ;;  %v1006_v16 = vld [vmem:[%s1786_s0 + $0x18] sm:$0xff] }
   0x6   :  { %334 = vmatpush.bf16.msra.mxu0 %v1041_v1  ;;  %1237 = vmatpush.bf16.msra.mxu1 %v1041_v1  ;;  %v1019_v12 = vld [vmem:[%s1786_s0 + $0x80] sm:$0xff]  ;;  %v1020_v15 = vld [vmem:[%s1786_s0 + $0x88] sm:$0xff]  ;;  %v1014_v17 = vld [vmem:[%s1786_s0 + $0x58] sm:$0xff] }
   0x7   :  { %1238 = vmatpush.bf16.msra.mxu2 %v1041_v1  ;;  %1239 = vmatpush.bf16.msra.mxu3 %v1041_v1  ;;  %v1021_v18 = vld [vmem:[%s1786_s0 + $0x90] sm:$0xff]  ;;  %v1027_v19 = vld [vmem:[%s1786_s0 + $0xc0] sm:$0xff]  ;;  %v1022_v22 = vld [vmem:[%s1786_s0 + $0x98] sm:$0xff] }
   0x8   :  { %v1007_v20 = vld [vmem:[%s1786_s0 + $0x20] sm:$0xff]  ;;  %v1028_v23 = vld [vmem:[%s1786_s0 + $0xc8] sm:$0xff]  ;;  %v1029_v27 = vld [vmem:[%s1786_s0 + $0xd0] sm:$0xff] }
   0x9   :  { %v1015_v21 = vld [vmem:[%s1786_s0 + $0x60] sm:$0xff]  ;;  %v1008_v24 = vld [vmem:[%s1786_s0 + $0x28] sm:$0xff]  ;;  %v1009_v28 = vld [vmem:[%s1786_s0 + $0x30] sm:$0xff] }
   0xa   :  { %335 = vmatpush.bf16.msra.mxu0 %v1040_v2  ;;  %1240 = vmatpush.bf16.msra.mxu1 %v1040_v2  ;;  %v1016_v25 = vld [vmem:[%s1786_s0 + $0x68] sm:$0xff]  ;;  %v1023_v26 = vld [vmem:[%s1786_s0 + $0xa0] sm:$0xff]  ;;  %v1017_v29 = vld [vmem:[%s1786_s0 + $0x70] sm:$0xff] }
   0xb   :  { %1241 = vmatpush.bf16.msra.mxu2 %v1040_v2  ;;  %1242 = vmatpush.bf16.msra.mxu3 %v1040_v2  ;;  %v1024_v30 = vld [vmem:[%s1786_s0 + $0xa8] sm:$0xff]  ;;  %v1030_v31 = vld [vmem:[%s1786_s0 + $0xd8] sm:$0xff]  ;;  %v1025_v34 = vld [vmem:[%s1786_s0 + $0xb0] sm:$0xff] }
   0xc   :  { %v1010_v32 = vld [vmem:[%s1786_s0 + $0x38] sm:$0xff]  ;;  %v1031_v35 = vld [vmem:[%s1786_s0 + $0xe0] sm:$0xff]  ;;  %v1032_v39 = vld [vmem:[%s1786_s0 + $0xe8] sm:$0xff] }
   0xd   :  { %v1018_v33 = vld [vmem:[%s1786_s0 + $0x78] sm:$0xff]  ;;  %v1033_v53 = vld [vmem:[%s1786_s0 + $0xf0] sm:$0xff] }
   0xe   :  { %336 = vmatpush.bf16.msra.mxu0 %v1039_v3  ;;  %1243 = vmatpush.bf16.msra.mxu1 %v1039_v3  ;;  %v1026_v38 = vld [vmem:[%s1786_s0 + $0xb8] sm:$0xff] }
   0xf   :  { %1244 = vmatpush.bf16.msra.mxu2 %v1039_v3  ;;  %1245 = vmatpush.bf16.msra.mxu3 %v1039_v3 }
  0x12   :  { %337 = vmatpush.bf16.msra.mxu0 %v1038_v4  ;;  %1246 = vmatpush.bf16.msra.mxu1 %v1038_v4 }
  0x13   :  { %1247 = vmatpush.bf16.msra.mxu2 %v1038_v4  ;;  %1248 = vmatpush.bf16.msra.mxu3 %v1038_v4 }
  0x16   :  { %338 = vmatpush.bf16.msra.mxu0 %v1037_v5  ;;  %1249 = vmatpush.bf16.msra.mxu1 %v1037_v5 }
  0x17   :  { %1250 = vmatpush.bf16.msra.mxu2 %v1037_v5  ;;  %1251 = vmatpush.bf16.msra.mxu3 %v1037_v5  ;;  %v1034_v5 = vld [vmem:[%s1786_s0 + $0xf8] sm:$0xff] }
  0x1a   :  { %339 = vmatpush.bf16.msra.mxu0 %v1036_v6  ;;  %1252 = vmatpush.bf16.msra.mxu1 %v1036_v6 }
  0x1b   :  { %1253 = vmatpush.bf16.msra.mxu2 %v1036_v6  ;;  %1254 = vmatpush.bf16.msra.mxu3 %v1036_v6 }
  0x1e   :  { %340 = vmatpush.bf16.msra.mxu0 %v1035_v7  ;;  %1255 = vmatpush.bf16.msra.mxu1 %v1035_v7 }
  0x1f   :  { %1256 = vmatpush.bf16.msra.mxu2 %v1035_v7  ;;  %1257 = vmatpush.bf16.msra.mxu3 %v1035_v7 }
  0x21   :  { %341 = vmatmul.bf16.vlgmr.msra.gmra.mxu0 %v1003_v8  ;;  %381 = vmatmul.bf16.vlgmr.msra.gmra.mxu1 %v1011_v9 }
  0x22   :  { %421 = vmatmul.bf16.vlgmr.msra.gmra.mxu2 %v1019_v12  ;;  %461 = vmatmul.bf16.vlgmr.msra.gmra.mxu3 %v1027_v19 }
  0x31   :  { %346 = vmatmul.bf16.gmra.mxu0 %v1004_v10  ;;  %386 = vmatmul.bf16.gmra.mxu1 %v1012_v11 }
  0x32   :  { %426 = vmatmul.bf16.gmra.mxu2 %v1020_v15  ;;  %466 = vmatmul.bf16.gmra.mxu3 %v1028_v23 }
  0x41   :  { %351 = vmatmul.bf16.gmra.mxu0 %v1005_v13  ;;  %391 = vmatmul.bf16.gmra.mxu1 %v1013_v14 }
  0x42   :  { %431 = vmatmul.bf16.gmra.mxu2 %v1021_v18  ;;  %471 = vmatmul.bf16.gmra.mxu3 %v1029_v27 }
  0x51   :  { %356 = vmatmul.bf16.gmra.mxu0 %v1006_v16  ;;  %396 = vmatmul.bf16.gmra.mxu1 %v1014_v17 }
  0x52   :  { %436 = vmatmul.bf16.gmra.mxu2 %v1022_v22  ;;  %476 = vmatmul.bf16.gmra.mxu3 %v1030_v31 }
  0x61   :  { %361 = vmatmul.bf16.gmra.mxu0 %v1007_v20  ;;  %401 = vmatmul.bf16.gmra.mxu1 %v1015_v21 }
  0x62   :  { %441 = vmatmul.bf16.gmra.mxu2 %v1023_v26  ;;  %481 = vmatmul.bf16.gmra.mxu3 %v1031_v35 }
  0x71   :  { %366 = vmatmul.bf16.gmra.mxu0 %v1008_v24  ;;  %406 = vmatmul.bf16.gmra.mxu1 %v1016_v25 }
  0x72   :  { %446 = vmatmul.bf16.gmra.mxu2 %v1024_v30  ;;  %486 = vmatmul.bf16.gmra.mxu3 %v1032_v39 }
  0x81   :  { %371 = vmatmul.bf16.gmra.mxu0 %v1009_v28  ;;  %411 = vmatmul.bf16.gmra.mxu1 %v1017_v29 }
  0x82   :  { %451 = vmatmul.bf16.gmra.mxu2 %v1025_v34  ;;  %491 = vmatmul.bf16.gmra.mxu3 %v1033_v53 }
  0x91   :  { %376 = vmatmul.bf16.gmra.mxu0 %v1010_v32  ;;  %416 = vmatmul.bf16.gmra.mxu1 %v1018_v33 }
  0x92   :  { %456 = vmatmul.bf16.gmra.mxu2 %v1026_v38  ;;  %496 = vmatmul.bf16.gmra.mxu3 %v1034_v5 }
  0x9e   :  { %v342_v36 = vpop.f32.mrf.mxu0  ;;  %v1386_v37 = vpop.f32.mrf.mxu1 }
  0x9f   :  { %v571_v42 = vmul.f32 %v342_v36, %v342_v36 }
  0xa5   :  { %v1411_v59 = vpop.f32.mrf.mxu2  ;;  %v1462_v19 = vpop.f32.mrf.mxu3 }
  0xa6   :  { %v344_v40 = vpop.f32.mrf.mxu0  ;;  %v1394_v41 = vpop.f32.mrf.mxu1 }
  0xa7   :  { %v502_v43 = vadd.f32 %v344_v40, %v342_v36  ;;  %v572_v44 = vmul.f32 %v344_v40, %v344_v40  ;;  %v1046_v45 = vpack.c.bf16 %v344_v40, %v342_v36  ;;  %v1086_v46 = vpack.c.bf16 %v1394_v41, %v1386_v37 }
  0xa9   :  { %v635_v47 = vadd.f32 %v572_v44, %v571_v42  ;;  %1047 = vst [vmem:[%s1787_s2] sm:$0xff] %v1046_v45  }
  0xaa   :  { %1210 = vst [vmem:[%s1787_s2 + $0x40] sm:$0xff] %v1086_v46  }
  0xad   :  { %v1425_v2 = vpop.f32.mrf.mxu2  ;;  %v1476_v24 = vpop.f32.mrf.mxu3 }
  0xae   :  { %v347_v48 = vpop.f32.mrf.mxu0  ;;  %v1404_v49 = vpop.f32.mrf.mxu1  ;;  %v1126_v3 = vpack.c.bf16 %v1425_v2, %v1411_v59  ;;  %v1166_v26 = vpack.c.bf16 %v1476_v24, %v1462_v19 }
  0xaf   :  { %v503_v50 = vadd.f32 %v502_v43, %v347_v48  ;;  %v573_v51 = vmul.f32 %v347_v48, %v347_v48 }
  0xb0   :  { %1218 = vst [vmem:[%s1787_s2 + $0x80] sm:$0xff] %v1126_v3  }
  0xb1   :  { %v636_v52 = vadd.f32 %v635_v47, %v573_v51  ;;  %1226 = vst [vmem:[%s1787_s2 + $0xc0] sm:$0xff] %v1166_v26  }
  0xb5   :  { %v1439_v9 = vpop.f32.mrf.mxu2  ;;  %v1492_v31 = vpop.f32.mrf.mxu3 }
  0xb6   :  { %v349_v54 = vpop.f32.mrf.mxu0  ;;  %v1409_v55 = vpop.f32.mrf.mxu1 }
  0xb7   :  { %v504_v56 = vadd.f32 %v503_v50, %v349_v54  ;;  %v574_v57 = vmul.f32 %v349_v54, %v349_v54  ;;  %v1051_v58 = vpack.c.bf16 %v349_v54, %v347_v48  ;;  %v1091_v60 = vpack.c.bf16 %v1409_v55, %v1404_v49 }
  0xb9   :  { %v637_v61 = vadd.f32 %v636_v52, %v574_v57  ;;  %1203 = vst [vmem:[%s1787_s2 + $0x8] sm:$0xff] %v1051_v58  }
  0xba   :  { %1211 = vst [vmem:[%s1787_s2 + $0x48] sm:$0xff] %v1091_v60  }
  0xbd   :  { %v1451_v13 = vpop.f32.mrf.mxu2  ;;  %v1506_v36 = vpop.f32.mrf.mxu3 }
  0xbe   :  { %v352_v62 = vpop.f32.mrf.mxu0  ;;  %v1421_v63 = vpop.f32.mrf.mxu1  ;;  %v1131_v14 = vpack.c.bf16 %v1451_v13, %v1439_v9  ;;  %v1171_v39 = vpack.c.bf16 %v1506_v36, %v1492_v31 }
  0xbf   :  { %v1423_v0 = vadd.f32 %v504_v56, %v352_v62  ;;  %v575_v1 = vmul.f32 %v352_v62, %v352_v62 }
  0xc0   :  { %1219 = vst [vmem:[%s1787_s2 + $0x88] sm:$0xff] %v1131_v14  }
  0xc1   :  { %v1429_v4 = vadd.f32 %v637_v61, %v575_v1  ;;  %1227 = vst [vmem:[%s1787_s2 + $0xc8] sm:$0xff] %v1171_v39  }
  0xc5   :  { %v1460_v18 = vpop.f32.mrf.mxu2  ;;  %v1522_v45 = vpop.f32.mrf.mxu3 }
  0xc6   :  { %v354_v6 = vpop.f32.mrf.mxu0  ;;  %v1437_v7 = vpop.f32.mrf.mxu1 }
  0xc7   :  { %v1056_v8 = vpack.c.bf16 %v354_v6, %v352_v62  ;;  %v1096_v10 = vpack.c.bf16 %v1437_v7, %v1421_v63  ;;  %v576_v53 = vmul.f32 %v354_v6, %v354_v6  ;;  %v506_v56 = vadd.f32 %v1423_v0, %v354_v6 }
  0xc9   :  { %1204 = vst [vmem:[%s1787_s2 + $0x10] sm:$0xff] %v1056_v8   ;;  %v639_v58 = vadd.f32 %v1429_v4, %v576_v53 }
  0xca   :  { %1212 = vst [vmem:[%s1787_s2 + $0x50] sm:$0xff] %v1096_v10  }
  0xcd   :  { %v1474_v23 = vpop.f32.mrf.mxu2  ;;  %v1536_v51 = vpop.f32.mrf.mxu3 }
  0xce   :  { %v357_v11 = vpop.f32.mrf.mxu0  ;;  %v1449_v12 = vpop.f32.mrf.mxu1  ;;  %v1136_v25 = vpack.c.bf16 %v1474_v23, %v1460_v18  ;;  %v1176_v54 = vpack.c.bf16 %v1536_v51, %v1522_v45 }
  0xcf   :  { %v577_v57 = vmul.f32 %v357_v11, %v357_v11  ;;  %v507_v60 = vadd.f32 %v506_v56, %v357_v11 }
  0xd0   :  { %1220 = vst [vmem:[%s1787_s2 + $0x90] sm:$0xff] %v1136_v25  }
  0xd1   :  { %1228 = vst [vmem:[%s1787_s2 + $0xd0] sm:$0xff] %v1176_v54   ;;  %v640_v3 = vadd.f32 %v639_v58, %v577_v57 }
  0xd5   :  { %v1490_v30 = vpop.f32.mrf.mxu2 }
  0xd6   :  { %v359_v15 = vpop.f32.mrf.mxu0  ;;  %v1458_v16 = vpop.f32.mrf.mxu1 }
  0xd7   :  { %v1061_v17 = vpack.c.bf16 %v359_v15, %v357_v11  ;;  %v1101_v20 = vpack.c.bf16 %v1458_v16, %v1449_v12  ;;  %v578_v61 = vmul.f32 %v359_v15, %v359_v15  ;;  %v508_v5 = vadd.f32 %v507_v60, %v359_v15 }
  0xd9   :  { %1205 = vst [vmem:[%s1787_s2 + $0x18] sm:$0xff] %v1061_v17   ;;  %v1554_v17 = vpop.f32.mrf.mxu3  ;;  %v641_v6 = vadd.f32 %v640_v3, %v578_v61 }
  0xda   :  { %1213 = vst [vmem:[%s1787_s2 + $0x58] sm:$0xff] %v1101_v20  }
  0xdd   :  { %v1504_v35 = vpop.f32.mrf.mxu2 }
  0xde   :  { %v362_v21 = vpop.f32.mrf.mxu0  ;;  %v1472_v22 = vpop.f32.mrf.mxu1  ;;  %v1141_v38 = vpack.c.bf16 %v1504_v35, %v1490_v30 }
  0xdf   :  { %v579_v8 = vmul.f32 %v362_v21, %v362_v21  ;;  %v509_v20 = vadd.f32 %v508_v5, %v362_v21 }
  0xe0   :  { %1221 = vst [vmem:[%s1787_s2 + $0x98] sm:$0xff] %v1141_v38  }
  0xe1   :  { %v642_v4 = vadd.f32 %v641_v6, %v579_v8  ;;  %v1568_v53 = vpop.f32.mrf.mxu3 }
  0xe5   :  { %v1520_v44 = vpop.f32.mrf.mxu2 }
  0xe6   :  { %v364_v27 = vpop.f32.mrf.mxu0  ;;  %v1488_v28 = vpop.f32.mrf.mxu1 }
  0xe7   :  { %v1066_v29 = vpack.c.bf16 %v364_v27, %v362_v21  ;;  %v1106_v32 = vpack.c.bf16 %v1488_v28, %v1472_v22  ;;  %v580_v25 = vmul.f32 %v364_v27, %v364_v27  ;;  %v510_v11 = vadd.f32 %v509_v20, %v364_v27 }
  0xe9   :  { %1206 = vst [vmem:[%s1787_s2 + $0x20] sm:$0xff] %v1066_v29   ;;  %v643_v26 = vadd.f32 %v642_v4, %v580_v25  ;;  %v1584_v25 = vpop.f32.mrf.mxu3  ;;  %v587_v4 = vmul.f32 %v1386_v37, %v1386_v37 }
  0xea   :  { %1214 = vst [vmem:[%s1787_s2 + $0x60] sm:$0xff] %v1106_v32  }
  0xed   :  { %v1534_v50 = vpop.f32.mrf.mxu2 }
  0xee   :  { %v367_v33 = vpop.f32.mrf.mxu0  ;;  %v1502_v34 = vpop.f32.mrf.mxu1  ;;  %v1146_v52 = vpack.c.bf16 %v1534_v50, %v1520_v44 }
  0xef   :  { %v581_v15 = vmul.f32 %v367_v33, %v367_v33  ;;  %v511_v29 = vadd.f32 %v510_v11, %v367_v33 }
  0xf0   :  { %1222 = vst [vmem:[%s1787_s2 + $0xa0] sm:$0xff] %v1146_v52  }
  0xf5   :  { %v1552_v14 = vpop.f32.mrf.mxu2 }
  0xf6   :  { %v369_v40 = vpop.f32.mrf.mxu0  ;;  %v1518_v42 = vpop.f32.mrf.mxu1 }
  0xf7   :  { %v1071_v43 = vpack.c.bf16 %v369_v40, %v367_v33  ;;  %v1111_v46 = vpack.c.bf16 %v1518_v42, %v1502_v34  ;;  %v582_v32 = vmul.f32 %v369_v40, %v369_v40  ;;  %v512_v21 = vadd.f32 %v511_v29, %v369_v40 }
  0xf8   :  { %v1181_v33 = vpack.c.bf16 %v1568_v53, %v1554_v17 }
  0xf9   :  { %1207 = vst [vmem:[%s1787_s2 + $0x28] sm:$0xff] %v1071_v43   ;;  %v644_v43 = vadd.f32 %v643_v26, %v581_v15  ;;  %v588_v26 = vmul.f32 %v1394_v41, %v1394_v41 }
  0xfa   :  { %1215 = vst [vmem:[%s1787_s2 + $0x68] sm:$0xff] %v1111_v46  }
  0xfb   :  { %v645_v56 = vadd.f32 %v644_v43, %v582_v32  ;;  %1229 = vst [vmem:[%s1787_s2 + $0xd8] sm:$0xff] %v1181_v33  }
  0xfd   :  { %v1566_v52 = vpop.f32.mrf.mxu2 }
  0xfe   :  { %v372_v47 = vpop.f32.mrf.mxu0  ;;  %v1532_v48 = vpop.f32.mrf.mxu1  ;;  %v1151_v54 = vpack.c.bf16 %v1566_v52, %v1552_v14 }
  0xff   :  { %v583_v46 = vmul.f32 %v372_v47, %v372_v47  ;;  %v513_v57 = vadd.f32 %v512_v21, %v372_v47  ;;  %v590_v21 = vmul.f32 %v1409_v55, %v1409_v55 }
 0x100   :  { %1223 = vst [vmem:[%s1787_s2 + $0xa8] sm:$0xff] %v1151_v54  }
 0x101   :  { %v646_v58 = vadd.f32 %v645_v56, %v583_v46 }
 0x105   :  { %v1582_v20 = vpop.f32.mrf.mxu2 }
 0x106   :  { %v374_v62 = vpop.f32.mrf.mxu0  ;;  %v1550_v1 = vpop.f32.mrf.mxu1 }
 0x107   :  { %v1076_v10 = vpack.c.bf16 %v374_v62, %v372_v47  ;;  %v1116_v0 = vpack.c.bf16 %v1550_v1, %v1532_v48  ;;  %v584_v27 = vmul.f32 %v374_v62, %v374_v62  ;;  %v514_v40 = vadd.f32 %v513_v57, %v374_v62  ;;  %v1608_v57 = vpop.f32.mrf.mxu3 }
 0x109   :  { %1208 = vst [vmem:[%s1787_s2 + $0x30] sm:$0xff] %v1076_v10   ;;  %v647_v61 = vadd.f32 %v646_v58, %v584_v27  ;;  %v1186_v27 = vpack.c.bf16 %v1608_v57, %v1584_v25 }
 0x10a   :  { %1216 = vst [vmem:[%s1787_s2 + $0x70] sm:$0xff] %v1116_v0  }
 0x10b   :  { %1230 = vst [vmem:[%s1787_s2 + $0xe0] sm:$0xff] %v1186_v27   ;;  %v600_v27 = vmul.f32 %v1550_v1, %v1550_v1 }
 0x10d   :  { %v1606_v56 = vpop.f32.mrf.mxu2 }
 0x10e   :  { %v377_v38 = vpop.f32.mrf.mxu0  ;;  %v1564_v39 = vpop.f32.mrf.mxu1 }
 0x10f   :  { %v585_v60 = vmul.f32 %v377_v38, %v377_v38  ;;  %v515_v3 = vadd.f32 %v514_v40, %v377_v38 }
 0x111   :  { %v648_v47 = vadd.f32 %v647_v61, %v585_v60  ;;  %v593_v61 = vmul.f32 %v1449_v12, %v1449_v12 }
 0x116   :  { %v379_v5 = vpop.f32.mrf.mxu0  ;;  %v1580_v8 = vpop.f32.mrf.mxu1 }
 0x117   :  { %v516_v10 = vadd.f32 %v515_v3, %v379_v5  ;;  %v586_v0 = vmul.f32 %v379_v5, %v379_v5  ;;  %v1081_v6 = vpack.c.bf16 %v379_v5, %v377_v38  ;;  %v1121_v62 = vpack.c.bf16 %v1580_v8, %v1564_v39 }
 0x118   :  { %v589_v38 = vmul.f32 %v1404_v49, %v1404_v49  ;;  %v594_v5 = vmul.f32 %v1458_v16, %v1458_v16 }
 0x119   :  { %v517_v11 = vadd.f32 %v516_v10, %v1386_v37  ;;  %v649_v15 = vadd.f32 %v648_v47, %v586_v0  ;;  %1209 = vst [vmem:[%s1787_s2 + $0x38] sm:$0xff] %v1081_v6   ;;  %v1632_v0 = vpop.f32.mrf.mxu2  ;;  %v595_v6 = vmul.f32 %v1472_v22, %v1472_v22 }
 0x11a   :  { %1217 = vst [vmem:[%s1787_s2 + $0x78] sm:$0xff] %v1121_v62  }
 0x11b   :  { %v518_v29 = vadd.f32 %v517_v11, %v1394_v41  ;;  %v650_v32 = vadd.f32 %v649_v15, %v587_v4  ;;  %v1156_v41 = vpack.c.bf16 %v1606_v56, %v1582_v20  ;;  %v596_v11 = vmul.f32 %v1488_v28, %v1488_v28 }
 0x11d   :  { %v519_v37 = vadd.f32 %v518_v29, %v1404_v49  ;;  %v651_v43 = vadd.f32 %v650_v32, %v588_v26  ;;  %v591_v49 = vmul.f32 %v1421_v63, %v1421_v63  ;;  %1224 = vst [vmem:[%s1787_s2 + $0xb0] sm:$0xff] %v1156_v41   ;;  %v598_v32 = vmul.f32 %v1518_v42, %v1518_v42 }
 0x11f   :  { %v520_v46 = vadd.f32 %v519_v37, %v1409_v55  ;;  %v652_v54 = vadd.f32 %v651_v43, %v589_v38  ;;  %v592_v55 = vmul.f32 %v1437_v7, %v1437_v7 }
 0x121   :  { %v521_v33 = vadd.f32 %v520_v46, %v1421_v63  ;;  %v653_v58 = vadd.f32 %v652_v54, %v590_v21 }
 0x123   :  { %v522_v40 = vadd.f32 %v521_v33, %v1437_v7  ;;  %v654_v60 = vadd.f32 %v653_v58, %v591_v49  ;;  %v1634_v7 = vpop.f32.mrf.mxu3 }
 0x125   :  { %v655_v3 = vadd.f32 %v654_v60, %v592_v55  ;;  %v523_v63 = vadd.f32 %v522_v40, %v1449_v12  ;;  %v602_v40 = vmul.f32 %v1580_v8, %v1580_v8 }
 0x127   :  { %v524_v47 = vadd.f32 %v523_v63, %v1458_v16  ;;  %v656_v10 = vadd.f32 %v655_v3, %v593_v61  ;;  %v597_v16 = vmul.f32 %v1502_v34, %v1502_v34  ;;  %v604_v63 = vmul.f32 %v1425_v2, %v1425_v2 }
 0x129   :  { %v525_v62 = vadd.f32 %v524_v47, %v1472_v22  ;;  %v657_v4 = vadd.f32 %v656_v10, %v594_v5  ;;  %v1648_v22 = vpop.f32.mrf.mxu2  ;;  %v605_v47 = vmul.f32 %v1439_v9, %v1439_v9 }
 0x12b   :  { %v526_v12 = vadd.f32 %v525_v62, %v1488_v28  ;;  %v658_v15 = vadd.f32 %v657_v4, %v595_v6  ;;  %v1650_v43 = vpop.f32.mrf.mxu3  ;;  %v1161_v28 = vpack.c.bf16 %v1648_v22, %v1632_v0  ;;  %v606_v6 = vmul.f32 %v1451_v13, %v1451_v13 }
 0x12c   :  { %v1191_v21 = vpack.c.bf16 %v1650_v43, %v1634_v7 }
 0x12d   :  { %v527_v26 = vadd.f32 %v526_v12, %v1502_v34  ;;  %v659_v29 = vadd.f32 %v658_v15, %v596_v11  ;;  %v599_v34 = vmul.f32 %v1532_v48, %v1532_v48  ;;  %1225 = vst [vmem:[%s1787_s2 + $0xb8] sm:$0xff] %v1161_v28  }
 0x12e   :  { %1231 = vst [vmem:[%s1787_s2 + $0xe8] sm:$0xff] %v1191_v21   ;;  %v611_v21 = vmul.f32 %v1520_v44, %v1520_v44 }
 0x12f   :  { %v528_v38 = vadd.f32 %v527_v26, %v1518_v42  ;;  %v660_v37 = vadd.f32 %v659_v29, %v597_v16  ;;  %v609_v26 = vmul.f32 %v1490_v30, %v1490_v30 }
 0x131   :  { %v529_v46 = vadd.f32 %v528_v38, %v1532_v48  ;;  %v661_v54 = vadd.f32 %v660_v37, %v598_v32  ;;  %v601_v48 = vmul.f32 %v1564_v39, %v1564_v39 }
 0x133   :  { %v662_v42 = vadd.f32 %v661_v54, %v599_v34  ;;  %v530_v41 = vadd.f32 %v529_v46, %v1550_v1  ;;  %v1674_v60 = vpop.f32.mrf.mxu3  ;;  %v603_v1 = vmul.f32 %v1411_v59, %v1411_v59  ;;  %v612_v34 = vmul.f32 %v1534_v50, %v1534_v50 }
 0x135   :  { %v663_v49 = vadd.f32 %v662_v42, %v600_v27  ;;  %v531_v33 = vadd.f32 %v530_v41, %v1564_v39  ;;  %v613_v42 = vmul.f32 %v1552_v14, %v1552_v14 }
 0x137   :  { %v664_v58 = vadd.f32 %v663_v49, %v601_v48  ;;  %v532_v55 = vadd.f32 %v531_v33, %v1580_v8  ;;  %v614_v49 = vmul.f32 %v1566_v52, %v1566_v52 }
 0x139   :  { %v533_v61 = vadd.f32 %v532_v55, %v1411_v59  ;;  %v665_v3 = vadd.f32 %v664_v58, %v602_v40 }
 0x13b   :  { %v534_v5 = vadd.f32 %v533_v61, %v1425_v2  ;;  %v666_v39 = vadd.f32 %v665_v3, %v603_v1  ;;  %v1688_v59 = vpop.f32.mrf.mxu3  ;;  %v607_v2 = vmul.f32 %v1460_v18, %v1460_v18  ;;  %v617_v3 = vmul.f32 %v1632_v0, %v1632_v0 }
 0x13c   :  { %v1196_v11 = vpack.c.bf16 %v1688_v59, %v1674_v60 }
 0x13d   :  { %v535_v10 = vadd.f32 %v534_v5, %v1439_v9  ;;  %v667_v8 = vadd.f32 %v666_v39, %v604_v63  ;;  %v608_v9 = vmul.f32 %v1474_v23, %v1474_v23  ;;  %v619_v39 = vmul.f32 %v1462_v19, %v1462_v19 }
 0x13e   :  { %1232 = vst [vmem:[%s1787_s2 + $0xf0] sm:$0xff] %v1196_v11  }
 0x13f   :  { %v536_v62 = vadd.f32 %v535_v10, %v1451_v13  ;;  %v668_v4 = vadd.f32 %v667_v8, %v605_v47 }
 0x141   :  { %v537_v12 = vadd.f32 %v536_v62, %v1460_v18  ;;  %v669_v15 = vadd.f32 %v668_v4, %v606_v6  ;;  %v610_v18 = vmul.f32 %v1504_v35, %v1504_v35 }
 0x143   :  { %v538_v13 = vadd.f32 %v537_v12, %v1474_v23  ;;  %v670_v16 = vadd.f32 %v669_v15, %v607_v2  ;;  %v1707_v28 = vpop.f32.mrf.mxu3 }
 0x145   :  { %v671_v29 = vadd.f32 %v670_v16, %v608_v9  ;;  %v539_v32 = vadd.f32 %v538_v13, %v1490_v30 }
 0x147   :  { %v540_v38 = vadd.f32 %v539_v32, %v1504_v35  ;;  %v672_v37 = vadd.f32 %v671_v29, %v609_v26 }
 0x149   :  { %v541_v23 = vadd.f32 %v540_v38, %v1520_v44  ;;  %v673_v46 = vadd.f32 %v672_v37, %v610_v18 }
 0x14b   :  { %v542_v54 = vadd.f32 %v541_v23, %v1534_v50  ;;  %v674_v30 = vadd.f32 %v673_v46, %v611_v21  ;;  %v499_v44 = vpop.f32.mrf.mxu3  ;;  %v615_v50 = vmul.f32 %v1582_v20, %v1582_v20 }
 0x14c   :  { %v1201_v48 = vpack.c.bf16 %v499_v44, %v1707_v28 }
 0x14d   :  { %v543_v35 = vadd.f32 %v542_v54, %v1552_v14  ;;  %v675_v41 = vadd.f32 %v674_v30, %v612_v34  ;;  %v630_v34 = vmul.f32 %v1650_v43, %v1650_v43 }
 0x14e   :  { %1233 = vst [vmem:[%s1787_s2 + $0xf8] sm:$0xff] %v1201_v48   ;;  %v634_v48 = vmul.f32 %v499_v44, %v499_v44 }
 0x14f   :  { %v544_v27 = vadd.f32 %v543_v35, %v1566_v52  ;;  %v676_v33 = vadd.f32 %v675_v41, %v613_v42  ;;  %v616_v52 = vmul.f32 %v1606_v56, %v1606_v56  ;;  %v631_v42 = vmul.f32 %v1674_v60, %v1674_v60 }
 0x150   :  { %v632_v41 = vmul.f32 %v1688_v59, %v1688_v59 }
 0x151   :  { %v677_v58 = vadd.f32 %v676_v33, %v614_v49  ;;  %v545_v55 = vadd.f32 %v544_v27, %v1582_v20  ;;  %v618_v20 = vmul.f32 %v1648_v22, %v1648_v22  ;;  %v633_v49 = vmul.f32 %v1707_v28, %v1707_v28 }
 0x153   :  { %v678_v14 = vadd.f32 %v677_v58, %v615_v50  ;;  %v546_v40 = vadd.f32 %v545_v55, %v1606_v56  ;;  %v620_v56 = vmul.f32 %v1476_v24, %v1476_v24 }
 0x155   :  { %v679_v1 = vadd.f32 %v678_v14, %v616_v52  ;;  %v547_v61 = vadd.f32 %v546_v40, %v1632_v0  ;;  %v621_v0 = vmul.f32 %v1492_v31, %v1492_v31 }
 0x157   :  { %v680_v63 = vadd.f32 %v679_v1, %v617_v3  ;;  %v548_v5 = vadd.f32 %v547_v61, %v1648_v22  ;;  %v622_v22 = vmul.f32 %v1506_v36, %v1506_v36 }
 0x159   :  { %v549_v47 = vadd.f32 %v548_v5, %v1462_v19  ;;  %v681_v10 = vadd.f32 %v680_v63, %v618_v20  ;;  %v623_v19 = vmul.f32 %v1522_v45, %v1522_v45 }
 0x15b   :  { %v550_v8 = vadd.f32 %v549_v47, %v1476_v24  ;;  %v682_v6 = vadd.f32 %v681_v10, %v619_v39  ;;  %v624_v24 = vmul.f32 %v1536_v51, %v1536_v51 }
 0x15d   :  { %v551_v62 = vadd.f32 %v550_v8, %v1492_v31  ;;  %v683_v4 = vadd.f32 %v682_v6, %v620_v56  ;;  %v625_v31 = vmul.f32 %v1554_v17, %v1554_v17 }
 0x15f   :  { %v552_v11 = vadd.f32 %v551_v62, %v1506_v36  ;;  %v684_v2 = vadd.f32 %v683_v4, %v621_v0  ;;  %v626_v36 = vmul.f32 %v1568_v53, %v1568_v53 }
 0x161   :  { %v553_v12 = vadd.f32 %v552_v11, %v1522_v45  ;;  %v685_v15 = vadd.f32 %v684_v2, %v622_v22  ;;  %v627_v45 = vmul.f32 %v1584_v25, %v1584_v25 }
 0x163   :  { %v554_v9 = vadd.f32 %v553_v12, %v1536_v51  ;;  %v686_v13 = vadd.f32 %v685_v15, %v623_v19  ;;  %v628_v51 = vmul.f32 %v1608_v57, %v1608_v57 }
 0x165   :  { %v687_v16 = vadd.f32 %v686_v13, %v624_v24  ;;  %v555_v26 = vadd.f32 %v554_v9, %v1554_v17  ;;  %v629_v17 = vmul.f32 %v1634_v7, %v1634_v7 }
 0x167   :  { %v556_v29 = vadd.f32 %v555_v26, %v1568_v53  ;;  %v688_v32 = vadd.f32 %v687_v16, %v625_v31 }
 0x169   :  { %v557_v18 = vadd.f32 %v556_v29, %v1584_v25  ;;  %v689_v38 = vadd.f32 %v688_v32, %v626_v36 }
 0x16b   :  { %v558_v37 = vadd.f32 %v557_v18, %v1608_v57  ;;  %v690_v21 = vadd.f32 %v689_v38, %v627_v45 }
 0x16d   :  { %v559_v23 = vadd.f32 %v558_v37, %v1634_v7  ;;  %v691_v46 = vadd.f32 %v690_v21, %v628_v51 }
 0x16f   :  { %v560_v53 = vadd.f32 %v559_v23, %v1650_v43  ;;  %v692_v54 = vadd.f32 %v691_v46, %v629_v17 }
 0x171   :  { %v693_v25 = vadd.f32 %v692_v54, %v630_v34  ;;  %v561_v30 = vadd.f32 %v560_v53, %v1674_v60 }
 0x173   :  { %v694_v57 = vadd.f32 %v693_v25, %v631_v42  ;;  %v562_v35 = vadd.f32 %v561_v30, %v1688_v59 }
 0x175   :  { %v695_v7 = vadd.f32 %v694_v57, %v632_v41  ;;  %v563_v27 = vadd.f32 %v562_v35, %v1707_v28 }
 0x177   :  { %v696_v43 = vadd.f32 %v695_v7, %v633_v49  ;;  %v564_v33 = vadd.f32 %v563_v27, %v499_v44 }
 0x179   :  { %v565_v58 = vrot.slane %v564_v33, 4  ;;  %v697_v55 = vadd.f32 %v696_v43, %v634_v48 }
 0x17b   :  { %v566_v50 = vadd.f32 %v565_v58, %v564_v33  ;;  %v698_v14 = vrot.slane %v697_v55, 4 }
 0x17d   :  { %v567_v60 = vrot.slane %v566_v50, 2  ;;  %v699_v40 = vadd.f32 %v698_v14, %v697_v55 }
 0x17f   :  { %v568_v52 = vadd.f32 %v567_v60, %v566_v50  ;;  %v700_v1 = vrot.slane %v699_v40, 2 }
 0x181   :  { %v569_v61 = vrot.slane %v568_v52, 1  ;;  %v701_v3 = vadd.f32 %v700_v1, %v699_v40 }
 0x183   :  { %v702_v59 = vrot.slane %v701_v3, 1  ;;  %v570_v63 = vadd.f32 %v569_v61, %v568_v52 }
 0x185   :  { %v703_v5 = vadd.f32 %v702_v59, %v701_v3 }
 0x187   :  { %v705_v20 = vsel %vm704_vm0, %v570_v63, %v703_v5 }
 0x188   :  { %706 = vst [vmem:[%s1788_s3] sm:$0x3] %v705_v20 }

// kernel: discriminator_forward.7
= control target key start
LH: loop header
LB: loop body
LE: loop exit
PB: predicated region body
PF: predicated region fallthrough
CT: control target
= control target key end

     0   :  { %vm302_vm0 = vcmask 1040384   ;;  %s650_s1 = inlined_call_operand.vmem [shape: bf16[128,128], index: 1, kind: input, shape index: {}]   ;;  %s651_s0 = inlined_call_operand.vmem [shape: bf16[128,128], index: 0, kind: input, shape index: {}]   ;;  %s652_s2 = inlined_call_operand.vmem [shape: f32[1,128], index: 2, kind: input, shape index: {}]   ;;  %s653_s3 = inlined_call_operand.vmem [shape: f32[1,128], index: 3, kind: input, shape index: {}]   ;;  %s654_s4 = inlined_call_operand.vmem [shape: bf16[128,128], index: 4, kind: output, shape index: {0}]   ;;  %s655_s5 = inlined_call_operand.vmem [shape: f32[1,2,128], index: 5, kind: output, shape index: {1}]  }
   0x1   :  { %v384_v0 = vld [vmem:[%s650_s1 + $0x38] sm:$0xff]  ;;  %v383_v1 = vld [vmem:[%s650_s1 + $0x30] sm:$0xff]  ;;  %v386_v2 = vld [vmem:[%s651_s0] sm:$0xff]  }
   0x2   :  { %195 = vmatpush.bf16.msra.mxu0 %v384_v0  ;;  %471 = vmatpush.bf16.msra.mxu1 %v384_v0  ;;  %v458_v3 = vld [vmem:[%s651_s0 + $0x10] sm:$0xff]   ;;  %v460_v4 = vld [vmem:[%s651_s0 + $0x20] sm:$0xff]   ;;  %v382_v6 = vld [vmem:[%s650_s1 + $0x28] sm:$0xff]  ;;  %v387_v7 = vunpack.c.l.bf16 %v386_v2  ;;  %v388_v9 = vunpack.c.h.bf16 %v386_v2 }
   0x3   :  { %472 = vmatpush.bf16.msra.mxu2 %v384_v0  ;;  %473 = vmatpush.bf16.msra.mxu3 %v384_v0  ;;  %v462_v5 = vld [vmem:[%s651_s0 + $0x30] sm:$0xff]   ;;  %v551_v8 = vld [vmem:[%s652_s2] ss:$0 sm:$0xff]  ;;  %v395_v10 = vunpack.c.l.bf16 %v458_v3  ;;  %v396_v11 = vunpack.c.h.bf16 %v458_v3  ;;  %v403_v12 = vunpack.c.l.bf16 %v460_v4  ;;  %v404_v13 = vunpack.c.h.bf16 %v460_v4  ;;  %v380_v26 = vld [vmem:[%s650_s1 + $0x18] sm:$0xff] }
   0x4   :  { %v411_v14 = vunpack.c.l.bf16 %v462_v5  ;;  %v412_v15 = vunpack.c.h.bf16 %v462_v5  ;;  %v381_v16 = vld [vmem:[%s650_s1 + $0x20] sm:$0xff]  ;;  %v55_v17 = vmul.f32 %v551_v8, %v387_v7  ;;  %v56_v19 = vmul.f32 %v551_v8, %v388_v9  ;;  %v379_v35 = vld [vmem:[%s650_s1 + $0x10] sm:$0xff]  ;;  %v457_v37 = vld [vmem:[%s651_s0 + $0x8] sm:$0xff]  }
   0x5   :  { %v560_v18 = vld [vmem:[%s653_s3] ss:$0 sm:$0xff]  ;;  %v59_v20 = vmul.f32 %v551_v8, %v395_v10  ;;  %v60_v21 = vmul.f32 %v551_v8, %v396_v11  ;;  %v63_v22 = vmul.f32 %v551_v8, %v403_v12  ;;  %v64_v23 = vmul.f32 %v551_v8, %v404_v13  ;;  %v378_v45 = vld [vmem:[%s650_s1 + $0x8] sm:$0xff]  ;;  %v459_v47 = vld [vmem:[%s651_s0 + $0x18] sm:$0xff]  }
   0x6   :  { %196 = vmatpush.bf16.msra.mxu0 %v383_v1  ;;  %474 = vmatpush.bf16.msra.mxu1 %v383_v1  ;;  %v67_v24 = vmul.f32 %v551_v8, %v411_v14  ;;  %v68_v25 = vmul.f32 %v551_v8, %v412_v15  ;;  %v75_v27 = vadd.f32 %v560_v18, %v55_v17  ;;  %v391_v46 = vunpack.c.l.bf16 %v457_v37  ;;  %v461_v48 = vld [vmem:[%s651_s0 + $0x28] sm:$0xff]   ;;  %v463_v53 = vld [vmem:[%s651_s0 + $0x38] sm:$0xff]   ;;  %v377_v62 = vld [vmem:[%s650_s1] sm:$0xff] }
   0x7   :  { %475 = vmatpush.bf16.msra.mxu2 %v383_v1  ;;  %476 = vmatpush.bf16.msra.mxu3 %v383_v1  ;;  %v76_v28 = vadd.f32 %v560_v18, %v56_v19  ;;  %v79_v29 = vadd.f32 %v560_v18, %v59_v20  ;;  %v80_v30 = vadd.f32 %v560_v18, %v60_v21  ;;  %v392_v52 = vunpack.c.h.bf16 %v457_v37 }
   0x8   :  { %v83_v31 = vadd.f32 %v560_v18, %v63_v22  ;;  %v84_v32 = vadd.f32 %v560_v18, %v64_v23  ;;  %v87_v33 = vadd.f32 %v560_v18, %v67_v24  ;;  %v88_v34 = vadd.f32 %v560_v18, %v68_v25 }
   0x9   :  { %v91_v36 = vmul.f32 0.2, %v75_v27  ;;  %v92_v38 = vmul.f32 0.2, %v76_v28  ;;  %v95_v39 = vmul.f32 0.2, %v79_v29  ;;  %v399_v59 = vunpack.c.l.bf16 %v459_v47 }
   0xa   :  { %197 = vmatpush.bf16.msra.mxu0 %v382_v6  ;;  %477 = vmatpush.bf16.msra.mxu1 %v382_v6  ;;  %v96_v40 = vmul.f32 0.2, %v80_v30  ;;  %v99_v41 = vmul.f32 0.2, %v83_v31  ;;  %v100_v42 = vmul.f32 0.2, %v84_v32  ;;  %v400_v60 = vunpack.c.h.bf16 %v459_v47 }
   0xb   :  { %478 = vmatpush.bf16.msra.mxu2 %v382_v6  ;;  %479 = vmatpush.bf16.msra.mxu3 %v382_v6  ;;  %v103_v43 = vmul.f32 0.2, %v87_v33  ;;  %v104_v44 = vmul.f32 0.2, %v88_v34  ;;  %v107_v49 = vmax.f32 %v75_v27, %v91_v36  ;;  %v108_v50 = vmax.f32 %v76_v28, %v92_v38 }
   0xc   :  { %v111_v51 = vmax.f32 %v79_v29, %v95_v39  ;;  %v112_v54 = vmax.f32 %v80_v30, %v96_v40  ;;  %v115_v55 = vmax.f32 %v83_v31, %v99_v41  ;;  %v116_v56 = vmax.f32 %v84_v32, %v100_v42 }
   0xd   :  { %v119_v57 = vmax.f32 %v87_v33, %v103_v43  ;;  %v120_v58 = vmax.f32 %v88_v34, %v104_v44  ;;  %v407_v61 = vunpack.c.l.bf16 %v461_v48  ;;  %v408_v63 = vunpack.c.h.bf16 %v461_v48 }
   0xe   :  { %198 = vmatpush.bf16.msra.mxu0 %v381_v16  ;;  %480 = vmatpush.bf16.msra.mxu1 %v381_v16  ;;  %v415_v0 = vunpack.c.l.bf16 %v463_v53  ;;  %v416_v1 = vunpack.c.h.bf16 %v463_v53  ;;  %v123_v2 = vpack.c.bf16 %v108_v50, %v107_v49  ;;  %v125_v3 = vpack.c.bf16 %v112_v54, %v111_v51 }
   0xf   :  { %481 = vmatpush.bf16.msra.mxu2 %v381_v16  ;;  %482 = vmatpush.bf16.msra.mxu3 %v381_v16  ;;  %v127_v4 = vpack.c.bf16 %v116_v56, %v115_v55  ;;  %v57_v5 = vmul.f32 %v551_v8, %v391_v46  ;;  %v58_v6 = vmul.f32 %v551_v8, %v392_v52 }
  0x10   :  { %v129_v7 = vpack.c.bf16 %v120_v58, %v119_v57  ;;  %v61_v9 = vmul.f32 %v551_v8, %v399_v59  ;;  %v62_v10 = vmul.f32 %v551_v8, %v400_v60  ;;  %v65_v11 = vmul.f32 %v551_v8, %v407_v61 }
  0x11   :  { %v66_v12 = vmul.f32 %v551_v8, %v408_v63  ;;  %v69_v13 = vmul.f32 %v551_v8, %v415_v0  ;;  %v70_v14 = vmul.f32 %v551_v8, %v416_v1  ;;  %v77_v15 = vadd.f32 %v560_v18, %v57_v5 }
  0x12   :  { %199 = vmatpush.bf16.msra.mxu0 %v380_v26  ;;  %483 = vmatpush.bf16.msra.mxu1 %v380_v26  ;;  %v78_v16 = vadd.f32 %v560_v18, %v58_v6  ;;  %v81_v17 = vadd.f32 %v560_v18, %v61_v9  ;;  %v82_v19 = vadd.f32 %v560_v18, %v62_v10 }
  0x13   :  { %484 = vmatpush.bf16.msra.mxu2 %v380_v26  ;;  %485 = vmatpush.bf16.msra.mxu3 %v380_v26  ;;  %v85_v20 = vadd.f32 %v560_v18, %v65_v11  ;;  %v86_v21 = vadd.f32 %v560_v18, %v66_v12  ;;  %v89_v8 = vadd.f32 %v560_v18, %v69_v13  ;;  %v93_v23 = vmul.f32 0.2, %v77_v15 }
  0x14   :  { %v90_v22 = vadd.f32 %v560_v18, %v70_v14  ;;  %v94_v24 = vmul.f32 0.2, %v78_v16  ;;  %v97_v25 = vmul.f32 0.2, %v81_v17  ;;  %v98_v26 = vmul.f32 0.2, %v82_v19 }
  0x15   :  { %v101_v27 = vmul.f32 0.2, %v85_v20  ;;  %v102_v28 = vmul.f32 0.2, %v86_v21  ;;  %v105_v29 = vmul.f32 0.2, %v89_v8  ;;  %v109_v31 = vmax.f32 %v77_v15, %v93_v23 }
  0x16   :  { %200 = vmatpush.bf16.msra.mxu0 %v379_v35  ;;  %486 = vmatpush.bf16.msra.mxu1 %v379_v35  ;;  %v106_v30 = vmul.f32 0.2, %v90_v22  ;;  %v110_v32 = vmax.f32 %v78_v16, %v94_v24  ;;  %v113_v33 = vmax.f32 %v81_v17, %v97_v25  ;;  %v114_v34 = vmax.f32 %v82_v19, %v98_v26 }
  0x17   :  { %487 = vmatpush.bf16.msra.mxu2 %v379_v35  ;;  %488 = vmatpush.bf16.msra.mxu3 %v379_v35  ;;  %v117_v35 = vmax.f32 %v85_v20, %v101_v27  ;;  %v118_v36 = vmax.f32 %v86_v21, %v102_v28  ;;  %v121_v37 = vmax.f32 %v89_v8, %v105_v29 }
  0x18   :  { %v122_v38 = vmax.f32 %v90_v22, %v106_v30  ;;  %v124_v39 = vpack.c.bf16 %v110_v32, %v109_v31  ;;  %v126_v40 = vpack.c.bf16 %v114_v34, %v113_v33 }
  0x19   :  { %v128_v41 = vpack.c.bf16 %v118_v36, %v117_v35 }
  0x1a   :  { %201 = vmatpush.bf16.msra.mxu0 %v378_v45  ;;  %489 = vmatpush.bf16.msra.mxu1 %v378_v45  ;;  %v130_v18 = vpack.c.bf16 %v122_v38, %v121_v37 }
  0x1b   :  { %490 = vmatpush.bf16.msra.mxu2 %v378_v45  ;;  %491 = vmatpush.bf16.msra.mxu3 %v378_v45 }
  0x1e   :  { %202 = vmatpush.bf16.msra.mxu0 %v377_v62  ;;  %492 = vmatpush.bf16.msra.mxu1 %v377_v62 }
  0x1f   :  { %493 = vmatpush.bf16.msra.mxu2 %v377_v62  ;;  %494 = vmatpush.bf16.msra.mxu3 %v377_v62 }
  0x21   :  { %203 = vmatmul.bf16.vlgmr.msra.gmra.mxu0 %v123_v2  ;;  %213 = vmatmul.bf16.vlgmr.msra.gmra.mxu1 %v125_v3 }
  0x22   :  { %223 = vmatmul.bf16.vlgmr.msra.gmra.mxu2 %v127_v4  ;;  %233 = vmatmul.bf16.vlgmr.msra.gmra.mxu3 %v129_v7 }
  0x31   :  { %208 = vmatmul.bf16.gmra.mxu0 %v124_v39  ;;  %218 = vmatmul.bf16.gmra.mxu1 %v126_v40 }
  0x32   :  { %228 = vmatmul.bf16.gmra.mxu2 %v128_v41  ;;  %238 = vmatmul.bf16.gmra.mxu3 %v130_v18 }
  0x9e   :  { %v204_v42 = vpop.f32.mrf.mxu0  ;;  %v214_v43 = vpop.f32.mrf.mxu1 }
  0x9f   :  { %v265_v57 = vmul.f32 %v204_v42, %v204_v42  ;;  %v269_v7 = vmul.f32 %v214_v43, %v214_v43 }
  0xa5   :  { %v224_v44 = vpop.f32.mrf.mxu2  ;;  %v617_v45 = vpop.f32.mrf.mxu3 }
  0xa6   :  { %v206_v46 = vpop.f32.mrf.mxu0  ;;  %v216_v47 = vpop.f32.mrf.mxu1  ;;  %v273_v24 = vmul.f32 %v224_v44, %v224_v44  ;;  %v277_v36 = vmul.f32 %v617_v45, %v617_v45 }
  0xa7   :  { %v420_v48 = vpack.c.bf16 %v206_v46, %v204_v42  ;;  %v430_v49 = vpack.c.bf16 %v216_v47, %v214_v43  ;;  %v266_v56 = vmul.f32 %v206_v46, %v206_v46  ;;  %v244_v58 = vadd.f32 %v206_v46, %v204_v42 }
  0xa8   :  { %v270_v11 = vmul.f32 %v216_v47, %v216_v47 }
  0xa9   :  { %421 = vst [vmem:[%s654_s4] sm:$0xff] %v420_v48   ;;  %v281_v60 = vadd.f32 %v266_v56, %v265_v57 }
  0xaa   :  { %465 = vst [vmem:[%s654_s4 + $0x10] sm:$0xff] %v430_v49  }
  0xad   :  { %v226_v50 = vpop.f32.mrf.mxu2  ;;  %v236_v51 = vpop.f32.mrf.mxu3 }
  0xae   :  { %v209_v52 = vpop.f32.mrf.mxu0  ;;  %v219_v53 = vpop.f32.mrf.mxu1  ;;  %v440_v54 = vpack.c.bf16 %v226_v50, %v224_v44  ;;  %v450_v55 = vpack.c.bf16 %v236_v51, %v617_v45  ;;  %v274_v27 = vmul.f32 %v226_v50, %v226_v50  ;;  %v278_v39 = vmul.f32 %v236_v51, %v236_v51 }
  0xaf   :  { %v267_v59 = vmul.f32 %v209_v52, %v209_v52  ;;  %v245_v61 = vadd.f32 %v244_v58, %v209_v52  ;;  %v271_v14 = vmul.f32 %v219_v53, %v219_v53 }
  0xb0   :  { %467 = vst [vmem:[%s654_s4 + $0x20] sm:$0xff] %v440_v54  }
  0xb1   :  { %469 = vst [vmem:[%s654_s4 + $0x30] sm:$0xff] %v450_v55   ;;  %v282_v2 = vadd.f32 %v281_v60, %v267_v59 }
  0xb5   :  { %v229_v62 = vpop.f32.mrf.mxu2  ;;  %v239_v63 = vpop.f32.mrf.mxu3 }
  0xb6   :  { %v211_v0 = vpop.f32.mrf.mxu0  ;;  %v221_v1 = vpop.f32.mrf.mxu1  ;;  %v275_v31 = vmul.f32 %v229_v62, %v229_v62  ;;  %v279_v42 = vmul.f32 %v239_v63, %v239_v63 }
  0xb7   :  { %v246_v3 = vadd.f32 %v245_v61, %v211_v0  ;;  %v268_v4 = vmul.f32 %v211_v0, %v211_v0  ;;  %v425_v5 = vpack.c.bf16 %v211_v0, %v209_v52  ;;  %v435_v6 = vpack.c.bf16 %v221_v1, %v219_v53 }
  0xb8   :  { %v272_v22 = vmul.f32 %v221_v1, %v221_v1 }
  0xb9   :  { %v247_v9 = vadd.f32 %v246_v3, %v214_v43  ;;  %v283_v10 = vadd.f32 %v282_v2, %v268_v4  ;;  %464 = vst [vmem:[%s654_s4 + $0x8] sm:$0xff] %v425_v5  }
  0xba   :  { %466 = vst [vmem:[%s654_s4 + $0x18] sm:$0xff] %v435_v6  }
  0xbb   :  { %v284_v12 = vadd.f32 %v283_v10, %v269_v7  ;;  %v248_v13 = vadd.f32 %v247_v9, %v216_v47 }
  0xbd   :  { %v249_v15 = vadd.f32 %v248_v13, %v219_v53  ;;  %v285_v16 = vadd.f32 %v284_v12, %v270_v11  ;;  %v231_v17 = vpop.f32.mrf.mxu2  ;;  %v241_v19 = vpop.f32.mrf.mxu3 }
  0xbe   :  { %v445_v20 = vpack.c.bf16 %v231_v17, %v229_v62  ;;  %v455_v21 = vpack.c.bf16 %v241_v19, %v239_v63  ;;  %v276_v35 = vmul.f32 %v231_v17, %v231_v17  ;;  %v280_v47 = vmul.f32 %v241_v19, %v241_v19 }
  0xbf   :  { %v250_v8 = vadd.f32 %v249_v15, %v221_v1  ;;  %v286_v23 = vadd.f32 %v285_v16, %v271_v14 }
  0xc0   :  { %468 = vst [vmem:[%s654_s4 + $0x28] sm:$0xff] %v445_v20  }
  0xc1   :  { %v251_v25 = vadd.f32 %v250_v8, %v224_v44  ;;  %v287_v26 = vadd.f32 %v286_v23, %v272_v22  ;;  %470 = vst [vmem:[%s654_s4 + $0x38] sm:$0xff] %v455_v21  }
  0xc3   :  { %v288_v28 = vadd.f32 %v287_v26, %v273_v24  ;;  %v252_v29 = vadd.f32 %v251_v25, %v226_v50 }
  0xc5   :  { %v253_v30 = vadd.f32 %v252_v29, %v229_v62  ;;  %v289_v32 = vadd.f32 %v288_v28, %v274_v27 }
  0xc7   :  { %v290_v33 = vadd.f32 %v289_v32, %v275_v31  ;;  %v254_v34 = vadd.f32 %v253_v30, %v231_v17 }
  0xc9   :  { %v255_v37 = vadd.f32 %v254_v34, %v617_v45  ;;  %v291_v38 = vadd.f32 %v290_v33, %v276_v35 }
  0xcb   :  { %v292_v40 = vadd.f32 %v291_v38, %v277_v36  ;;  %v256_v41 = vadd.f32 %v255_v37, %v236_v51 }
  0xcd   :  { %v257_v18 = vadd.f32 %v256_v41, %v239_v63  ;;  %v293_v43 = vadd.f32 %v292_v40, %v278_v39 }
  0xcf   :  { %v294_v44 = vadd.f32 %v293_v43, %v279_v42  ;;  %v258_v46 = vadd.f32 %v257_v18, %v241_v19 }
  0xd1   :  { %v259_v48 = vrot.slane %v258_v46, 4  ;;  %v295_v49 = vadd.f32 %v294_v44, %v280_v47 }
  0xd3   :  { %v260_v50 = vadd.f32 %v259_v48, %v258_v46  ;;  %v296_v52 = vrot.slane %v295_v49, 4 }
  0xd5   :  { %v261_v53 = vrot.slane %v260_v50, 2  ;;  %v297_v54 = vadd.f32 %v296_v52, %v295_v49 }
  0xd7   :  { %v262_v55 = vadd.f32 %v261_v53, %v260_v50  ;;  %v298_v56 = vrot.slane %v297_v54, 2 }
  0xd9   :  { %v263_v57 = vrot.slane %v262_v55, 1  ;;  %v299_v45 = vadd.f32 %v298_v56, %v297_v54 }
  0xdb   :  { %v300_v58 = vrot.slane %v299_v45, 1  ;;  %v264_v59 = vadd.f32 %v263_v57, %v262_v55 }
  0xdd   :  { %v301_v51 = vadd.f32 %v300_v58, %v299_v45 }
  0xdf   :  { %v303_v60 = vsel %vm302_vm0, %v264_v59, %v301_v51 }
  0xe0   :  { %304 = vst [vmem:[%s655_s5] sm:$0x3] %v303_v60 }

// kernel: discriminator_forward.8
= control target key start
LH: loop header
LB: loop body
LE: loop exit
PB: predicated region body
PF: predicated region fallthrough
CT: control target
= control target key end

     0   :  { %vm267_vm0 = vcmask 1040384   ;;  %s498_s1 = inlined_call_operand.vmem [shape: bf16[256,128], index: 1, kind: input, shape index: {}]   ;;  %s499_s0 = inlined_call_operand.vmem [shape: bf16[32,256], index: 0, kind: input, shape index: {}]   ;;  %s500_s2 = inlined_call_operand.vmem [shape: f32[1,256], index: 2, kind: input, shape index: {}]   ;;  %s501_s3 = inlined_call_operand.vmem [shape: f32[1,256], index: 3, kind: input, shape index: {}]   ;;  %s502_s4 = inlined_call_operand.vmem [shape: bf16[32,128], index: 4, kind: output, shape index: {0}]   ;;  %s503_s5 = inlined_call_operand.vmem [shape: f32[1,2,128], index: 5, kind: output, shape index: {1}]  }
   0x1   :  { %v357_v0 = vld [vmem:[%s498_s1 + $0x38] sm:$0xff]  ;;  %v356_v2 = vld [vmem:[%s498_s1 + $0x30] sm:$0xff]  ;;  %v19_v4 = vld [vmem:[%s499_s0] sm:$0xff] }
   0x2   :  { %v365_v1 = vld [vmem:[%s498_s1 + $0x78] sm:$0xff]  ;;  %207 = vmatpush.bf16.msra.mxu0 %v357_v0  ;;  %377 = vmatpush.bf16.msra.mxu2 %v357_v0  ;;  %v364_v3 = vld [vmem:[%s498_s1 + $0x70] sm:$0xff]  ;;  %v20_v5 = vld [vmem:[%s499_s0 + $0x8] sm:$0xff]  ;;  %v23_v11 = vunpack.c.l.bf16 %v19_v4  ;;  %v24_v17 = vunpack.c.h.bf16 %v19_v4 }
   0x3   :  { %226 = vmatpush.bf16.msra.mxu1 %v365_v1  ;;  %385 = vmatpush.bf16.msra.mxu3 %v365_v1  ;;  %v355_v6 = vld [vmem:[%s498_s1 + $0x28] sm:$0xff]  ;;  %v31_v7 = vld [vmem:[%s500_s2] sm:$0x3]  ;;  %v21_v8 = vld [vmem:[%s499_s0 + $0x10] sm:$0xff]  ;;  %v25_v12 = vunpack.c.l.bf16 %v20_v5  ;;  %v26_v20 = vunpack.c.h.bf16 %v20_v5 }
   0x4   :  { %v363_v9 = vld [vmem:[%s498_s1 + $0x68] sm:$0xff]  ;;  %v22_v10 = vld [vmem:[%s499_s0 + $0x18] sm:$0xff]  ;;  %v33_v13 = vperm.slane %v31_v7, 0  ;;  %v45_v14 = vld [vmem:[%s501_s3] sm:$0x3]  ;;  %v27_v15 = vunpack.c.l.bf16 %v21_v8  ;;  %v34_v18 = vperm.slane %v31_v7, 1  ;;  %v28_v21 = vunpack.c.h.bf16 %v21_v8 }
   0x5   :  { %v29_v16 = vunpack.c.l.bf16 %v22_v10  ;;  %v354_v19 = vld [vmem:[%s498_s1 + $0x20] sm:$0xff]  ;;  %v30_v22 = vunpack.c.h.bf16 %v22_v10  ;;  %v47_v26 = vperm.slane %v45_v14, 0  ;;  %v48_v30 = vperm.slane %v45_v14, 1  ;;  %v353_v31 = vld [vmem:[%s498_s1 + $0x18] sm:$0xff]  ;;  %v352_v41 = vld [vmem:[%s498_s1 + $0x10] sm:$0xff] }
   0x6   :  { %208 = vmatpush.bf16.msra.mxu0 %v356_v2  ;;  %378 = vmatpush.bf16.msra.mxu2 %v356_v2  ;;  %v362_v23 = vld [vmem:[%s498_s1 + $0x60] sm:$0xff]  ;;  %v37_v24 = vmul.f32 %v33_v13, %v23_v11  ;;  %v39_v25 = vmul.f32 %v33_v13, %v25_v12  ;;  %v41_v27 = vmul.f32 %v33_v13, %v27_v15  ;;  %v361_v35 = vld [vmem:[%s498_s1 + $0x58] sm:$0xff]  ;;  %v360_v45 = vld [vmem:[%s498_s1 + $0x50] sm:$0xff] }
   0x7   :  { %227 = vmatpush.bf16.msra.mxu1 %v364_v3  ;;  %386 = vmatpush.bf16.msra.mxu3 %v364_v3  ;;  %v43_v28 = vmul.f32 %v33_v13, %v29_v16  ;;  %v38_v29 = vmul.f32 %v34_v18, %v24_v17  ;;  %v40_v32 = vmul.f32 %v34_v18, %v26_v20  ;;  %v351_v46 = vld [vmem:[%s498_s1 + $0x8] sm:$0xff]  ;;  %v350_v61 = vld [vmem:[%s498_s1] sm:$0xff] }
   0x8   :  { %v42_v33 = vmul.f32 %v34_v18, %v28_v21  ;;  %v44_v34 = vmul.f32 %v34_v18, %v30_v22  ;;  %v51_v36 = vadd.f32 %v47_v26, %v37_v24  ;;  %v53_v37 = vadd.f32 %v47_v26, %v39_v25  ;;  %v359_v55 = vld [vmem:[%s498_s1 + $0x48] sm:$0xff]  ;;  %v358_v1 = vld [vmem:[%s498_s1 + $0x40] sm:$0xff] }
   0x9   :  { %v55_v38 = vadd.f32 %v47_v26, %v41_v27  ;;  %v57_v39 = vadd.f32 %v47_v26, %v43_v28  ;;  %v52_v40 = vadd.f32 %v48_v30, %v38_v29  ;;  %v54_v42 = vadd.f32 %v48_v30, %v40_v32 }
   0xa   :  { %209 = vmatpush.bf16.msra.mxu0 %v355_v6  ;;  %379 = vmatpush.bf16.msra.mxu2 %v355_v6  ;;  %v56_v43 = vadd.f32 %v48_v30, %v42_v33  ;;  %v58_v44 = vadd.f32 %v48_v30, %v44_v34  ;;  %v59_v47 = vmul.f32 0.2, %v51_v36  ;;  %v61_v48 = vmul.f32 0.2, %v53_v37 }
   0xb   :  { %228 = vmatpush.bf16.msra.mxu1 %v363_v9  ;;  %387 = vmatpush.bf16.msra.mxu3 %v363_v9  ;;  %v63_v49 = vmul.f32 0.2, %v55_v38  ;;  %v65_v50 = vmul.f32 0.2, %v57_v39  ;;  %v60_v51 = vmul.f32 0.2, %v52_v40 }
   0xc   :  { %v62_v52 = vmul.f32 0.2, %v54_v42  ;;  %v64_v53 = vmul.f32 0.2, %v56_v43  ;;  %v66_v54 = vmul.f32 0.2, %v58_v44  ;;  %v67_v56 = vmax.f32 %v51_v36, %v59_v47 }
   0xd   :  { %v69_v57 = vmax.f32 %v53_v37, %v61_v48  ;;  %v71_v58 = vmax.f32 %v55_v38, %v63_v49  ;;  %v73_v59 = vmax.f32 %v57_v39, %v65_v50  ;;  %v68_v60 = vmax.f32 %v52_v40, %v60_v51 }
   0xe   :  { %210 = vmatpush.bf16.msra.mxu0 %v354_v19  ;;  %380 = vmatpush.bf16.msra.mxu2 %v354_v19  ;;  %v70_v62 = vmax.f32 %v54_v42, %v62_v52  ;;  %v72_v63 = vmax.f32 %v56_v43, %v64_v53  ;;  %v74_v0 = vmax.f32 %v58_v44, %v66_v54 }
   0xf   :  { %229 = vmatpush.bf16.msra.mxu1 %v362_v23  ;;  %388 = vmatpush.bf16.msra.mxu3 %v362_v23  ;;  %v75_v2 = vpack.c.bf16 %v69_v57, %v67_v56  ;;  %v77_v3 = vpack.c.bf16 %v73_v59, %v71_v58 }
  0x10   :  { %v76_v4 = vpack.c.bf16 %v70_v62, %v68_v60  ;;  %v78_v5 = vpack.c.bf16 %v74_v0, %v72_v63 }
  0x12   :  { %211 = vmatpush.bf16.msra.mxu0 %v353_v31  ;;  %381 = vmatpush.bf16.msra.mxu2 %v353_v31 }
  0x13   :  { %230 = vmatpush.bf16.msra.mxu1 %v361_v35  ;;  %389 = vmatpush.bf16.msra.mxu3 %v361_v35 }
  0x16   :  { %212 = vmatpush.bf16.msra.mxu0 %v352_v41  ;;  %382 = vmatpush.bf16.msra.mxu2 %v352_v41 }
  0x17   :  { %231 = vmatpush.bf16.msra.mxu1 %v360_v45  ;;  %390 = vmatpush.bf16.msra.mxu3 %v360_v45 }
  0x1a   :  { %213 = vmatpush.bf16.msra.mxu0 %v351_v46  ;;  %383 = vmatpush.bf16.msra.mxu2 %v351_v46 }
  0x1b   :  { %232 = vmatpush.bf16.msra.mxu1 %v359_v55  ;;  %391 = vmatpush.bf16.msra.mxu3 %v359_v55 }
  0x1e   :  { %214 = vmatpush.bf16.msra.mxu0 %v350_v61  ;;  %384 = vmatpush.bf16.msra.mxu2 %v350_v61 }
  0x1f   :  { %233 = vmatpush.bf16.msra.mxu1 %v358_v1  ;;  %392 = vmatpush.bf16.msra.mxu3 %v358_v1 }
  0x21   :  { %215 = vmatmul.bf16.vlgmr.msra.gmra.mxu0 %v75_v2  ;;  %220 = vmatmul.bf16.vlgmr.msra.gmra.mxu2 %v77_v3 }
  0x22   :  { %234 = vmatmul.bf16.vlgmr.msra.gmra.mxu1 %v76_v4  ;;  %239 = vmatmul.bf16.vlgmr.msra.gmra.mxu3 %v78_v5 }
  0x9e   :  { %v216_v6 = vpop.f32.mrf.mxu0 }
  0x9f   :  { %v235_v7 = vpop.f32.mrf.mxu1 }
  0xa0   :  { %v236_v9 = vadd.f32 %v235_v7, %v216_v6 }
  0xa2   :  { %v254_v14 = vmul.f32 %v236_v9, %v236_v9 }
  0xa4   :  { %v221_v8 = vpop.f32.mrf.mxu2 }
  0xa5   :  { %v240_v10 = vpop.f32.mrf.mxu3 }
  0xa6   :  { %v218_v11 = vpop.f32.mrf.mxu0  ;;  %v241_v15 = vadd.f32 %v240_v10, %v221_v8 }
  0xa7   :  { %v237_v12 = vpop.f32.mrf.mxu1 }
  0xa8   :  { %v238_v13 = vadd.f32 %v237_v12, %v218_v11  ;;  %v256_v22 = vmul.f32 %v241_v15, %v241_v15 }
  0xaa   :  { %v245_v16 = vadd.f32 %v238_v13, %v236_v9  ;;  %v255_v17 = vmul.f32 %v238_v13, %v238_v13  ;;  %v369_v18 = vpack.c.bf16 %v238_v13, %v236_v9 }
  0xac   :  { %v258_v19 = vadd.f32 %v255_v17, %v254_v14  ;;  %370 = vst [vmem:[%s502_s4] sm:$0xff] %v369_v18   ;;  %v223_v20 = vpop.f32.mrf.mxu2  ;;  %v246_v24 = vadd.f32 %v245_v16, %v241_v15 }
  0xad   :  { %v242_v21 = vpop.f32.mrf.mxu3 }
  0xae   :  { %v243_v23 = vadd.f32 %v242_v21, %v223_v20  ;;  %v259_v27 = vadd.f32 %v258_v19, %v256_v22 }
  0xb0   :  { %v247_v25 = vadd.f32 %v246_v24, %v243_v23  ;;  %v257_v26 = vmul.f32 %v243_v23, %v243_v23  ;;  %v374_v28 = vpack.c.bf16 %v243_v23, %v241_v15 }
  0xb2   :  { %v248_v29 = vrot.slane %v247_v25, 4  ;;  %v260_v30 = vadd.f32 %v259_v27, %v257_v26  ;;  %376 = vst [vmem:[%s502_s4 + $0x8] sm:$0xff] %v374_v28  }
  0xb4   :  { %v249_v31 = vadd.f32 %v248_v29, %v247_v25  ;;  %v261_v32 = vrot.slane %v260_v30, 4 }
  0xb6   :  { %v250_v33 = vrot.slane %v249_v31, 2  ;;  %v262_v34 = vadd.f32 %v261_v32, %v260_v30 }
  0xb8   :  { %v251_v35 = vadd.f32 %v250_v33, %v249_v31  ;;  %v263_v36 = vrot.slane %v262_v34, 2 }
  0xba   :  { %v252_v37 = vrot.slane %v251_v35, 1  ;;  %v264_v38 = vadd.f32 %v263_v36, %v262_v34 }
  0xbc   :  { %v265_v39 = vrot.slane %v264_v38, 1  ;;  %v253_v40 = vadd.f32 %v252_v37, %v251_v35 }
  0xbe   :  { %v266_v41 = vadd.f32 %v265_v39, %v264_v38 }
  0xc0   :  { %v268_v42 = vsel %vm267_vm0, %v253_v40, %v266_v41 }
  0xc1   :  { %269 = vst [vmem:[%s503_s5] sm:$0x3] %v268_v42 }

// kernel: discriminator_forward.9
= control target key start
LH: loop header
LB: loop body
LE: loop exit
PB: predicated region body
PF: predicated region fallthrough
CT: control target
= control target key end

     0   :  { %s696_s1 = inlined_call_operand.vmem [shape: bf16[512,128], index: 1, kind: input, shape index: {}]   ;;  %s697_s0 = inlined_call_operand.vmem [shape: bf16[8,512], index: 0, kind: input, shape index: {}]   ;;  %s698_s2 = inlined_call_operand.vmem [shape: f32[1,512], index: 2, kind: input, shape index: {}]   ;;  %s699_s3 = inlined_call_operand.vmem [shape: f32[1,512], index: 3, kind: input, shape index: {}]   ;;  %s700_s4 = inlined_call_operand.vmem [shape: f32[8,128], index: 4, kind: output, shape index: {}]  }
   0x1   :  { %v531_v0 = vld [vmem:[%s696_s1 + $0x38] sm:$0xff]  ;;  %v530_v4 = vld [vmem:[%s696_s1 + $0x30] sm:$0xff]  ;;  %v529_v8 = vld [vmem:[%s696_s1 + $0x28] sm:$0xff] }
   0x2   :  { %v539_v1 = vld [vmem:[%s696_s1 + $0x78] sm:$0xff]  ;;  %319 = vmatpush.bf16.msra.mxu0 %v531_v0  ;;  %v538_v5 = vld [vmem:[%s696_s1 + $0x70] sm:$0xff]  ;;  %v537_v9 = vld [vmem:[%s696_s1 + $0x68] sm:$0xff] }
   0x3   :  { %v547_v2 = vld [vmem:[%s696_s1 + $0xb8] sm:$0xff]  ;;  %332 = vmatpush.bf16.msra.mxu1 %v539_v1  ;;  %v546_v6 = vld [vmem:[%s696_s1 + $0xb0] sm:$0xff]  ;;  %v545_v10 = vld [vmem:[%s696_s1 + $0xa8] sm:$0xff] }
   0x4   :  { %v555_v3 = vld [vmem:[%s696_s1 + $0xf8] sm:$0xff]  ;;  %345 = vmatpush.bf16.msra.mxu2 %v547_v2  ;;  %v554_v7 = vld [vmem:[%s696_s1 + $0xf0] sm:$0xff]  ;;  %v553_v11 = vld [vmem:[%s696_s1 + $0xe8] sm:$0xff] }
   0x5   :  { %358 = vmatpush.bf16.msra.mxu3 %v555_v3  ;;  %v528_v12 = vld [vmem:[%s696_s1 + $0x20] sm:$0xff]  ;;  %v18_v21 = vld [vmem:[%s697_s0 + $0x8] sm:$0xff]  ;;  %v527_v30 = vld [vmem:[%s696_s1 + $0x18] sm:$0xff] }
   0x6   :  { %320 = vmatpush.bf16.msra.mxu0 %v530_v4  ;;  %v536_v13 = vld [vmem:[%s696_s1 + $0x60] sm:$0xff]  ;;  %v21_v26 = vunpack.c.l.bf16 %v18_v21  ;;  %v22_v29 = vunpack.c.h.bf16 %v18_v21  ;;  %v535_v31 = vld [vmem:[%s696_s1 + $0x58] sm:$0xff]  ;;  %v526_v42 = vld [vmem:[%s696_s1 + $0x10] sm:$0xff] }
   0x7   :  { %333 = vmatpush.bf16.msra.mxu1 %v538_v5  ;;  %v544_v14 = vld [vmem:[%s696_s1 + $0xa0] sm:$0xff]  ;;  %v543_v36 = vld [vmem:[%s696_s1 + $0x98] sm:$0xff]  ;;  %v534_v43 = vld [vmem:[%s696_s1 + $0x50] sm:$0xff] }
   0x8   :  { %346 = vmatpush.bf16.msra.mxu2 %v546_v6  ;;  %v552_v15 = vld [vmem:[%s696_s1 + $0xe0] sm:$0xff]  ;;  %v551_v37 = vld [vmem:[%s696_s1 + $0xd8] sm:$0xff]  ;;  %v542_v46 = vld [vmem:[%s696_s1 + $0x90] sm:$0xff] }
   0x9   :  { %359 = vmatpush.bf16.msra.mxu3 %v554_v7  ;;  %v17_v16 = vld [vmem:[%s697_s0] sm:$0xff]  ;;  %v550_v47 = vld [vmem:[%s696_s1 + $0xd0] sm:$0xff]  ;;  %v525_v50 = vld [vmem:[%s696_s1 + $0x8] sm:$0xff] }
   0xa   :  { %321 = vmatpush.bf16.msra.mxu0 %v529_v8  ;;  %v19_v17 = vunpack.c.l.bf16 %v17_v16  ;;  %v23_v18 = vld [vmem:[%s698_s2] sm:$0xf]  ;;  %v20_v20 = vunpack.c.h.bf16 %v17_v16  ;;  %v533_v51 = vld [vmem:[%s696_s1 + $0x48] sm:$0xff] }
   0xb   :  { %334 = vmatpush.bf16.msra.mxu1 %v537_v9  ;;  %v37_v19 = vld [vmem:[%s699_s3] sm:$0xf]  ;;  %v25_v22 = vperm.slane %v23_v18, 0  ;;  %v26_v24 = vperm.slane %v23_v18, 1  ;;  %v27_v27 = vperm.slane %v23_v18, 2  ;;  %v28_v34 = vperm.slane %v23_v18, 3 }
   0xc   :  { %347 = vmatpush.bf16.msra.mxu2 %v545_v10  ;;  %v39_v23 = vperm.slane %v37_v19, 0  ;;  %v40_v25 = vperm.slane %v37_v19, 1  ;;  %v41_v28 = vperm.slane %v37_v19, 2  ;;  %v42_v35 = vperm.slane %v37_v19, 3  ;;  %v541_v54 = vld [vmem:[%s696_s1 + $0x88] sm:$0xff]  ;;  %v524_v58 = vld [vmem:[%s696_s1] sm:$0xff] }
   0xd   :  { %360 = vmatpush.bf16.msra.mxu3 %v553_v11  ;;  %v33_v32 = vmul.f32 %v25_v22, %v19_v17  ;;  %v34_v33 = vmul.f32 %v26_v24, %v20_v20  ;;  %v35_v38 = vmul.f32 %v27_v27, %v21_v26  ;;  %v36_v39 = vmul.f32 %v28_v34, %v22_v29  ;;  %v549_v55 = vld [vmem:[%s696_s1 + $0xc8] sm:$0xff]  ;;  %v532_v59 = vld [vmem:[%s696_s1 + $0x40] sm:$0xff] }
   0xe   :  { %322 = vmatpush.bf16.msra.mxu0 %v528_v12  ;;  %v540_v62 = vld [vmem:[%s696_s1 + $0x80] sm:$0xff] }
   0xf   :  { %335 = vmatpush.bf16.msra.mxu1 %v536_v13  ;;  %v47_v40 = vadd.f32 %v39_v23, %v33_v32  ;;  %v48_v41 = vadd.f32 %v40_v25, %v34_v33  ;;  %v49_v44 = vadd.f32 %v41_v28, %v35_v38  ;;  %v50_v45 = vadd.f32 %v42_v35, %v36_v39  ;;  %v548_v63 = vld [vmem:[%s696_s1 + $0xc0] sm:$0xff] }
  0x10   :  { %348 = vmatpush.bf16.msra.mxu2 %v544_v14 }
  0x11   :  { %361 = vmatpush.bf16.msra.mxu3 %v552_v15  ;;  %v51_v48 = vmul.f32 0.2, %v47_v40  ;;  %v52_v49 = vmul.f32 0.2, %v48_v41  ;;  %v53_v52 = vmul.f32 0.2, %v49_v44 }
  0x12   :  { %323 = vmatpush.bf16.msra.mxu0 %v527_v30  ;;  %v54_v53 = vmul.f32 0.2, %v50_v45 }
  0x13   :  { %336 = vmatpush.bf16.msra.mxu1 %v535_v31  ;;  %v55_v56 = vmax.f32 %v47_v40, %v51_v48  ;;  %v56_v57 = vmax.f32 %v48_v41, %v52_v49  ;;  %v57_v60 = vmax.f32 %v49_v44, %v53_v52 }
  0x14   :  { %349 = vmatpush.bf16.msra.mxu2 %v543_v36  ;;  %v58_v61 = vmax.f32 %v50_v45, %v54_v53 }
  0x15   :  { %362 = vmatpush.bf16.msra.mxu3 %v551_v37  ;;  %v59_v0 = vpack.c.bf16 %v55_v56, %v55_v56  ;;  %v60_v1 = vpack.c.bf16 %v56_v57, %v56_v57  ;;  %v61_v2 = vpack.c.bf16 %v57_v60, %v57_v60 }
  0x16   :  { %324 = vmatpush.bf16.msra.mxu0 %v526_v42  ;;  %v62_v3 = vpack.c.bf16 %v58_v61, %v58_v61 }
  0x17   :  { %337 = vmatpush.bf16.msra.mxu1 %v534_v43 }
  0x18   :  { %350 = vmatpush.bf16.msra.mxu2 %v542_v46 }
  0x19   :  { %363 = vmatpush.bf16.msra.mxu3 %v550_v47 }
  0x1a   :  { %325 = vmatpush.bf16.msra.mxu0 %v525_v50 }
  0x1b   :  { %338 = vmatpush.bf16.msra.mxu1 %v533_v51 }
  0x1c   :  { %351 = vmatpush.bf16.msra.mxu2 %v541_v54 }
  0x1d   :  { %364 = vmatpush.bf16.msra.mxu3 %v549_v55 }
  0x1e   :  { %326 = vmatpush.bf16.msra.mxu0 %v524_v58 }
  0x1f   :  { %339 = vmatpush.bf16.msra.mxu1 %v532_v59 }
  0x20   :  { %352 = vmatpush.bf16.msra.mxu2 %v540_v62 }
  0x21   :  { %365 = vmatpush.bf16.msra.mxu3 %v548_v63  ;;  %327 = vmatmul.bf16.vlgmr.msra.gmra.mxu0 %v59_v0 }
  0x22   :  { %340 = vmatmul.bf16.vlgmr.msra.gmra.mxu1 %v60_v1 }
  0x23   :  { %353 = vmatmul.bf16.vlgmr.msra.gmra.mxu2 %v61_v2 }
  0x24   :  { %366 = vmatmul.bf16.vlgmr.msra.gmra.mxu3 %v62_v3 }
  0x9e   :  { %v328_v4 = vpop.f32.mrf.mxu0 }
  0x9f   :  { %v341_v5 = vpop.f32.mrf.mxu1 }
  0xa0   :  { %v342_v6 = vadd.f32 %v341_v5, %v328_v4 }
  0xa6   :  { %v354_v7 = vpop.f32.mrf.mxu2  ;;  %v330_v10 = vpop.f32.mrf.mxu0 }
  0xa7   :  { %v367_v8 = vpop.f32.mrf.mxu3  ;;  %v355_v9 = vadd.f32 %v354_v7, %v342_v6  ;;  %v343_v11 = vpop.f32.mrf.mxu1 }
  0xa9   :  { %v368_v12 = vadd.f32 %v367_v8, %v355_v9 }
  0xab   :  { %v523_v13 = vmul.f32 -1.442695, %v368_v12 }
  0xad   :  { %556 = vpow2.f32 %v523_v13 }
  0xae   :  { %v356_v14 = vpop.f32.mrf.mxu2 }
  0xaf   :  { %v369_v15 = vpop.f32.mrf.mxu3 }
  0xb3   :  { %v557_v16 = vpop.eup %556 }
  0xb4   :  { %v374_v17 = vadd.f32 1.0, %v557_v16 }
  0xb6   :  { %558 = vrcp.f32 %v374_v17  ;;  %v386_v21 = vand.u32 2147483648, %v374_v17  ;;  %v384_v23 = vand.u32 2147483647, %v374_v17  ;;  %vm380_vm1 = vweird.f32 %v374_v17 }
  0xb8   :  { %v387_v25 = vor.u32 1.1754944e-38, %v386_v21  ;;  %vm385_vm3 = vcmp.eq.f32.partialorder %v384_v23, 8.507059e+37 }
  0xbc   :  { %v559_v18 = vpop.eup %558 }
  0xbd   :  { %v376_v19 = vmul.f32 %v559_v18, %v374_v17  ;;  %vm381_vm0 = vweird.f32 %v559_v18 }
  0xbe   :  { %vm382_vm2 = vmor %vm380_vm1, %vm381_vm0 }
  0xbf   :  { %v377_v20 = vsub.f32 1.0, %v376_v19 }
  0xc1   :  { %v378_v22 = vmul.f32 %v559_v18, %v377_v20 }
  0xc3   :  { %v379_v24 = vadd.f32 %v559_v18, %v378_v22 }
  0xc5   :  { %v383_v26 = vsel %vm382_vm2, %v559_v18, %v379_v24 }
  0xc6   :  { %v388_v27 = vsel %vm385_vm3, %v387_v25, %v383_v26 }
  0xc7   :  { %390 = vst [vmem:[%s700_s4] sm:$0xff] %v388_v27 }

</bundles_post_ra>
